<compile_context>
chip_gen: v5e
topology: v5e:2x2
jax: 0.10.0
libtpu: 0.0.40
codegen_flags: <defaults>
</compile_context>

<pallas_src>
import jax
import jax.numpy as jnp
from jax.experimental import pallas as pl
from jax.experimental.pallas import tpu as pltpu


# --------------------------------------------------------------------------- #
# Fused single-step kernel: whole forward pass, everything resident in VMEM.   #
# --------------------------------------------------------------------------- #
def fused_kernel(x_ref, fix_ref, pos_vec_ref,
                 w1_ref, b1_ref, w2_ref, b2_ref, w3_ref, b3_ref,
                 wm_ref, bm_ref, ws_ref, bs_ref, wd_ref, bd_ref,
                 out_ref, pred_ref):
    f32 = jnp.float32
    bf16 = jnp.bfloat16

    # gen branch: ReLU(L3(ReLU(L2(ReLU(L1(x))))))  (Dropouts -> identity, eval)
    h1 = jnp.dot(x_ref[...], w1_ref[...], preferred_element_type=f32) + b1_ref[...]
    h1 = jnp.maximum(h1, 0.0).astype(bf16)
    h2 = jnp.dot(h1, w2_ref[...], preferred_element_type=f32) + b2_ref[...]
    h2 = jnp.maximum(h2, 0.0).astype(bf16)
    out = jnp.dot(h2, w3_ref[...], preferred_element_type=f32) + b3_ref[...]
    out_ref[...] = jnp.maximum(out, 0.0)

    # VAE branch: z = exp(std(fix)) * pos_vec + mean(fix); pred = decoder(z)
    fix = fix_ref[...]
    mean = jnp.dot(fix, wm_ref[...], preferred_element_type=f32) + bm_ref[...]
    logstd = jnp.dot(fix, ws_ref[...], preferred_element_type=f32) + bs_ref[...]
    z = (jnp.exp(logstd) * pos_vec_ref[...] + mean).astype(bf16)
    pred_ref[...] = jnp.dot(z, wd_ref[...], preferred_element_type=f32) + bd_ref[...]


# --------------------------------------------------------------------------- #
# Fallback: hidden-axis-tiled reduction (for shapes too large for single-step  #
# VMEM residency).  L3 / decoder / z are fused into the finalize branch.       #
# --------------------------------------------------------------------------- #
def fused_tiled_kernel(x_ref, fix_ref, pos_vec_ref,
                       w1_ref, b1_ref, w2_ref, b2_ref, w3_ref, b3_ref,
                       wm_ref, bm_ref, ws_ref, bs_ref, wd_ref, bd_ref,
                       out_ref, pred_ref, acc_ref):
    f32 = jnp.float32
    bf16 = jnp.bfloat16
    k = pl.program_id(0)

    @pl.when(k == 0)
    def _init():
        acc_ref[...] = jnp.zeros_like(acc_ref)

    # h1 over the current hidden-axis chunk, accumulate h2 pre-activation.
    h1 = jnp.dot(x_ref[...], w1_ref[...], preferred_element_type=f32) + b1_ref[...]
    h1 = jnp.maximum(h1, 0.0).astype(bf16)
    acc_ref[...] += jnp.dot(h1, w2_ref[...], preferred_element_type=f32)

    @pl.when(k == pl.num_programs(0) - 1)
    def _finalize():
        h2 = jnp.maximum(acc_ref[...] + b2_ref[...], 0.0).astype(bf16)
        out = jnp.dot(h2, w3_ref[...], preferred_element_type=f32) + b3_ref[...]
        out_ref[...] = jnp.maximum(out, 0.0)

        fix = fix_ref[...]
        mean = jnp.dot(fix, wm_ref[...], preferred_element_type=f32) + bm_ref[...]
        logstd = jnp.dot(fix, ws_ref[...], preferred_element_type=f32) + bs_ref[...]
        z = (jnp.exp(logstd) * pos_vec_ref[...] + mean).astype(bf16)
        pred_ref[...] = jnp.dot(z, wd_ref[...], preferred_element_type=f32) + bd_ref[...]


# --------------------------------------------------------------------------- #
# Wrapper                                                                      #
# --------------------------------------------------------------------------- #
def generator_forward(data, pos_data, pos_vec, params, *, force_tiled=False,
                      vmem_budget_bytes=40 << 20):
    (w1, b1, w2, b2, w3, b3, wm, bm, ws, bs, wd, bd) = params
    B, nb_item = data.shape
    _, pos_dis = pos_data.shape
    _, vector_dim = pos_vec.shape
    assert nb_item == pos_dis, "`data + pos_distribution_data` requires nb_item == pos_dis_size"
    K1 = nb_item + pos_dis
    H1, H2 = w1.shape[1], w2.shape[1]        # 1024, 512

    data_bf = data.astype(jnp.bfloat16)
    pos_bf = pos_data.astype(jnp.bfloat16)
    x = jnp.concatenate([data_bf, pos_bf], axis=-1)   # one-off lane-dense XLA concat
    fix = data_bf + pos_bf

    flops = 2 * B * (K1 * H1 + H1 * H2 + H2 * nb_item
                     + 2 * pos_dis * vector_dim + vector_dim * nb_item)
    weight_bytes = 2 * (K1 * H1 + H1 * H2 + H2 * nb_item
                        + 2 * pos_dis * vector_dim + vector_dim * nb_item)
    bias_bytes = 4 * (H1 + H2 + 2 * nb_item + 2 * vector_dim)
    io_bytes = 2 * B * (K1 + pos_dis) + 4 * B * vector_dim + 2 * 4 * B * nb_item
    ce = pl.CostEstimate(flops=flops, transcendentals=B * vector_dim,
                         bytes_accessed=weight_bytes + bias_bytes + io_bytes)

    # Rough single-step VMEM footprint (x2 safety for buffering / temporaries).
    act_bytes = 4 * B * (H1 + H2 + 2 * nb_item + 3 * vector_dim)
    single_ok = 2 * (weight_bytes + bias_bytes + io_bytes + act_bytes) <= vmem_budget_bytes

    args = (x, fix, pos_vec, w1, b1, w2, b2, w3, b3, wm, bm, ws, bs, wd, bd)
    out_shapes = (jax.ShapeDtypeStruct((B, nb_item), jnp.float32),
                  jax.ShapeDtypeStruct((B, nb_item), jnp.float32))

    if single_ok and not force_tiled:
        # Single launch, single grid step: no grid, whole arrays in VMEM.
        return pl.pallas_call(
            fused_kernel,
            out_shape=out_shapes,
            compiler_params=pltpu.CompilerParams(vmem_limit_bytes=48 << 20),
            cost_estimate=ce,
        )(*args)

    # ---------------- large-shape fallback: tile the hidden axis ----------- #
    tk = 256 if H1 % 256 == 0 else H1
    return pl.pallas_call(
        fused_tiled_kernel,
        out_shape=out_shapes,
        grid_spec=pltpu.PrefetchScalarGridSpec(
            num_scalar_prefetch=0,
            grid=(H1 // tk,),
            in_specs=[
                pl.BlockSpec((B, K1), lambda k: (0, 0)),               # x
                pl.BlockSpec((B, pos_dis), lambda k: (0, 0)),          # fix
                pl.BlockSpec((B, vector_dim), lambda k: (0, 0)),       # pos_vec
                pl.BlockSpec((K1, tk), lambda k: (0, k)),              # w1 tile
                pl.BlockSpec((1, tk), lambda k: (0, k)),               # b1 tile
                pl.BlockSpec((tk, H2), lambda k: (k, 0)),              # w2 tile
                pl.BlockSpec((1, H2), lambda k: (0, 0)),               # b2
                pl.BlockSpec((H2, nb_item), lambda k: (0, 0)),         # w3
                pl.BlockSpec((1, nb_item), lambda k: (0, 0)),          # b3
                pl.BlockSpec((pos_dis, vector_dim), lambda k: (0, 0)),  # wm
                pl.BlockSpec((1, vector_dim), lambda k: (0, 0)),        # bm
                pl.BlockSpec((pos_dis, vector_dim), lambda k: (0, 0)),  # ws
                pl.BlockSpec((1, vector_dim), lambda k: (0, 0)),        # bs
                pl.BlockSpec((vector_dim, nb_item), lambda k: (0, 0)),  # wd
                pl.BlockSpec((1, nb_item), lambda k: (0, 0)),           # bd
            ],
            out_specs=(pl.BlockSpec((B, nb_item), lambda k: (0, 0)),
                       pl.BlockSpec((B, nb_item), lambda k: (0, 0))),
            scratch_shapes=[pltpu.VMEM((B, H2), jnp.float32)],
        ),
        compiler_params=pltpu.CompilerParams(
            dimension_semantics=("arbitrary",),
            vmem_limit_bytes=48 << 20,
        ),
        cost_estimate=ce,
    )(*args)


# --------------------------------------------------------------------------- #
# Parameter init: single W1 over the concatenated input (matches PyTorch        #
# layout transposed to [in, out]); bf16 weights, f32 [1, out] biases.           #
# --------------------------------------------------------------------------- #
def init_params(key, nb_item, pos_dis_size, vector_dim):
    ks = jax.random.split(key, 12)

    def linear(kw, kb, fan_in, fan_out, std=None):
        bound = 1.0 / jnp.sqrt(jnp.float32(fan_in))
        if std is None:
            w = jax.random.uniform(kw, (fan_in, fan_out), jnp.float32, -bound, bound)
        else:
            w = std * jax.random.normal(kw, (fan_in, fan_out), jnp.float32)
        b = jax.random.uniform(kb, (1, fan_out), jnp.float32, -bound, bound)
        return w.astype(jnp.bfloat16), b

    w1, b1 = linear(ks[0], ks[1], nb_item + pos_dis_size, 1024)
    w2, b2 = linear(ks[2], ks[3], 1024, 512)
    w3, b3 = linear(ks[4], ks[5], 512, nb_item)
    wm, bm = linear(ks[6], ks[7], pos_dis_size, vector_dim, std=0.01)
    ws, bs = linear(ks[8], ks[9], pos_dis_size, vector_dim, std=0.01)
    wd, bd = linear(ks[10], ks[11], vector_dim, nb_item, std=0.01)
    return (w1, b1, w2, b2, w3, b3, wm, bm, ws, bs, wd, bd)


def reference_forward(data, pos_data, pos_vec, params):
    """Pure-JAX reference mirroring the kernel's bf16/f32 mixed precision."""
    (w1, b1, w2, b2, w3, b3, wm, bm, ws, bs, wd, bd) = params
    bf = jnp.bfloat16
    dot = lambda a, b: jnp.dot(a, b, preferred_element_type=jnp.float32)

    d = data.astype(bf)
    p = pos_data.astype(bf)
    x = jnp.concatenate([d, p], axis=-1)
    fix = d + p

    h1 = jnp.maximum(dot(x, w1) + b1, 0.0).astype(bf)
    h2 = jnp.maximum(dot(h1, w2) + b2, 0.0).astype(bf)
    out = jnp.maximum(dot(h2, w3) + b3, 0.0)

    mean = dot(fix, wm) + bm
    logstd = dot(fix, ws) + bs
    z = (jnp.exp(logstd) * pos_vec + mean).astype(bf)
    pred = dot(z, wd) + bd
    return out, pred


if __name__ == "__main__":
    # Note: the module's `data + pos_distribution_data` requires nb_item == pos_dis_size.
    B = 8
    nb_item = 256
    pos_dis_size = 256
    vector_dim = 128

    key = jax.random.PRNGKey(0)
    kp, kd, kpd, kv = jax.random.split(key, 4)

    params = init_params(kp, nb_item, pos_dis_size, vector_dim)
    data = jax.random.normal(kd, (B, nb_item), jnp.float32)
    pos_data = jax.random.normal(kpd, (B, pos_dis_size), jnp.float32)
    pos_vec = jax.random.normal(kv, (B, vector_dim), jnp.float32)

    ref_out, ref_pred = reference_forward(data, pos_data, pos_vec, params)

    # Primary path: fused, single-step (default at these shapes).
    out, pred = generator_forward(data, pos_data, pos_vec, params)
    jax.block_until_ready((out, pred))
    assert jnp.allclose(out, ref_out, atol=1e-2, rtol=1e-2), "gen branch mismatch (fused)"
    assert jnp.allclose(pred, ref_pred, atol=1e-2, rtol=1e-2), "decoder branch mismatch (fused)"

    # Large-shape fallback path (exercised here to keep it tested/correct).
    out_t, pred_t = generator_forward(data, pos_data, pos_vec, params, force_tiled=True)
    jax.block_until_ready((out_t, pred_t))
    assert jnp.allclose(out_t, ref_out, atol=1e-2, rtol=1e-2), "gen branch mismatch (tiled)"
    assert jnp.allclose(pred_t, ref_pred, atol=1e-2, rtol=1e-2), "decoder branch mismatch (tiled)"

    print("KERNEL_OK")
</pallas_src>

<mosaic_0001>
module attributes {stable_mosaic.version = 11 : i64} {
  func.func @fused_kernel(%arg0: memref<8x512xbf16, #tpu.memory_space<vmem>>, %arg1: memref<8x256xbf16, #tpu.memory_space<vmem>>, %arg2: memref<8x128xf32, #tpu.memory_space<vmem>>, %arg3: memref<512x1024xbf16, #tpu.memory_space<vmem>>, %arg4: memref<1x1024xf32, #tpu.memory_space<vmem>>, %arg5: memref<1024x512xbf16, #tpu.memory_space<vmem>>, %arg6: memref<1x512xf32, #tpu.memory_space<vmem>>, %arg7: memref<512x256xbf16, #tpu.memory_space<vmem>>, %arg8: memref<1x256xf32, #tpu.memory_space<vmem>>, %arg9: memref<256x128xbf16, #tpu.memory_space<vmem>>, %arg10: memref<1x128xf32, #tpu.memory_space<vmem>>, %arg11: memref<256x128xbf16, #tpu.memory_space<vmem>>, %arg12: memref<1x128xf32, #tpu.memory_space<vmem>>, %arg13: memref<128x256xbf16, #tpu.memory_space<vmem>>, %arg14: memref<1x256xf32, #tpu.memory_space<vmem>>, %arg15: memref<8x256xf32, #tpu.memory_space<vmem>>, %arg16: memref<8x256xf32, #tpu.memory_space<vmem>>) attributes {dimension_semantics = [], scalar_prefetch = 0 : i64, scratch_operands = 0 : i64, tpu.core_type = #tpu.core_type<tc>} {
    %c0 = arith.constant 0 : index
    %c0_0 = arith.constant 0 : index
    %0 = vector.load %arg0[%c0, %c0_0] : memref<8x512xbf16, #tpu.memory_space<vmem>>, vector<8x512xbf16>
    %c0_1 = arith.constant 0 : index
    %c0_2 = arith.constant 0 : index
    %1 = vector.load %arg3[%c0_1, %c0_2] : memref<512x1024xbf16, #tpu.memory_space<vmem>>, vector<512x1024xbf16>
    %cst = arith.constant dense<0.000000e+00> : vector<8x1024xf32>
    %2 = tpu.matmul %0, %1, %cst {dimension_numbers = #tpu.dot_dimension_numbers<[1], [0], [0], [1], [0, 0, 1, 1], [], []>} : vector<8x512xbf16>, vector<512x1024xbf16>, vector<8x1024xf32> -> vector<8x1024xf32>
    %c0_3 = arith.constant 0 : index
    %c0_4 = arith.constant 0 : index
    %3 = vector.load %arg4[%c0_3, %c0_4] : memref<1x1024xf32, #tpu.memory_space<vmem>>, vector<1x1024xf32>
    %4 = vector.broadcast %3 : vector<1x1024xf32> to vector<8x1024xf32>
    %5 = arith.addf %2, %4 : vector<8x1024xf32>
    %cst_5 = arith.constant 0.000000e+00 : f32
    %6 = vector.broadcast %cst_5 : f32 to vector<8x1024xf32>
    %7 = arith.maximumf %5, %6 : vector<8x1024xf32>
    %8 = arith.truncf %7 : vector<8x1024xf32> to vector<8x1024xbf16>
    %c0_6 = arith.constant 0 : index
    %c0_7 = arith.constant 0 : index
    %9 = vector.load %arg5[%c0_6, %c0_7] : memref<1024x512xbf16, #tpu.memory_space<vmem>>, vector<1024x512xbf16>
    %cst_8 = arith.constant dense<0.000000e+00> : vector<8x512xf32>
    %10 = tpu.matmul %8, %9, %cst_8 {dimension_numbers = #tpu.dot_dimension_numbers<[1], [0], [0], [1], [0, 0, 1, 1], [], []>} : vector<8x1024xbf16>, vector<1024x512xbf16>, vector<8x512xf32> -> vector<8x512xf32>
    %c0_9 = arith.constant 0 : index
    %c0_10 = arith.constant 0 : index
    %11 = vector.load %arg6[%c0_9, %c0_10] : memref<1x512xf32, #tpu.memory_space<vmem>>, vector<1x512xf32>
    %12 = vector.broadcast %11 : vector<1x512xf32> to vector<8x512xf32>
    %13 = arith.addf %10, %12 : vector<8x512xf32>
    %cst_11 = arith.constant 0.000000e+00 : f32
    %14 = vector.broadcast %cst_11 : f32 to vector<8x512xf32>
    %15 = arith.maximumf %13, %14 : vector<8x512xf32>
    %16 = arith.truncf %15 : vector<8x512xf32> to vector<8x512xbf16>
    %c0_12 = arith.constant 0 : index
    %c0_13 = arith.constant 0 : index
    %17 = vector.load %arg7[%c0_12, %c0_13] : memref<512x256xbf16, #tpu.memory_space<vmem>>, vector<512x256xbf16>
    %cst_14 = arith.constant dense<0.000000e+00> : vector<8x256xf32>
    %18 = tpu.matmul %16, %17, %cst_14 {dimension_numbers = #tpu.dot_dimension_numbers<[1], [0], [0], [1], [0, 0, 1, 1], [], []>} : vector<8x512xbf16>, vector<512x256xbf16>, vector<8x256xf32> -> vector<8x256xf32>
    %c0_15 = arith.constant 0 : index
    %c0_16 = arith.constant 0 : index
    %19 = vector.load %arg8[%c0_15, %c0_16] : memref<1x256xf32, #tpu.memory_space<vmem>>, vector<1x256xf32>
    %20 = vector.broadcast %19 : vector<1x256xf32> to vector<8x256xf32>
    %21 = arith.addf %18, %20 : vector<8x256xf32>
    %cst_17 = arith.constant 0.000000e+00 : f32
    %22 = vector.broadcast %cst_17 : f32 to vector<8x256xf32>
    %23 = arith.maximumf %21, %22 : vector<8x256xf32>
    %c0_18 = arith.constant 0 : index
    %c0_19 = arith.constant 0 : index
    %24 = vector.load %arg15[%c0_18, %c0_19] : memref<8x256xf32, #tpu.memory_space<vmem>>, vector<8x256xf32>
    tpu.vector_store %arg15[%c0_18, %c0_19], %23 {strides = array<i32>} : memref<8x256xf32, #tpu.memory_space<vmem>>, vector<8x256xf32>,
    %c0_20 = arith.constant 0 : index
    %c0_21 = arith.constant 0 : index
    %25 = vector.load %arg1[%c0_20, %c0_21] : memref<8x256xbf16, #tpu.memory_space<vmem>>, vector<8x256xbf16>
    %c0_22 = arith.constant 0 : index
    %c0_23 = arith.constant 0 : index
    %26 = vector.load %arg9[%c0_22, %c0_23] : memref<256x128xbf16, #tpu.memory_space<vmem>>, vector<256x128xbf16>
    %cst_24 = arith.constant dense<0.000000e+00> : vector<8x128xf32>
    %27 = tpu.matmul %25, %26, %cst_24 {dimension_numbers = #tpu.dot_dimension_numbers<[1], [0], [0], [1], [0, 0, 1, 1], [], []>} : vector<8x256xbf16>, vector<256x128xbf16>, vector<8x128xf32> -> vector<8x128xf32>
    %c0_25 = arith.constant 0 : index
    %c0_26 = arith.constant 0 : index
    %28 = vector.load %arg10[%c0_25, %c0_26] : memref<1x128xf32, #tpu.memory_space<vmem>>, vector<1x128xf32>
    %29 = vector.broadcast %28 : vector<1x128xf32> to vector<8x128xf32>
    %30 = arith.addf %27, %29 : vector<8x128xf32>
    %c0_27 = arith.constant 0 : index
    %c0_28 = arith.constant 0 : index
    %31 = vector.load %arg11[%c0_27, %c0_28] : memref<256x128xbf16, #tpu.memory_space<vmem>>, vector<256x128xbf16>
    %cst_29 = arith.constant dense<0.000000e+00> : vector<8x128xf32>
    %32 = tpu.matmul %25, %31, %cst_29 {dimension_numbers = #tpu.dot_dimension_numbers<[1], [0], [0], [1], [0, 0, 1, 1], [], []>} : vector<8x256xbf16>, vector<256x128xbf16>, vector<8x128xf32> -> vector<8x128xf32>
    %c0_30 = arith.constant 0 : index
    %c0_31 = arith.constant 0 : index
    %33 = vector.load %arg12[%c0_30, %c0_31] : memref<1x128xf32, #tpu.memory_space<vmem>>, vector<1x128xf32>
    %34 = vector.broadcast %33 : vector<1x128xf32> to vector<8x128xf32>
    %35 = arith.addf %32, %34 : vector<8x128xf32>
    %36 = math.exp %35 : vector<8x128xf32>
    %c0_32 = arith.constant 0 : index
    %c0_33 = arith.constant 0 : index
    %37 = vector.load %arg2[%c0_32, %c0_33] : memref<8x128xf32, #tpu.memory_space<vmem>>, vector<8x128xf32>
    %38 = arith.mulf %36, %37 : vector<8x128xf32>
    %39 = arith.addf %38, %30 : vector<8x128xf32>
    %40 = arith.truncf %39 : vector<8x128xf32> to vector<8x128xbf16>
    %c0_34 = arith.constant 0 : index
    %c0_35 = arith.constant 0 : index
    %41 = vector.load %arg13[%c0_34, %c0_35] : memref<128x256xbf16, #tpu.memory_space<vmem>>, vector<128x256xbf16>
    %cst_36 = arith.constant dense<0.000000e+00> : vector<8x256xf32>
    %42 = tpu.matmul %40, %41, %cst_36 {dimension_numbers = #tpu.dot_dimension_numbers<[1], [0], [0], [1], [0, 0, 1, 1], [], []>} : vector<8x128xbf16>, vector<128x256xbf16>, vector<8x256xf32> -> vector<8x256xf32>
    %c0_37 = arith.constant 0 : index
    %c0_38 = arith.constant 0 : index
    %43 = vector.load %arg14[%c0_37, %c0_38] : memref<1x256xf32, #tpu.memory_space<vmem>>, vector<1x256xf32>
    %44 = vector.broadcast %43 : vector<1x256xf32> to vector<8x256xf32>
    %45 = arith.addf %42, %44 : vector<8x256xf32>
    %c0_39 = arith.constant 0 : index
    %c0_40 = arith.constant 0 : index
    %46 = vector.load %arg16[%c0_39, %c0_40] : memref<8x256xf32, #tpu.memory_space<vmem>>, vector<8x256xf32>
    tpu.vector_store %arg16[%c0_39, %c0_40], %45 {strides = array<i32>} : memref<8x256xf32, #tpu.memory_space<vmem>>, vector<8x256xf32>,
    return
  }
}

</mosaic_0001>

<bundles_post_ra>
// kernel: tpu_custom_call.1
= control target key start
LH: loop header
LB: loop body
LE: loop exit
PB: predicated region body
PF: predicated region fallthrough
CT: control target
= control target key end

     0   :  { %s8974_s0 = inlined_call_operand.hbm [shape: bf16[8,512], index: 0, kind: input, shape index: {}]   ;;  %s8975_s1 = inlined_call_operand.hbm [shape: bf16[8,256], index: 1, kind: input, shape index: {}]   ;;  %s8976_s2 = inlined_call_operand.hbm [shape: f32[8,128], index: 2, kind: input, shape index: {}]   ;;  %s8977_s3 = inlined_call_operand.hbm [shape: bf16[512,1024], index: 3, kind: input, shape index: {}]   ;;  %s8978_s4 = inlined_call_operand.hbm [shape: f32[1,1024], index: 4, kind: input, shape index: {}]   ;;  %s8979_s5 = inlined_call_operand.hbm [shape: bf16[1024,512], index: 5, kind: input, shape index: {}]   ;;  %s8980_s6 = inlined_call_operand.vmem [shape: f32[1,512], index: 6, kind: input, shape index: {}]   ;;  %s8981_s7 = inlined_call_operand.hbm [shape: bf16[512,256], index: 7, kind: input, shape index: {}]   ;;  %s8982_s8 = inlined_call_operand.vmem [shape: f32[1,256], index: 8, kind: input, shape index: {}]   ;;  %s8983_s9 = inlined_call_operand.hbm [shape: bf16[256,128], index: 9, kind: input, shape index: {}]   ;;  %s8984_s10 = inlined_call_operand.vmem [shape: f32[1,128], index: 10, kind: input, shape index: {}]   ;;  %s8985_s11 = inlined_call_operand.hbm [shape: bf16[256,128], index: 11, kind: input, shape index: {}]   ;;  %s8986_s12 = inlined_call_operand.vmem [shape: f32[1,128], index: 12, kind: input, shape index: {}]   ;;  %s8987_s13 = inlined_call_operand.hbm [shape: bf16[128,256], index: 13, kind: input, shape index: {}]   ;;  %s8988_s14 = inlined_call_operand.vmem [shape: f32[1,256], index: 14, kind: input, shape index: {}]   ;;  %s8989_s15 = inlined_call_operand.hbm [shape: f32[8,256], index: 15, kind: output, shape index: {0}]   ;;  %s8990_s16 = inlined_call_operand.hbm [shape: f32[8,256], index: 16, kind: output, shape index: {1}]  }
   0x1   :  { %8991 = sst [smem:[#allocation30_spill]] %s8974_s0 }
   0x2   :  { %22 = vsyncpa [#allocation3], 0 }
   0x3   :  { %23 = vsyncpa [#allocation6], 0 }
   0x4   :  { %24 = vsyncpa [#allocation9], 0 }
   0x5   :  { %25 = vsyncpa [#allocation12], 0 }
   0x6   :  { %26 = vsyncpa [#allocation15], 0 }
   0x7   :  { %27 = vsyncpa [#allocation18], 0 }
   0x8   :  { %28 = vsyncpa [#allocation4], 0  ;;  %s46_s23 = sshll.u32 %s8975_s1, 4  ;;  %s47_s23 = int_to_ptr.hbm [resolvable:$true] %s46_s23 }
   0x9   :  { %29 = vsyncpa [#allocation21], 0  ;;  %s8620_s24 = smov [#allocation5]   ;;  %s67_s28 = sshll.u32 %s8977_s3, 4  ;;  %s68_s28 = int_to_ptr.hbm [resolvable:$true] %s67_s28 }
   0xa   :  { %s48_s25 = sshll.u32 %s8620_s24, 4  ;;  %s8621_s29 = smov [#allocation8]   ;;  %s49_s25 = int_to_ptr.vmem [resolvable:$true] %s48_s25 }
   0xb   :  { %51 = dma.hbm_to_vmem [thread:$0]  %s47_s23, 128, %s49_s25, [#allocation6]  }
   0xc   :  { %s69_s30 = sshll.u32 %s8621_s29, 4  ;;  %s8622_s0 = smov 512   ;;  %s70_s30 = int_to_ptr.vmem [resolvable:$true] %s69_s30 }
   0xd   :  { %s8623_s17 = smov 32   ;;  %s91_s1 = sshll.u32 %s8979_s5, 4  ;;  %s92_s1 = int_to_ptr.hbm [resolvable:$true] %s91_s1 }
   0xe   :  { %75 = dma.hbm_to_vmem [thread:$0]  %s68_s28, 32768, %s70_s30, [#allocation9], %s8622_s0, %s8622_s0, %s8623_s17  }
   0xf   :  { %s8624_s20 = smov [#allocation11]   ;;  %s121_s3 = sshll.u32 %s8983_s9, 4  ;;  %s122_s3 = int_to_ptr.hbm [resolvable:$true] %s121_s3 }
  0x10   :  { %s93_s21 = sshll.u32 %s8624_s20, 4  ;;  %s8625_s23 = smov 256   ;;  %s94_s21 = int_to_ptr.vmem [resolvable:$true] %s93_s21 }
  0x11   :  { %s8626_s25 = smov 16   ;;  %s8627_s26 = smov [#allocation14]  }
  0x12   :  { %99 = dma.hbm_to_vmem [thread:$0]  %s92_s1, 32768, %s94_s21, [#allocation12], %s8625_s23, %s8625_s23, %s8626_s25  }
  0x13   :  { %s123_s27 = sshll.u32 %s8627_s26, 4  ;;  %s8628_s28 = smov 64   ;;  %s124_s27 = int_to_ptr.vmem [resolvable:$true] %s123_s27 }
  0x14   :  { %s8629_s29 = smov 4   ;;  %s8992_s0 = sld [smem:[#allocation30_spill]] }
  0x15   :  { %129 = dma.hbm_to_vmem [thread:$0]  %s122_s3, 2048, %s124_s27, [#allocation15], %s8628_s28, %s8628_s28, %s8629_s29  }
  0x16   :  { %s8630_s18 = smov [#allocation2]   ;;  %s57_s20 = sshll.u32 %s8976_s2, 4  ;;  %s58_s20 = int_to_ptr.hbm [resolvable:$true] %s57_s20 }
  0x17   :  { %s37_s9 = sshll.u32 %s8630_s18, 4  ;;  %s8631_s21 = smov [#allocation7]   ;;  %s38_s9 = int_to_ptr.vmem [resolvable:$true] %s37_s9 }
  0x18   :  { %s59_s22 = sshll.u32 %s8631_s21, 4  ;;  %s81_s3 = sshll.u32 %s8978_s4, 4  ;;  %s60_s22 = int_to_ptr.vmem [resolvable:$true] %s59_s22  ;;  %s82_s3 = int_to_ptr.hbm [resolvable:$true] %s81_s3 }
  0x19   :  { %62 = dma.hbm_to_vmem [thread:$0]  %s58_s20, 128, %s60_s22, [#allocation6]  }
  0x1a   :  { %s35_s17 = sshll.u32 %s8992_s0, 4  ;;  %s106_s27 = sshll.u32 %s8981_s7, 4  ;;  %s36_s17 = int_to_ptr.hbm [resolvable:$true] %s35_s17  ;;  %s107_s27 = int_to_ptr.hbm [resolvable:$true] %s106_s27 }
  0x1b   :  { %40 = dma.hbm_to_vmem [thread:$0]  %s36_s17, 256, %s38_s9, [#allocation3]  }
  0x1c   :  { %s8632_s5 = smov [#allocation10]   ;;  %s8633_s2 = smov [#allocation13]  }
  0x1d   :  { %s83_s30 = sshll.u32 %s8632_s5, 4  ;;  %s108_s0 = sshll.u32 %s8633_s2, 4  ;;  %s84_s30 = int_to_ptr.vmem [resolvable:$true] %s83_s30  ;;  %s109_s0 = int_to_ptr.vmem [resolvable:$true] %s108_s0 }
  0x1e   :  { %86 = dma.hbm_to_vmem [thread:$0]  %s82_s3, 128, %s84_s30, [#allocation9]  }
  0x1f   :  { %s8634_s17 = smov 128   ;;  %s8635_s18 = smov 8  }
  0x20   :  { %114 = dma.hbm_to_vmem [thread:$0]  %s107_s27, 8192, %s109_s0, [#allocation12], %s8634_s17, %s8634_s17, %s8635_s18  }
  0x21   :  { %s136_s19 = sshll.u32 %s8985_s11, 4  ;;  %s8636_s1 = smov [#allocation16]   ;;  %s137_s19 = int_to_ptr.hbm [resolvable:$true] %s136_s19 }
  0x22   :  { %s138_s20 = sshll.u32 %s8636_s1, 4  ;;  %s151_s22 = sshll.u32 %s8987_s13, 4  ;;  %s139_s20 = int_to_ptr.vmem [resolvable:$true] %s138_s20  ;;  %s152_s22 = int_to_ptr.hbm [resolvable:$true] %s151_s22 }
  0x23   :  { %144 = dma.hbm_to_vmem [thread:$0]  %s137_s19, 2048, %s139_s20, [#allocation15], %s8628_s28, %s8628_s28, %s8629_s29  }
  0x24   :  { %s8637_s24 = smov [#allocation17]  }
  0x25   :  { %s153_s23 = sshll.u32 %s8637_s24, 4  ;;  %s154_s23 = int_to_ptr.vmem [resolvable:$true] %s153_s23 }
  0x26   :  { %159 = dma.hbm_to_vmem [thread:$0]  %s152_s22, 2048, %s154_s23, [#allocation18], %s8634_s17, %s8634_s17, %s8635_s18  }
  0x27   :  { %8604 = dma.done.wait [#allocation3], 256  }
  0x28   :  { %8605 = vsyncadd [#allocation3], 4294967040 }
  0x29   :  { %8606 = dma.done.wait [#allocation6], 256  }
  0x2a   :  { %8607 = vsyncadd [#allocation6], 4294967040 }
  0x2b   :  { %8608 = dma.done.wait [#allocation9], 32896  }
  0x2c   :  { %8609 = vsyncadd [#allocation9], 4294934400 }
  0x2d   :  { %8610 = dma.done.wait [#allocation12], 40960  }
  0x2e   :  { %8611 = vsyncadd [#allocation12], 4294926336 }
  0x2f   :  { %8612 = dma.done.wait [#allocation15], 4096  }
  0x30   :  { %8613 = vsyncadd [#allocation15], 4294963200 }
  0x31   :  { %8614 = dma.done.wait [#allocation18], 2048  }
  0x32   :  { %8615 = vsyncadd [#allocation18], 4294965248  ;;  %v5396_v0 = vld [vmem:[#allocation8 + $0x1c0] sm:$0xf]  ;;  %s5139_s0 = sshll.u32 %s8989_s15, 4  ;;  %s8639_s18 = smov [#allocation20]   ;;  %s5140_s0 = int_to_ptr.hbm [resolvable:$true] %s5139_s0 }
  0x33   :  { %v7726_v1 = vld [vmem:[#allocation8 + $0x1dc] sm:$0xf0]  ;;  %s5148_s9 = sshll.u32 %s8639_s18, 4  ;;  %s5150_s1 = sshll.u32 %s8990_s16, 4  ;;  %s5149_s9 = int_to_ptr.vmem [resolvable:$true] %s5148_s9  ;;  %s5151_s1 = int_to_ptr.hbm [resolvable:$true] %s5150_s1 }
  0x34   :  { %v5652_v2 = vld [vmem:[#allocation8 + $0x3c0] sm:$0xf]  ;;  %v5397_v3 = vor.u32 %v7726_v1, %v5396_v0 }
  0x35   :  { %v7790_v4 = vld [vmem:[#allocation8 + $0x3dc] sm:$0xf0] }
  0x36   :  { %v5908_v5 = vld [vmem:[#allocation8 + $0x5c0] sm:$0xf]  ;;  %v5653_v7 = vor.u32 %v7790_v4, %v5652_v2  ;;  %1772 = vmatpush.bf16.msra.mxu0 %v5397_v3 }
  0x37   :  { %v7854_v6 = vld [vmem:[#allocation8 + $0x5dc] sm:$0xf0] }
  0x38   :  { %v5909_v8 = vor.u32 %v7854_v6, %v5908_v5  ;;  %v6164_v9 = vld [vmem:[#allocation8 + $0x7c0] sm:$0xf]  ;;  %1785 = vmatpush.bf16.msra.mxu1 %v5653_v7 }
  0x39   :  { %v7918_v10 = vld [vmem:[#allocation8 + $0x7dc] sm:$0xf0] }
  0x3a   :  { %v5364_v11 = vld [vmem:[#allocation8 + $0x180] sm:$0xf]  ;;  %v6165_v12 = vor.u32 %v7918_v10, %v6164_v9  ;;  %1798 = vmatpush.bf16.msra.mxu2 %v5909_v8 }
  0x3b   :  { %v7718_v13 = vld [vmem:[#allocation8 + $0x19c] sm:$0xf0] }
  0x3c   :  { %v5620_v14 = vld [vmem:[#allocation8 + $0x380] sm:$0xf]  ;;  %v5365_v16 = vor.u32 %v7718_v13, %v5364_v11  ;;  %1811 = vmatpush.bf16.msra.mxu3 %v6165_v12 }
  0x3d   :  { %v7782_v15 = vld [vmem:[#allocation8 + $0x39c] sm:$0xf0] }
  0x3e   :  { %v5621_v17 = vor.u32 %v7782_v15, %v5620_v14  ;;  %v5876_v18 = vld [vmem:[#allocation8 + $0x580] sm:$0xf]  ;;  %1773 = vmatpush.bf16.msra.mxu0 %v5365_v16 }
  0x3f   :  { %v7846_v19 = vld [vmem:[#allocation8 + $0x59c] sm:$0xf0] }
  0x40   :  { %v6132_v20 = vld [vmem:[#allocation8 + $0x780] sm:$0xf]  ;;  %v5877_v21 = vor.u32 %v7846_v19, %v5876_v18  ;;  %1786 = vmatpush.bf16.msra.mxu1 %v5621_v17 }
  0x41   :  { %v7910_v22 = vld [vmem:[#allocation8 + $0x79c] sm:$0xf0] }
  0x42   :  { %v5332_v23 = vld [vmem:[#allocation8 + $0x140] sm:$0xf]  ;;  %v6133_v25 = vor.u32 %v7910_v22, %v6132_v20  ;;  %1799 = vmatpush.bf16.msra.mxu2 %v5877_v21 }
  0x43   :  { %v7710_v24 = vld [vmem:[#allocation8 + $0x15c] sm:$0xf0] }
  0x44   :  { %v5588_v26 = vld [vmem:[#allocation8 + $0x340] sm:$0xf]  ;;  %v5333_v29 = vor.u32 %v7710_v24, %v5332_v23  ;;  %1812 = vmatpush.bf16.msra.mxu3 %v6133_v25 }
  0x45   :  { %v7774_v27 = vld [vmem:[#allocation8 + $0x35c] sm:$0xf0] }
  0x46   :  { %v5844_v28 = vld [vmem:[#allocation8 + $0x540] sm:$0xf]  ;;  %v5589_v33 = vor.u32 %v7774_v27, %v5588_v26  ;;  %1774 = vmatpush.bf16.msra.mxu0 %v5333_v29  ;;  %v5398_v29 = vld [vmem:[#allocation8 + $0x1e0] sm:$0xf0] }
  0x47   :  { %v7838_v30 = vld [vmem:[#allocation8 + $0x55c] sm:$0xf0] }
  0x48   :  { %v6100_v31 = vld [vmem:[#allocation8 + $0x740] sm:$0xf]  ;;  %v5845_v34 = vor.u32 %v7838_v30, %v5844_v28  ;;  %1787 = vmatpush.bf16.msra.mxu1 %v5589_v33  ;;  %v7722_v28 = vld [vmem:[#allocation8 + $0x1c4] sm:$0xf] }
  0x49   :  { %v7902_v32 = vld [vmem:[#allocation8 + $0x75c] sm:$0xf0]  ;;  %v7786_v30 = vld [vmem:[#allocation8 + $0x3c4] sm:$0xf] }
  0x4a   :  { %v5300_v35 = vld [vmem:[#allocation8 + $0x100] sm:$0xf]  ;;  %v6101_v38 = vor.u32 %v7902_v32, %v6100_v31  ;;  %1800 = vmatpush.bf16.msra.mxu2 %v5845_v34  ;;  %v5654_v32 = vld [vmem:[#allocation8 + $0x3e0] sm:$0xf0] }
  0x4b   :  { %v7702_v36 = vld [vmem:[#allocation8 + $0x11c] sm:$0xf0]  ;;  %v7850_v33 = vld [vmem:[#allocation8 + $0x5c4] sm:$0xf] }
  0x4c   :  { %v5556_v37 = vld [vmem:[#allocation8 + $0x300] sm:$0xf]  ;;  %v5301_v44 = vor.u32 %v7702_v36, %v5300_v35  ;;  %1813 = vmatpush.bf16.msra.mxu3 %v6101_v38  ;;  %v5910_v34 = vld [vmem:[#allocation8 + $0x5e0] sm:$0xf0] }
  0x4d   :  { %v7766_v39 = vld [vmem:[#allocation8 + $0x31c] sm:$0xf0]  ;;  %v6166_v38 = vld [vmem:[#allocation8 + $0x7e0] sm:$0xf0] }
  0x4e   :  { %v5812_v40 = vld [vmem:[#allocation8 + $0x500] sm:$0xf]  ;;  %v5557_v45 = vor.u32 %v7766_v39, %v5556_v37  ;;  %1775 = vmatpush.bf16.msra.mxu0 %v5301_v44  ;;  %v7914_v37 = vld [vmem:[#allocation8 + $0x7c4] sm:$0xf] }
  0x4f   :  { %v7830_v41 = vld [vmem:[#allocation8 + $0x51c] sm:$0xf0]  ;;  %v5366_v44 = vld [vmem:[#allocation8 + $0x1a0] sm:$0xf0] }
  0x50   :  { %v6068_v42 = vld [vmem:[#allocation8 + $0x700] sm:$0xf]  ;;  %v5813_v46 = vor.u32 %v7830_v41, %v5812_v40  ;;  %1788 = vmatpush.bf16.msra.mxu1 %v5557_v45  ;;  %v5401_v40 = vor.u32 %v7722_v28, %v5398_v29  ;;  %v5657_v41 = vor.u32 %v7786_v30, %v5654_v32  ;;  %v7778_v45 = vld [vmem:[#allocation8 + $0x384] sm:$0xf] }
  0x51   :  { %v7894_v43 = vld [vmem:[#allocation8 + $0x71c] sm:$0xf0]  ;;  %v5526_v29 = vld [vmem:[#allocation8 + $0x2e0] sm:$0xf0] }
  0x52   :  { %v5268_v47 = vld [vmem:[#allocation8 + $0xc0] sm:$0xf]  ;;  %v6069_v50 = vor.u32 %v7894_v43, %v6068_v42  ;;  %1801 = vmatpush.bf16.msra.mxu2 %v5813_v46  ;;  %v5913_v42 = vor.u32 %v7850_v33, %v5910_v34  ;;  %v7714_v43 = vld [vmem:[#allocation8 + $0x184] sm:$0xf]  ;;  %v6169_v46 = vor.u32 %v7914_v37, %v6166_v38 }
  0x53   :  { %v7694_v48 = vld [vmem:[#allocation8 + $0xdc] sm:$0xf0]  ;;  %v7818_v30 = vld [vmem:[#allocation8 + $0x4c4] sm:$0xf] }
  0x54   :  { %v5524_v49 = vld [vmem:[#allocation8 + $0x2c0] sm:$0xf]  ;;  %v5269_v56 = vor.u32 %v7694_v48, %v5268_v47  ;;  %1814 = vmatpush.bf16.msra.mxu3 %v6069_v50  ;;  %v5622_v47 = vld [vmem:[#allocation8 + $0x3a0] sm:$0xf0] }
  0x55   :  { %v7758_v51 = vld [vmem:[#allocation8 + $0x2dc] sm:$0xf0]  ;;  %v7842_v48 = vld [vmem:[#allocation8 + $0x584] sm:$0xf] }
  0x56   :  { %v5780_v52 = vld [vmem:[#allocation8 + $0x4c0] sm:$0xf]  ;;  %v5525_v57 = vor.u32 %v7758_v51, %v5524_v49  ;;  %1776 = vmatpush.bf16.msra.mxu0 %v5269_v56  ;;  %v5878_v49 = vld [vmem:[#allocation8 + $0x5a0] sm:$0xf0] }
  0x57   :  { %v7822_v53 = vld [vmem:[#allocation8 + $0x4dc] sm:$0xf0]  ;;  %v7906_v50 = vld [vmem:[#allocation8 + $0x784] sm:$0xf] }
  0x58   :  { %v6036_v54 = vld [vmem:[#allocation8 + $0x6c0] sm:$0xf]  ;;  %v5781_v58 = vor.u32 %v7822_v53, %v5780_v52  ;;  %1789 = vmatpush.bf16.msra.mxu1 %v5525_v57  ;;  %v6134_v51 = vld [vmem:[#allocation8 + $0x7a0] sm:$0xf0]  ;;  %v5369_v52 = vor.u32 %v7714_v43, %v5366_v44 }
  0x59   :  { %v7886_v55 = vld [vmem:[#allocation8 + $0x6dc] sm:$0xf0]  ;;  %v7706_v53 = vld [vmem:[#allocation8 + $0x144] sm:$0xf] }
  0x5a   :  { %v5236_v59 = vld [vmem:[#allocation8 + $0x80] sm:$0xf]  ;;  %v6037_v62 = vor.u32 %v7886_v55, %v6036_v54  ;;  %1802 = vmatpush.bf16.msra.mxu2 %v5781_v58  ;;  %v5625_v54 = vor.u32 %v7778_v45, %v5622_v47  ;;  %v5881_v55 = vor.u32 %v7842_v48, %v5878_v49  ;;  %v5334_v56 = vld [vmem:[#allocation8 + $0x160] sm:$0xf0] }
  0x5b   :  { %v7686_v60 = vld [vmem:[#allocation8 + $0x9c] sm:$0xf0]  ;;  %v7770_v57 = vld [vmem:[#allocation8 + $0x344] sm:$0xf] }
  0x5c   :  { %v5492_v61 = vld [vmem:[#allocation8 + $0x280] sm:$0xf]  ;;  %v5237_v4 = vor.u32 %v7686_v60, %v5236_v59  ;;  %1815 = vmatpush.bf16.msra.mxu3 %v6037_v62  ;;  %v5590_v58 = vld [vmem:[#allocation8 + $0x360] sm:$0xf0]  ;;  %v6137_v59 = vor.u32 %v7906_v50, %v6134_v51 }
  0x5d   :  { %v7750_v63 = vld [vmem:[#allocation8 + $0x29c] sm:$0xf0]  ;;  %v7834_v60 = vld [vmem:[#allocation8 + $0x544] sm:$0xf] }
  0x5e   :  { %v5748_v0 = vld [vmem:[#allocation8 + $0x480] sm:$0xf]  ;;  %v5493_v5 = vor.u32 %v7750_v63, %v5492_v61  ;;  %1777 = vmatpush.bf16.msra.mxu0 %v5237_v4  ;;  %v5846_v61 = vld [vmem:[#allocation8 + $0x560] sm:$0xf0] }
  0x5f   :  { %v7814_v1 = vld [vmem:[#allocation8 + $0x49c] sm:$0xf0]  ;;  %v7898_v62 = vld [vmem:[#allocation8 + $0x744] sm:$0xf]  ;;  %v5849_v4 = vor.u32 %v7834_v60, %v5846_v61 }
  0x60   :  { %v6004_v2 = vld [vmem:[#allocation8 + $0x680] sm:$0xf]  ;;  %v5749_v6 = vor.u32 %v7814_v1, %v5748_v0  ;;  %1790 = vmatpush.bf16.msra.mxu1 %v5493_v5  ;;  %v6102_v63 = vld [vmem:[#allocation8 + $0x760] sm:$0xf0]  ;;  %v5337_v0 = vor.u32 %v7706_v53, %v5334_v56  ;;  %v5593_v1 = vor.u32 %v7770_v57, %v5590_v58 }
  0x61   :  { %v7878_v3 = vld [vmem:[#allocation8 + $0x69c] sm:$0xf0]  ;;  %v7698_v5 = vld [vmem:[#allocation8 + $0x104] sm:$0xf] }
  0x62   :  { %v5204_v7 = vld [vmem:[#allocation8 + $0x40] sm:$0xf]  ;;  %v6005_v10 = vor.u32 %v7878_v3, %v6004_v2  ;;  %1803 = vmatpush.bf16.msra.mxu2 %v5749_v6  ;;  %v203_v2 = vld [vmem:[#allocation2 + $0x8] sm:$0xff]  ;;  %v5302_v6 = vld [vmem:[#allocation8 + $0x120] sm:$0xf0] }
  0x63   :  { %v7678_v8 = vld [vmem:[#allocation8 + $0x5c] sm:$0xf0]  ;;  %v7882_v32 = vld [vmem:[#allocation8 + $0x6c4] sm:$0xf] }
  0x64   :  { %v5460_v9 = vld [vmem:[#allocation8 + $0x240] sm:$0xf]  ;;  %v5205_v16 = vor.u32 %v7678_v8, %v5204_v7  ;;  %1816 = vmatpush.bf16.msra.mxu3 %v6005_v10  ;;  %v7762_v7 = vld [vmem:[#allocation8 + $0x304] sm:$0xf]  ;;  %v482_v8 = vunpack.c.l.b16 %v203_v2  ;;  %v483_v10 = vunpack.c.h.b16 %v203_v2 }
  0x65   :  { %v7742_v11 = vld [vmem:[#allocation8 + $0x25c] sm:$0xf0]  ;;  %v6038_v33 = vld [vmem:[#allocation8 + $0x6e0] sm:$0xf0] }
  0x66   :  { %v5716_v12 = vld [vmem:[#allocation8 + $0x440] sm:$0xf]  ;;  %v5461_v19 = vor.u32 %v7742_v11, %v5460_v9  ;;  %1778 = vmatpush.bf16.msra.mxu0 %v5205_v16  ;;  %v6105_v11 = vor.u32 %v7898_v62, %v6102_v63  ;;  %v7890_v16 = vld [vmem:[#allocation8 + $0x704] sm:$0xf] }
  0x67   :  { %v7806_v13 = vld [vmem:[#allocation8 + $0x45c] sm:$0xf0]  ;;  %v7682_v37 = vld [vmem:[#allocation8 + $0x84] sm:$0xf] }
  0x68   :  { %v5972_v14 = vld [vmem:[#allocation8 + $0x640] sm:$0xf]  ;;  %v5717_v20 = vor.u32 %v7806_v13, %v5716_v12  ;;  %1791 = vmatpush.bf16.msra.mxu1 %v5461_v19  ;;  %v5558_v12 = vld [vmem:[#allocation8 + $0x320] sm:$0xf0] }
  0x69   :  { %v7870_v15 = vld [vmem:[#allocation8 + $0x65c] sm:$0xf0]  ;;  %v7826_v13 = vld [vmem:[#allocation8 + $0x504] sm:$0xf] }
  0x6a   :  { %v5172_v17 = vld [vmem:[#allocation8] sm:$0xf]  ;;  %v5973_v24 = vor.u32 %v7870_v15, %v5972_v14  ;;  %1804 = vmatpush.bf16.msra.mxu2 %v5717_v20  ;;  %v5814_v14 = vld [vmem:[#allocation8 + $0x520] sm:$0xf0]  ;;  %v8765_v20 = vpack.c.b16 %v483_v10, %v483_v10  ;;  %v7791_v10 = vld [vmem:[#allocation8 + $0x3e4] sm:$0xf0] }
  0x6b   :  { %v7670_v18 = vld [vmem:[#allocation8 + $0x1c] sm:$0xf0]  ;;  %v5238_v38 = vld [vmem:[#allocation8 + $0xa0] sm:$0xf0] }
  0x6c   :  { %v5428_v21 = vld [vmem:[#allocation8 + $0x200] sm:$0xf]  ;;  %v5173_v31 = vor.u32 %v7670_v18, %v5172_v17  ;;  %1817 = vmatpush.bf16.msra.mxu3 %v5973_v24  ;;  %v6070_v17 = vld [vmem:[#allocation8 + $0x720] sm:$0xf0]  ;;  %v8761_v18 = vpack.c.b16 %v482_v8, %v482_v8  ;;  %v5817_v24 = vor.u32 %v7826_v13, %v5814_v14  ;;  %v5660_v8 = vld [vmem:[#allocation8 + $0x3c8] sm:$0xf] }
  0x6d   :  { %v7734_v22 = vld [vmem:[#allocation8 + $0x21c] sm:$0xf0]  ;;  %v6073_v28 = vor.u32 %v7890_v16, %v6070_v17  ;;  %v5750_v43 = vld [vmem:[#allocation8 + $0x4a0] sm:$0xf0]  ;;  %v7919_v16 = vld [vmem:[#allocation8 + $0x7e4] sm:$0xf0] }
  0x6e   :  { %v5684_v23 = vld [vmem:[#allocation8 + $0x400] sm:$0xf]  ;;  %v5429_v35 = vor.u32 %v7734_v22, %v5428_v21  ;;  %1779 = vmatpush.bf16.msra.mxu0 %v5173_v31  ;;  %v5305_v21 = vor.u32 %v7698_v5, %v5302_v6  ;;  %v5782_v31 = vld [vmem:[#allocation8 + $0x4e0] sm:$0xf0]  ;;  %v5404_v6 = vld [vmem:[#allocation8 + $0x1c8] sm:$0xf] }
  0x6f   :  { %v7798_v25 = vld [vmem:[#allocation8 + $0x41c] sm:$0xf0]  ;;  %v7874_v44 = vld [vmem:[#allocation8 + $0x684] sm:$0xf] }
  0x70   :  { %v5940_v26 = vld [vmem:[#allocation8 + $0x600] sm:$0xf]  ;;  %v5685_v36 = vor.u32 %v7798_v25, %v5684_v23  ;;  %1792 = vmatpush.bf16.msra.mxu1 %v5429_v35  ;;  %v5561_v23 = vor.u32 %v7762_v7, %v5558_v12  ;;  %v7690_v25 = vld [vmem:[#allocation8 + $0xc4] sm:$0xf]  ;;  %v7727_v7 = vld [vmem:[#allocation8 + $0x1e4] sm:$0xf0] }
  0x71   :  { %v7862_v27 = vld [vmem:[#allocation8 + $0x61c] sm:$0xf0]  ;;  %v6006_v45 = vld [vmem:[#allocation8 + $0x6a0] sm:$0xf0]  ;;  %v7855_v12 = vld [vmem:[#allocation8 + $0x5e4] sm:$0xf0] }
  0x72   :  { %v5941_v39 = vor.u32 %v7862_v27, %v5940_v26  ;;  %1805 = vmatpush.bf16.msra.mxu2 %v5685_v36  ;;  %1824 = vmatpush.bf16.msrb.mxu0 %v5401_v40  ;;  %v202_v3 = vld [vmem:[#allocation2] sm:$0xff]  ;;  %v5785_v36 = vor.u32 %v7818_v30, %v5782_v31  ;;  %v6041_v40 = vor.u32 %v7882_v32, %v6038_v33  ;;  %v5884_v30 = vld [vmem:[#allocation8 + $0x588] sm:$0xf] }
  0x73   :  { %v480_v9 = vunpack.c.l.b16 %v202_v3  ;;  %v481_v15 = vunpack.c.h.b16 %v202_v3  ;;  %v5270_v26 = vld [vmem:[#allocation8 + $0xe0] sm:$0xf0]  ;;  %v7847_v31 = vld [vmem:[#allocation8 + $0x5a4] sm:$0xf0] }
  0x74   :  { %1818 = vmatpush.bf16.msra.mxu3 %v5941_v39  ;;  %1837 = vmatpush.bf16.msrb.mxu1 %v5657_v41  ;;  %v7754_v27 = vld [vmem:[#allocation8 + $0x2c4] sm:$0xf]  ;;  %v5273_v34 = vor.u32 %v7690_v25, %v5270_v26  ;;  %v5372_v25 = vld [vmem:[#allocation8 + $0x188] sm:$0xf] }
  0x75   :  { %v8763_v19 = vpack.c.b16 %v480_v9, %v480_v9  ;;  %v8767_v22 = vpack.c.b16 %v481_v15, %v481_v15  ;;  %1806 = vmatmul.bf16.vlgmr.msra.gmra.mxu2 %v8761_v18  ;;  %v5529_v35 = vor.u32 %v7754_v27, %v5526_v29  ;;  %v7746_v39 = vld [vmem:[#allocation8 + $0x284] sm:$0xf]  ;;  %v6172_v15 = vld [vmem:[#allocation8 + $0x7c8] sm:$0xf] }
  0x76   :  { %1850 = vmatpush.bf16.msrb.mxu2 %v5913_v42  ;;  %1825 = vmatpush.bf16.msrb.mxu0 %v5369_v52  ;;  %v5494_v41 = vld [vmem:[#allocation8 + $0x2a0] sm:$0xf0]  ;;  %v6009_v52 = vor.u32 %v7874_v44, %v6006_v45  ;;  %v7719_v26 = vld [vmem:[#allocation8 + $0x1a4] sm:$0xf0] }
  0x77   :  { %1780 = vmatmul.bf16.vlgmr.msra.gmra.mxu0 %v8763_v19  ;;  %1819 = vmatmul.bf16.vlgmr.msra.gmra.mxu3 %v8765_v20  ;;  %v7810_v42 = vld [vmem:[#allocation8 + $0x484] sm:$0xf]  ;;  %v5497_v47 = vor.u32 %v7746_v39, %v5494_v41  ;;  %v5628_v27 = vld [vmem:[#allocation8 + $0x388] sm:$0xf] }
  0x78   :  { %1863 = vmatpush.bf16.msrb.mxu3 %v6169_v46  ;;  %1838 = vmatpush.bf16.msrb.mxu1 %v5625_v54  ;;  %v5241_v46 = vor.u32 %v7682_v37, %v5238_v38  ;;  %v5753_v48 = vor.u32 %v7810_v42, %v5750_v43  ;;  %v7674_v49 = vld [vmem:[#allocation8 + $0x44] sm:$0xf]  ;;  %v7783_v29 = vld [vmem:[#allocation8 + $0x3a4] sm:$0xf0] }
  0x79   :  { %1793 = vmatmul.bf16.vlgmr.msra.gmra.mxu1 %v8767_v22  ;;  %v5206_v50 = vld [vmem:[#allocation8 + $0x60] sm:$0xf0]  ;;  %v6140_v32 = vld [vmem:[#allocation8 + $0x788] sm:$0xf] }
  0x7a   :  { %1851 = vmatpush.bf16.msrb.mxu2 %v5881_v55  ;;  %1826 = vmatpush.bf16.msrb.mxu0 %v5337_v0  ;;  %v7738_v51 = vld [vmem:[#allocation8 + $0x244] sm:$0xf]  ;;  %v5209_v58 = vor.u32 %v7674_v49, %v5206_v50  ;;  %v7911_v33 = vld [vmem:[#allocation8 + $0x7a4] sm:$0xf0] }
  0x7b   :  { %v5462_v53 = vld [vmem:[#allocation8 + $0x260] sm:$0xf0]  ;;  %v5340_v37 = vld [vmem:[#allocation8 + $0x148] sm:$0xf] }
  0x7c   :  { %1864 = vmatpush.bf16.msrb.mxu3 %v6137_v59  ;;  %1839 = vmatpush.bf16.msrb.mxu1 %v5593_v1  ;;  %v7802_v54 = vld [vmem:[#allocation8 + $0x444] sm:$0xf]  ;;  %v5465_v61 = vor.u32 %v7738_v51, %v5462_v53  ;;  %v7711_v38 = vld [vmem:[#allocation8 + $0x164] sm:$0xf0] }
  0x7d   :  { %v5718_v55 = vld [vmem:[#allocation8 + $0x460] sm:$0xf0]  ;;  %v5596_v39 = vld [vmem:[#allocation8 + $0x348] sm:$0xf] }
  0x7e   :  { %1852 = vmatpush.bf16.msrb.mxu2 %v5849_v4  ;;  %1827 = vmatpush.bf16.msrb.mxu0 %v5305_v21  ;;  %v7866_v56 = vld [vmem:[#allocation8 + $0x644] sm:$0xf]  ;;  %v5721_v62 = vor.u32 %v7802_v54, %v5718_v55  ;;  %v5405_v21 = vor.u32 %v7727_v7, %v5404_v6  ;;  %v7775_v41 = vld [vmem:[#allocation8 + $0x364] sm:$0xf0] }
  0x7f   :  { %v5974_v57 = vld [vmem:[#allocation8 + $0x660] sm:$0xf0]  ;;  %v5852_v42 = vld [vmem:[#allocation8 + $0x548] sm:$0xf] }
  0x80   :  { %1865 = vmatpush.bf16.msrb.mxu3 %v6105_v11  ;;  %1840 = vmatpush.bf16.msrb.mxu1 %v5561_v23  ;;  %v7666_v59 = vld [vmem:[#allocation8 + $0x4] sm:$0xf]  ;;  %v5977_v2 = vor.u32 %v7866_v56, %v5974_v57  ;;  %v5916_v11 = vld [vmem:[#allocation8 + $0x5c8] sm:$0xf]  ;;  %v5661_v23 = vor.u32 %v7791_v10, %v5660_v8 }
  0x81   :  { %v5174_v60 = vld [vmem:[#allocation8 + $0x20] sm:$0xf0]  ;;  %v7839_v43 = vld [vmem:[#allocation8 + $0x564] sm:$0xf0] }
  0x82   :  { %1853 = vmatpush.bf16.msrb.mxu2 %v5817_v24  ;;  %1828 = vmatpush.bf16.msrb.mxu0 %v5273_v34  ;;  %v7730_v63 = vld [vmem:[#allocation8 + $0x204] sm:$0xf]  ;;  %v5177_v9 = vor.u32 %v7666_v59, %v5174_v60  ;;  %v5917_v24 = vor.u32 %v7855_v12, %v5916_v11  ;;  %v5373_v34 = vor.u32 %v7719_v26, %v5372_v25  ;;  %v6108_v44 = vld [vmem:[#allocation8 + $0x748] sm:$0xf] }
  0x83   :  { %v5430_v0 = vld [vmem:[#allocation8 + $0x220] sm:$0xf0]  ;;  %v7903_v45 = vld [vmem:[#allocation8 + $0x764] sm:$0xf0] }
  0x84   :  { %1866 = vmatpush.bf16.msrb.mxu3 %v6073_v28  ;;  %1841 = vmatpush.bf16.msrb.mxu1 %v5529_v35  ;;  %v7794_v1 = vld [vmem:[#allocation8 + $0x404] sm:$0xf]  ;;  %v5433_v13 = vor.u32 %v7730_v63, %v5430_v0  ;;  %v6173_v28 = vor.u32 %v7919_v16, %v6172_v15  ;;  %v5629_v35 = vor.u32 %v7783_v29, %v5628_v27  ;;  %v5308_v49 = vld [vmem:[#allocation8 + $0x108] sm:$0xf] }
  0x85   :  { %v5686_v3 = vld [vmem:[#allocation8 + $0x420] sm:$0xf0]  ;;  %v7703_v50 = vld [vmem:[#allocation8 + $0x124] sm:$0xf0] }
  0x86   :  { %1854 = vmatpush.bf16.msrb.mxu2 %v5785_v36  ;;  %1829 = vmatpush.bf16.msrb.mxu0 %v5241_v46  ;;  %v7858_v4 = vld [vmem:[#allocation8 + $0x604] sm:$0xf]  ;;  %v5689_v14 = vor.u32 %v7794_v1, %v5686_v3  ;;  %v5885_v36 = vor.u32 %v7847_v31, %v5884_v30  ;;  %v5341_v46 = vor.u32 %v7711_v38, %v5340_v37  ;;  %v5564_v51 = vld [vmem:[#allocation8 + $0x308] sm:$0xf] }
  0x87   :  { %v5942_v5 = vld [vmem:[#allocation8 + $0x620] sm:$0xf0]  ;;  %v7767_v53 = vld [vmem:[#allocation8 + $0x324] sm:$0xf0] }
  0x88   :  { %1867 = vmatpush.bf16.msrb.mxu3 %v6041_v40  ;;  %1842 = vmatpush.bf16.msrb.mxu1 %v5497_v47  ;;  %v5945_v17 = vor.u32 %v7858_v4, %v5942_v5  ;;  %v6141_v40 = vor.u32 %v7911_v33, %v6140_v32  ;;  %v5597_v47 = vor.u32 %v7775_v41, %v5596_v39  ;;  %v5820_v54 = vld [vmem:[#allocation8 + $0x508] sm:$0xf] }
  0x89   :  { %v7831_v55 = vld [vmem:[#allocation8 + $0x524] sm:$0xf0]  ;;  %v5565_v59 = vor.u32 %v7767_v53, %v5564_v51  ;;  %v7851_v51 = vld [vmem:[#allocation8 + $0x5cc] sm:$0xf] }
  0x8a   :  { %1855 = vmatpush.bf16.msrb.mxu2 %v5753_v48  ;;  %1830 = vmatpush.bf16.msrb.mxu0 %v5209_v58  ;;  %v5853_v48 = vor.u32 %v7839_v43, %v5852_v42  ;;  %v6076_v56 = vld [vmem:[#allocation8 + $0x708] sm:$0xf]  ;;  %v5309_v58 = vor.u32 %v7703_v50, %v5308_v49  ;;  %v5821_v60 = vor.u32 %v7831_v55, %v5820_v54  ;;  %v5662_v50 = vld [vmem:[#allocation8 + $0x3e8] sm:$0xf0] }
  0x8b   :  { %v7895_v57 = vld [vmem:[#allocation8 + $0x724] sm:$0xf0]  ;;  %v7915_v55 = vld [vmem:[#allocation8 + $0x7cc] sm:$0xf] }
  0x8c   :  { %1868 = vmatpush.bf16.msrb.mxu3 %v6009_v52  ;;  %1843 = vmatpush.bf16.msrb.mxu1 %v5465_v61  ;;  %v6109_v52 = vor.u32 %v7903_v45, %v6108_v44  ;;  %v5276_v61 = vld [vmem:[#allocation8 + $0xc8] sm:$0xf]  ;;  %v6077_v0 = vor.u32 %v7895_v57, %v6076_v56  ;;  %v6174_v56 = vld [vmem:[#allocation8 + $0x7e8] sm:$0xf0] }
  0x8d   :  { %v5532_v63 = vld [vmem:[#allocation8 + $0x2c8] sm:$0xf] }
  0x8e   :  { %1856 = vmatpush.bf16.msrb.mxu2 %v5721_v62  ;;  %1831 = vmatpush.bf16.msrb.mxu0 %v5177_v9  ;;  %v7695_v62 = vld [vmem:[#allocation8 + $0xe4] sm:$0xf0] }
  0x8f   :  { %v7759_v1 = vld [vmem:[#allocation8 + $0x2e4] sm:$0xf0]  ;;  %v5277_v6 = vor.u32 %v7695_v62, %v5276_v61  ;;  %v7715_v61 = vld [vmem:[#allocation8 + $0x18c] sm:$0xf] }
  0x90   :  { %1869 = vmatpush.bf16.msrb.mxu3 %v5977_v2  ;;  %1844 = vmatpush.bf16.msrb.mxu1 %v5433_v13  ;;  %v5788_v2 = vld [vmem:[#allocation8 + $0x4c8] sm:$0xf]  ;;  %v5533_v8 = vor.u32 %v7759_v1, %v5532_v63  ;;  %v5374_v62 = vld [vmem:[#allocation8 + $0x1a8] sm:$0xf0] }
  0x91   :  { %1832 = vmatmul.bf16.vlgmr.msrb.gmra.mxu0 %v8763_v19  ;;  %v7823_v3 = vld [vmem:[#allocation8 + $0x4e4] sm:$0xf0]  ;;  %v7779_v63 = vld [vmem:[#allocation8 + $0x38c] sm:$0xf] }
  0x92   :  { %1857 = vmatpush.bf16.msrb.mxu2 %v5689_v14  ;;  %1876 = vmatpush.bf16.msra.mxu0 %v5405_v21  ;;  %v6044_v4 = vld [vmem:[#allocation8 + $0x6c8] sm:$0xf]  ;;  %v5789_v9 = vor.u32 %v7823_v3, %v5788_v2  ;;  %v5630_v1 = vld [vmem:[#allocation8 + $0x3a8] sm:$0xf0] }
  0x93   :  { %1845 = vmatmul.bf16.vlgmr.msrb.gmra.mxu1 %v8767_v22  ;;  %v7887_v5 = vld [vmem:[#allocation8 + $0x6e4] sm:$0xf0]  ;;  %v7843_v2 = vld [vmem:[#allocation8 + $0x58c] sm:$0xf] }
  0x94   :  { %1870 = vmatpush.bf16.msrb.mxu3 %v5945_v17  ;;  %1889 = vmatpush.bf16.msra.mxu1 %v5661_v23  ;;  %v5244_v7 = vld [vmem:[#allocation8 + $0x88] sm:$0xf]  ;;  %v6045_v13 = vor.u32 %v7887_v5, %v6044_v4  ;;  %v5886_v3 = vld [vmem:[#allocation8 + $0x5a8] sm:$0xf0] }
  0x95   :  { %1858 = vmatmul.bf16.vlgmr.msrb.gmra.mxu2 %v8761_v18  ;;  %v7687_v10 = vld [vmem:[#allocation8 + $0xa4] sm:$0xf0]  ;;  %v7907_v4 = vld [vmem:[#allocation8 + $0x78c] sm:$0xf] }
  0x96   :  { %1902 = vmatpush.bf16.msra.mxu2 %v5917_v24  ;;  %1877 = vmatpush.bf16.msra.mxu0 %v5373_v34  ;;  %v5500_v11 = vld [vmem:[#allocation8 + $0x288] sm:$0xf]  ;;  %v5245_v21 = vor.u32 %v7687_v10, %v5244_v7  ;;  %v6142_v5 = vld [vmem:[#allocation8 + $0x7a8] sm:$0xf0]  ;;  %v5633_v7 = vor.u32 %v7779_v63, %v5630_v1 }
  0x97   :  { %1871 = vmatmul.bf16.vlgmr.msrb.gmra.mxu3 %v8765_v20  ;;  %v7751_v12 = vld [vmem:[#allocation8 + $0x2a4] sm:$0xf0]  ;;  %v5342_v10 = vld [vmem:[#allocation8 + $0x168] sm:$0xf0] }
  0x98   :  { %1915 = vmatpush.bf16.msra.mxu3 %v6173_v28  ;;  %1890 = vmatpush.bf16.msra.mxu1 %v5629_v35  ;;  %v5756_v14 = vld [vmem:[#allocation8 + $0x488] sm:$0xf]  ;;  %v5501_v23 = vor.u32 %v7751_v12, %v5500_v11  ;;  %v7771_v11 = vld [vmem:[#allocation8 + $0x34c] sm:$0xf]  ;;  %v6145_v12 = vor.u32 %v7907_v4, %v6142_v5 }
  0x99   :  { %v7815_v15 = vld [vmem:[#allocation8 + $0x4a4] sm:$0xf0]  ;;  %v7739_v63 = vld [vmem:[#allocation8 + $0x24c] sm:$0xf] }
  0x9a   :  { %1903 = vmatpush.bf16.msra.mxu2 %v5885_v36  ;;  %1878 = vmatpush.bf16.msra.mxu0 %v5341_v46  ;;  %v6012_v16 = vld [vmem:[#allocation8 + $0x688] sm:$0xf]  ;;  %v5757_v24 = vor.u32 %v7815_v15, %v5756_v14  ;;  %v7723_v46 = vld [vmem:[#allocation8 + $0x1cc] sm:$0xf] }
  0x9b   :  { %v7879_v17 = vld [vmem:[#allocation8 + $0x6a4] sm:$0xf0]  ;;  %v7835_v14 = vld [vmem:[#allocation8 + $0x54c] sm:$0xf] }
  0x9c   :  { %1916 = vmatpush.bf16.msra.mxu3 %v6141_v40  ;;  %1891 = vmatpush.bf16.msra.mxu1 %v5597_v47  ;;  %v5212_v25 = vld [vmem:[#allocation8 + $0x48] sm:$0xf]  ;;  %v6013_v28 = vor.u32 %v7879_v17, %v6012_v16  ;;  %v5406_v47 = vld [vmem:[#allocation8 + $0x1e8] sm:$0xf0] }
  0x9d   :  { %v7679_v26 = vld [vmem:[#allocation8 + $0x64] sm:$0xf0]  ;;  %v5854_v15 = vld [vmem:[#allocation8 + $0x568] sm:$0xf0] }
  0x9e   :  { %1904 = vmatpush.bf16.msra.mxu2 %v5853_v48  ;;  %1879 = vmatpush.bf16.msra.mxu0 %v5309_v58  ;;  %v5468_v27 = vld [vmem:[#allocation8 + $0x248] sm:$0xf]  ;;  %v5213_v34 = vor.u32 %v7679_v26, %v5212_v25  ;;  %v7787_v48 = vld [vmem:[#allocation8 + $0x3cc] sm:$0xf]  ;;  %v5409_v58 = vor.u32 %v7723_v46, %v5406_v47 }
  0x9f   :  { %v7743_v29 = vld [vmem:[#allocation8 + $0x264] sm:$0xf0]  ;;  %v7899_v16 = vld [vmem:[#allocation8 + $0x74c] sm:$0xf] }
  0xa0   :  { %1917 = vmatpush.bf16.msra.mxu3 %v6109_v52  ;;  %1892 = vmatpush.bf16.msra.mxu1 %v5565_v59  ;;  %v5724_v30 = vld [vmem:[#allocation8 + $0x448] sm:$0xf]  ;;  %v5469_v37 = vor.u32 %v7743_v29, %v5468_v27  ;;  %v5918_v52 = vld [vmem:[#allocation8 + $0x5e8] sm:$0xf0]  ;;  %v5665_v59 = vor.u32 %v7787_v48, %v5662_v50 }
  0xa1   :  { %v7807_v31 = vld [vmem:[#allocation8 + $0x464] sm:$0xf0]  ;;  %v6110_v17 = vld [vmem:[#allocation8 + $0x768] sm:$0xf0] }
  0xa2   :  { %1905 = vmatpush.bf16.msra.mxu2 %v5821_v60  ;;  %1880 = vmatpush.bf16.msra.mxu0 %v5277_v6  ;;  %v5980_v32 = vld [vmem:[#allocation8 + $0x648] sm:$0xf]  ;;  %v5725_v38 = vor.u32 %v7807_v31, %v5724_v30  ;;  %v5921_v60 = vor.u32 %v7851_v51, %v5918_v52  ;;  %v5377_v6 = vor.u32 %v7715_v61, %v5374_v62  ;;  %v7699_v25 = vld [vmem:[#allocation8 + $0x10c] sm:$0xf] }
  0xa3   :  { %v7871_v33 = vld [vmem:[#allocation8 + $0x664] sm:$0xf0]  ;;  %v5310_v26 = vld [vmem:[#allocation8 + $0x128] sm:$0xf0] }
  0xa4   :  { %1918 = vmatpush.bf16.msra.mxu3 %v6077_v0  ;;  %1893 = vmatpush.bf16.msra.mxu1 %v5533_v8  ;;  %v5180_v35 = vld [vmem:[#allocation8 + $0x8] sm:$0xf]  ;;  %v5981_v42 = vor.u32 %v7871_v33, %v5980_v32  ;;  %v6177_v0 = vor.u32 %v7915_v55, %v6174_v56  ;;  %v5889_v8 = vor.u32 %v7843_v2, %v5886_v3  ;;  %v7763_v27 = vld [vmem:[#allocation8 + $0x30c] sm:$0xf] }
  0xa5   :  { %v7671_v36 = vld [vmem:[#allocation8 + $0x24] sm:$0xf0]  ;;  %v5566_v29 = vld [vmem:[#allocation8 + $0x328] sm:$0xf0] }
  0xa6   :  { %1906 = vmatpush.bf16.msra.mxu2 %v5789_v9  ;;  %1881 = vmatpush.bf16.msra.mxu0 %v5245_v21  ;;  %v5436_v39 = vld [vmem:[#allocation8 + $0x208] sm:$0xf]  ;;  %v5181_v49 = vor.u32 %v7671_v36, %v5180_v35  ;;  %v7707_v9 = vld [vmem:[#allocation8 + $0x14c] sm:$0xf]  ;;  %v5569_v35 = vor.u32 %v7763_v27, %v5566_v29  ;;  %v5924_v27 = vld [vmem:[#allocation8 + $0x5d0] sm:$0xf] }
  0xa7   :  { %v7735_v40 = vld [vmem:[#allocation8 + $0x224] sm:$0xf0]  ;;  %v5345_v21 = vor.u32 %v7707_v9, %v5342_v10  ;;  %v7827_v30 = vld [vmem:[#allocation8 + $0x50c] sm:$0xf] }
  0xa8   :  { %1919 = vmatpush.bf16.msra.mxu3 %v6045_v13  ;;  %1894 = vmatpush.bf16.msra.mxu1 %v5501_v23  ;;  %v5692_v41 = vld [vmem:[#allocation8 + $0x408] sm:$0xf]  ;;  %v5437_v53 = vor.u32 %v7735_v40, %v5436_v39  ;;  %v5598_v13 = vld [vmem:[#allocation8 + $0x368] sm:$0xf0] }
  0xa9   :  { %v7799_v43 = vld [vmem:[#allocation8 + $0x424] sm:$0xf0]  ;;  %v5601_v23 = vor.u32 %v7771_v11, %v5598_v13  ;;  %v5822_v31 = vld [vmem:[#allocation8 + $0x528] sm:$0xf0] }
  0xaa   :  { %1907 = vmatpush.bf16.msra.mxu2 %v5757_v24  ;;  %v5948_v44 = vld [vmem:[#allocation8 + $0x608] sm:$0xf]  ;;  %1882 = vmatpush.bf16.msra.mxu0 %v5213_v34  ;;  %v5693_v54 = vor.u32 %v7799_v43, %v5692_v41  ;;  %v5857_v24 = vor.u32 %v7835_v14, %v5854_v15  ;;  %v7891_v32 = vld [vmem:[#allocation8 + $0x70c] sm:$0xf]  ;;  %v5313_v34 = vor.u32 %v7699_v25, %v5310_v26  ;;  %v7792_v26 = vld [vmem:[#allocation8 + $0x3ec] sm:$0xf0] }
  0xab   :  { %v7863_v45 = vld [vmem:[#allocation8 + $0x624] sm:$0xf0]  ;;  %v6078_v33 = vld [vmem:[#allocation8 + $0x728] sm:$0xf0]  ;;  %v5825_v36 = vor.u32 %v7827_v30, %v5822_v31  ;;  %v6180_v31 = vld [vmem:[#allocation8 + $0x7d0] sm:$0xf] }
  0xac   :  { %1920 = vmatpush.bf16.msra.mxu3 %v6013_v28  ;;  %1895 = vmatpush.bf16.msra.mxu1 %v5469_v37  ;;  %v5949_v57 = vor.u32 %v7863_v45, %v5948_v44  ;;  %v6113_v28 = vor.u32 %v7899_v16, %v6110_v17  ;;  %v7691_v37 = vld [vmem:[#allocation8 + $0xcc] sm:$0xf]  ;;  %v6081_v40 = vor.u32 %v7891_v32, %v6078_v33  ;;  %v7920_v32 = vld [vmem:[#allocation8 + $0x7ec] sm:$0xf0] }
  0xad   :  { %v7755_v39 = vld [vmem:[#allocation8 + $0x2cc] sm:$0xf] }
  0xae   :  { %1908 = vmatpush.bf16.msra.mxu2 %v5725_v38  ;;  %1883 = vmatpush.bf16.msra.mxu0 %v5181_v49  ;;  %v5278_v38 = vld [vmem:[#allocation8 + $0xe8] sm:$0xf0] }
  0xaf   :  { %v5534_v41 = vld [vmem:[#allocation8 + $0x2e8] sm:$0xf0]  ;;  %v5281_v46 = vor.u32 %v7691_v37, %v5278_v38  ;;  %v5380_v37 = vld [vmem:[#allocation8 + $0x190] sm:$0xf] }
  0xb0   :  { %1921 = vmatpush.bf16.msra.mxu3 %v5981_v42  ;;  %1896 = vmatpush.bf16.msra.mxu1 %v5437_v53  ;;  %v7819_v42 = vld [vmem:[#allocation8 + $0x4cc] sm:$0xf]  ;;  %v5537_v47 = vor.u32 %v7755_v39, %v5534_v41  ;;  %v7720_v38 = vld [vmem:[#allocation8 + $0x1ac] sm:$0xf0] }
  0xb1   :  { %1884 = vmatmul.bf16.vlgmr.msra.gmra.mxu0 %v8763_v19  ;;  %v5790_v43 = vld [vmem:[#allocation8 + $0x4e8] sm:$0xf0]  ;;  %v5636_v39 = vld [vmem:[#allocation8 + $0x390] sm:$0xf] }
  0xb2   :  { %1909 = vmatpush.bf16.msra.mxu2 %v5693_v54  ;;  %1928 = vmatpush.bf16.msrb.mxu0 %v5409_v58  ;;  %v7883_v44 = vld [vmem:[#allocation8 + $0x6cc] sm:$0xf]  ;;  %v5793_v48 = vor.u32 %v7819_v42, %v5790_v43  ;;  %v7784_v41 = vld [vmem:[#allocation8 + $0x3ac] sm:$0xf0] }
  0xb3   :  { %1897 = vmatmul.bf16.vlgmr.msra.gmra.mxu1 %v8767_v22  ;;  %v6046_v45 = vld [vmem:[#allocation8 + $0x6e8] sm:$0xf0]  ;;  %v5892_v42 = vld [vmem:[#allocation8 + $0x590] sm:$0xf] }
  0xb4   :  { %1922 = vmatpush.bf16.msra.mxu3 %v5949_v57  ;;  %1941 = vmatpush.bf16.msrb.mxu1 %v5665_v59  ;;  %v7683_v49 = vld [vmem:[#allocation8 + $0x8c] sm:$0xf]  ;;  %v6049_v52 = vor.u32 %v7883_v44, %v6046_v45  ;;  %v7848_v43 = vld [vmem:[#allocation8 + $0x5ac] sm:$0xf0] }
  0xb5   :  { %1910 = vmatmul.bf16.vlgmr.msra.gmra.mxu2 %v8761_v18  ;;  %v5246_v50 = vld [vmem:[#allocation8 + $0xa8] sm:$0xf0]  ;;  %v6148_v44 = vld [vmem:[#allocation8 + $0x790] sm:$0xf] }
  0xb6   :  { %1954 = vmatpush.bf16.msrb.mxu2 %v5921_v60  ;;  %1929 = vmatpush.bf16.msrb.mxu0 %v5377_v6  ;;  %v7747_v51 = vld [vmem:[#allocation8 + $0x28c] sm:$0xf]  ;;  %v5249_v58 = vor.u32 %v7683_v49, %v5246_v50  ;;  %v7912_v45 = vld [vmem:[#allocation8 + $0x7ac] sm:$0xf0] }
  0xb7   :  { %1923 = vmatmul.bf16.vlgmr.msra.gmra.mxu3 %v8765_v20  ;;  %v5502_v53 = vld [vmem:[#allocation8 + $0x2a8] sm:$0xf0]  ;;  %v5348_v49 = vld [vmem:[#allocation8 + $0x150] sm:$0xf] }
  0xb8   :  { %1967 = vmatpush.bf16.msrb.mxu3 %v6177_v0  ;;  %1942 = vmatpush.bf16.msrb.mxu1 %v5633_v7  ;;  %v7811_v54 = vld [vmem:[#allocation8 + $0x48c] sm:$0xf]  ;;  %v5505_v59 = vor.u32 %v7747_v51, %v5502_v53  ;;  %v7712_v50 = vld [vmem:[#allocation8 + $0x16c] sm:$0xf0] }
  0xb9   :  { %v5758_v55 = vld [vmem:[#allocation8 + $0x4a8] sm:$0xf0]  ;;  %v5604_v51 = vld [vmem:[#allocation8 + $0x350] sm:$0xf] }
  0xba   :  { %1955 = vmatpush.bf16.msrb.mxu2 %v5889_v8  ;;  %1930 = vmatpush.bf16.msrb.mxu0 %v5345_v21  ;;  %v7875_v56 = vld [vmem:[#allocation8 + $0x68c] sm:$0xf]  ;;  %v5761_v60 = vor.u32 %v7811_v54, %v5758_v55  ;;  %v5412_v21 = vld [vmem:[#allocation8 + $0x1d0] sm:$0xf] }
  0xbb   :  { %v6014_v57 = vld [vmem:[#allocation8 + $0x6a8] sm:$0xf0]  ;;  %v7776_v53 = vld [vmem:[#allocation8 + $0x36c] sm:$0xf0] }
  0xbc   :  { %1968 = vmatpush.bf16.msrb.mxu3 %v6145_v12  ;;  %1943 = vmatpush.bf16.msrb.mxu1 %v5601_v23  ;;  %v7675_v61 = vld [vmem:[#allocation8 + $0x4c] sm:$0xf]  ;;  %v6017_v0 = vor.u32 %v7875_v56, %v6014_v57  ;;  %v7728_v23 = vld [vmem:[#allocation8 + $0x1ec] sm:$0xf0] }
  0xbd   :  { %v5214_v62 = vld [vmem:[#allocation8 + $0x68] sm:$0xf0]  ;;  %v5860_v54 = vld [vmem:[#allocation8 + $0x550] sm:$0xf] }
  0xbe   :  { %1956 = vmatpush.bf16.msrb.mxu2 %v5857_v24  ;;  %1931 = vmatpush.bf16.msrb.mxu0 %v5313_v34  ;;  %v5470_v1 = vld [vmem:[#allocation8 + $0x268] sm:$0xf0]  ;;  %v5217_v6 = vor.u32 %v7675_v61, %v5214_v62  ;;  %v5668_v24 = vld [vmem:[#allocation8 + $0x3d0] sm:$0xf]  ;;  %v5413_v34 = vor.u32 %v7728_v23, %v5412_v21 }
  0xbf   :  { %v7803_v2 = vld [vmem:[#allocation8 + $0x44c] sm:$0xf]  ;;  %v5473_v9 = vor.u32 %v7739_v63, %v5470_v1  ;;  %v7840_v55 = vld [vmem:[#allocation8 + $0x56c] sm:$0xf0] }
  0xc0   :  { %1969 = vmatpush.bf16.msrb.mxu3 %v6113_v28  ;;  %1944 = vmatpush.bf16.msrb.mxu1 %v5569_v35  ;;  %v5726_v3 = vld [vmem:[#allocation8 + $0x468] sm:$0xf0]  ;;  %v7856_v28 = vld [vmem:[#allocation8 + $0x5ec] sm:$0xf0]  ;;  %v5669_v35 = vor.u32 %v7792_v26, %v5668_v24 }
  0xc1   :  { %v7867_v4 = vld [vmem:[#allocation8 + $0x64c] sm:$0xf]  ;;  %v5729_v10 = vor.u32 %v7803_v2, %v5726_v3  ;;  %v6116_v56 = vld [vmem:[#allocation8 + $0x750] sm:$0xf] }
  0xc2   :  { %1957 = vmatpush.bf16.msrb.mxu2 %v5825_v36  ;;  %1932 = vmatpush.bf16.msrb.mxu0 %v5281_v46  ;;  %v5982_v5 = vld [vmem:[#allocation8 + $0x668] sm:$0xf0]  ;;  %v5925_v36 = vor.u32 %v7856_v28, %v5924_v27  ;;  %v5381_v46 = vor.u32 %v7720_v38, %v5380_v37  ;;  %v7904_v57 = vld [vmem:[#allocation8 + $0x76c] sm:$0xf0] }
  0xc3   :  { %v7667_v7 = vld [vmem:[#allocation8 + $0xc] sm:$0xf]  ;;  %v5985_v14 = vor.u32 %v7867_v4, %v5982_v5  ;;  %v5316_v61 = vld [vmem:[#allocation8 + $0x110] sm:$0xf] }
  0xc4   :  { %1970 = vmatpush.bf16.msrb.mxu3 %v6081_v40  ;;  %1945 = vmatpush.bf16.msrb.mxu1 %v5537_v47  ;;  %v5182_v8 = vld [vmem:[#allocation8 + $0x28] sm:$0xf0]  ;;  %v6181_v40 = vor.u32 %v7920_v32, %v6180_v31  ;;  %v5637_v47 = vor.u32 %v7784_v41, %v5636_v39  ;;  %v7704_v62 = vld [vmem:[#allocation8 + $0x12c] sm:$0xf0] }
  0xc5   :  { %v7731_v11 = vld [vmem:[#allocation8 + $0x20c] sm:$0xf]  ;;  %v5185_v25 = vor.u32 %v7667_v7, %v5182_v8  ;;  %v5572_v63 = vld [vmem:[#allocation8 + $0x310] sm:$0xf] }
  0xc6   :  { %1958 = vmatpush.bf16.msrb.mxu2 %v5793_v48  ;;  %1933 = vmatpush.bf16.msrb.mxu0 %v5249_v58  ;;  %v5438_v12 = vld [vmem:[#allocation8 + $0x228] sm:$0xf0]  ;;  %v5893_v48 = vor.u32 %v7848_v43, %v5892_v42  ;;  %v5349_v58 = vor.u32 %v7712_v50, %v5348_v49  ;;  %v7768_v1 = vld [vmem:[#allocation8 + $0x32c] sm:$0xf0] }
  0xc7   :  { %v7795_v13 = vld [vmem:[#allocation8 + $0x40c] sm:$0xf]  ;;  %v5441_v29 = vor.u32 %v7731_v11, %v5438_v12  ;;  %v5828_v2 = vld [vmem:[#allocation8 + $0x510] sm:$0xf]  ;;  %v5573_v7 = vor.u32 %v7768_v1, %v5572_v63  ;;  %v7852_v63 = vld [vmem:[#allocation8 + $0x5d4] sm:$0xf] }
  0xc8   :  { %1971 = vmatpush.bf16.msrb.mxu3 %v6049_v52  ;;  %1946 = vmatpush.bf16.msrb.mxu1 %v5505_v59  ;;  %v5694_v15 = vld [vmem:[#allocation8 + $0x428] sm:$0xf0]  ;;  %v6149_v52 = vor.u32 %v7912_v45, %v6148_v44  ;;  %v5605_v59 = vor.u32 %v7776_v53, %v5604_v51  ;;  %v7832_v3 = vld [vmem:[#allocation8 + $0x52c] sm:$0xf0] }
  0xc9   :  { %v7859_v16 = vld [vmem:[#allocation8 + $0x60c] sm:$0xf]  ;;  %v5697_v30 = vor.u32 %v7795_v13, %v5694_v15  ;;  %v6084_v4 = vld [vmem:[#allocation8 + $0x710] sm:$0xf]  ;;  %v5829_v8 = vor.u32 %v7832_v3, %v5828_v2  ;;  %v7916_v3 = vld [vmem:[#allocation8 + $0x7d4] sm:$0xf] }
  0xca   :  { %1959 = vmatpush.bf16.msrb.mxu2 %v5761_v60  ;;  %v5950_v17 = vld [vmem:[#allocation8 + $0x628] sm:$0xf0]  ;;  %1934 = vmatpush.bf16.msrb.mxu0 %v5217_v6  ;;  %v5861_v60 = vor.u32 %v7840_v55, %v5860_v54  ;;  %v7896_v5 = vld [vmem:[#allocation8 + $0x72c] sm:$0xf0]  ;;  %v5317_v6 = vor.u32 %v7704_v62, %v5316_v61  ;;  %v5670_v62 = vld [vmem:[#allocation8 + $0x3f0] sm:$0xf0] }
  0xcb   :  { %v5953_v33 = vor.u32 %v7859_v16, %v5950_v17  ;;  %v5540_v11 = vld [vmem:[#allocation8 + $0x2d0] sm:$0xf]  ;;  %v6085_v12 = vor.u32 %v7896_v5, %v6084_v4  ;;  %v6182_v4 = vld [vmem:[#allocation8 + $0x7f0] sm:$0xf0] }
  0xcc   :  { %1972 = vmatpush.bf16.msrb.mxu3 %v6017_v0  ;;  %1947 = vmatpush.bf16.msrb.mxu1 %v5473_v9  ;;  %v6117_v0 = vor.u32 %v7904_v57, %v6116_v56  ;;  %v5284_v9 = vld [vmem:[#allocation8 + $0xd0] sm:$0xf] }
  0xcd   :  { %v7760_v13 = vld [vmem:[#allocation8 + $0x2ec] sm:$0xf0] }
  0xce   :  { %1960 = vmatpush.bf16.msrb.mxu2 %v5729_v10  ;;  %1935 = vmatpush.bf16.msrb.mxu0 %v5185_v25  ;;  %v7696_v10 = vld [vmem:[#allocation8 + $0xec] sm:$0xf0]  ;;  %v5541_v23 = vor.u32 %v7760_v13, %v5540_v11  ;;  %v7780_v11 = vld [vmem:[#allocation8 + $0x394] sm:$0xf] }
  0xcf   :  { %v7824_v15 = vld [vmem:[#allocation8 + $0x4ec] sm:$0xf0]  ;;  %v5285_v21 = vor.u32 %v7696_v10, %v5284_v9  ;;  %v7716_v9 = vld [vmem:[#allocation8 + $0x194] sm:$0xf] }
  0xd0   :  { %1973 = vmatpush.bf16.msrb.mxu3 %v5985_v14  ;;  %1948 = vmatpush.bf16.msrb.mxu1 %v5441_v29  ;;  %v5796_v14 = vld [vmem:[#allocation8 + $0x4d0] sm:$0xf]  ;;  %v5382_v10 = vld [vmem:[#allocation8 + $0x1b0] sm:$0xf0] }
  0xd1   :  { %1936 = vmatmul.bf16.vlgmr.msrb.gmra.mxu0 %v8763_v19  ;;  %v6052_v16 = vld [vmem:[#allocation8 + $0x6d0] sm:$0xf]  ;;  %v5797_v24 = vor.u32 %v7824_v15, %v5796_v14  ;;  %v5638_v13 = vld [vmem:[#allocation8 + $0x3b0] sm:$0xf0] }
  0xd2   :  { %1961 = vmatpush.bf16.msrb.mxu2 %v5697_v30  ;;  %1980 = vmatpush.bf16.msra.mxu0 %v5413_v34  ;;  %v7888_v17 = vld [vmem:[#allocation8 + $0x6ec] sm:$0xf0]  ;;  %v7844_v14 = vld [vmem:[#allocation8 + $0x594] sm:$0xf] }
  0xd3   :  { %1949 = vmatmul.bf16.vlgmr.msrb.gmra.mxu1 %v8767_v22  ;;  %v5252_v25 = vld [vmem:[#allocation8 + $0x90] sm:$0xf]  ;;  %v6053_v28 = vor.u32 %v7888_v17, %v6052_v16  ;;  %v5894_v15 = vld [vmem:[#allocation8 + $0x5b0] sm:$0xf0] }
  0xd4   :  { %1974 = vmatpush.bf16.msrb.mxu3 %v5953_v33  ;;  %1993 = vmatpush.bf16.msra.mxu1 %v5669_v35  ;;  %v7688_v26 = vld [vmem:[#allocation8 + $0xac] sm:$0xf0]  ;;  %v7908_v16 = vld [vmem:[#allocation8 + $0x794] sm:$0xf] }
  0xd5   :  { %1962 = vmatmul.bf16.vlgmr.msrb.gmra.mxu2 %v8761_v18  ;;  %v5508_v27 = vld [vmem:[#allocation8 + $0x290] sm:$0xf]  ;;  %v5253_v34 = vor.u32 %v7688_v26, %v5252_v25  ;;  %v6150_v17 = vld [vmem:[#allocation8 + $0x7b0] sm:$0xf0] }
  0xd6   :  { %2006 = vmatpush.bf16.msra.mxu2 %v5925_v36  ;;  %1981 = vmatpush.bf16.msra.mxu0 %v5381_v46  ;;  %v7752_v29 = vld [vmem:[#allocation8 + $0x2ac] sm:$0xf0]  ;;  %v7708_v25 = vld [vmem:[#allocation8 + $0x154] sm:$0xf] }
  0xd7   :  { %1975 = vmatmul.bf16.vlgmr.msrb.gmra.mxu3 %v8765_v20  ;;  %v5764_v30 = vld [vmem:[#allocation8 + $0x490] sm:$0xf]  ;;  %v5509_v35 = vor.u32 %v7752_v29, %v5508_v27  ;;  %v5350_v26 = vld [vmem:[#allocation8 + $0x170] sm:$0xf0] }
  0xd8   :  { %2019 = vmatpush.bf16.msra.mxu3 %v6181_v40  ;;  %1994 = vmatpush.bf16.msra.mxu1 %v5637_v47  ;;  %v7816_v31 = vld [vmem:[#allocation8 + $0x4ac] sm:$0xf0]  ;;  %v7772_v27 = vld [vmem:[#allocation8 + $0x354] sm:$0xf] }
  0xd9   :  { %v6020_v32 = vld [vmem:[#allocation8 + $0x690] sm:$0xf]  ;;  %v5765_v36 = vor.u32 %v7816_v31, %v5764_v30  ;;  %v5606_v29 = vld [vmem:[#allocation8 + $0x370] sm:$0xf0] }
  0xda   :  { %2007 = vmatpush.bf16.msra.mxu2 %v5893_v48  ;;  %1982 = vmatpush.bf16.msra.mxu0 %v5349_v58  ;;  %v7880_v33 = vld [vmem:[#allocation8 + $0x6ac] sm:$0xf0]  ;;  %v7724_v58 = vld [vmem:[#allocation8 + $0x1d4] sm:$0xf] }
  0xdb   :  { %v5220_v37 = vld [vmem:[#allocation8 + $0x50] sm:$0xf]  ;;  %v6021_v40 = vor.u32 %v7880_v33, %v6020_v32  ;;  %v7836_v30 = vld [vmem:[#allocation8 + $0x554] sm:$0xf] }
  0xdc   :  { %2020 = vmatpush.bf16.msra.mxu3 %v6149_v52  ;;  %1995 = vmatpush.bf16.msra.mxu1 %v5605_v59  ;;  %v7680_v38 = vld [vmem:[#allocation8 + $0x6c] sm:$0xf0]  ;;  %v5414_v59 = vld [vmem:[#allocation8 + $0x1f0] sm:$0xf0] }
  0xdd   :  { %v5476_v39 = vld [vmem:[#allocation8 + $0x250] sm:$0xf]  ;;  %v5221_v46 = vor.u32 %v7680_v38, %v5220_v37  ;;  %v5862_v31 = vld [vmem:[#allocation8 + $0x570] sm:$0xf0] }
  0xde   :  { %2008 = vmatpush.bf16.msra.mxu2 %v5861_v60  ;;  %1983 = vmatpush.bf16.msra.mxu0 %v5317_v6  ;;  %v7744_v41 = vld [vmem:[#allocation8 + $0x26c] sm:$0xf0]  ;;  %v7788_v60 = vld [vmem:[#allocation8 + $0x3d4] sm:$0xf]  ;;  %v5417_v6 = vor.u32 %v7724_v58, %v5414_v59 }
  0xdf   :  { %v5732_v42 = vld [vmem:[#allocation8 + $0x450] sm:$0xf]  ;;  %v5477_v49 = vor.u32 %v7744_v41, %v5476_v39  ;;  %v7900_v32 = vld [vmem:[#allocation8 + $0x754] sm:$0xf] }
  0xe0   :  { %2021 = vmatpush.bf16.msra.mxu3 %v6117_v0  ;;  %1996 = vmatpush.bf16.msra.mxu1 %v5573_v7  ;;  %v7808_v43 = vld [vmem:[#allocation8 + $0x46c] sm:$0xf0]  ;;  %v5926_v0 = vld [vmem:[#allocation8 + $0x5f0] sm:$0xf0]  ;;  %v5673_v7 = vor.u32 %v7788_v60, %v5670_v62 }
  0xe1   :  { %v5988_v44 = vld [vmem:[#allocation8 + $0x650] sm:$0xf]  ;;  %v5733_v50 = vor.u32 %v7808_v43, %v5732_v42  ;;  %v6118_v33 = vld [vmem:[#allocation8 + $0x770] sm:$0xf0] }
  0xe2   :  { %2009 = vmatpush.bf16.msra.mxu2 %v5829_v8  ;;  %1984 = vmatpush.bf16.msra.mxu0 %v5285_v21  ;;  %v7872_v45 = vld [vmem:[#allocation8 + $0x66c] sm:$0xf0]  ;;  %v5929_v8 = vor.u32 %v7852_v63, %v5926_v0  ;;  %v5385_v21 = vor.u32 %v7716_v9, %v5382_v10  ;;  %v7700_v37 = vld [vmem:[#allocation8 + $0x114] sm:$0xf] }
  0xe3   :  { %v5188_v47 = vld [vmem:[#allocation8 + $0x10] sm:$0xf]  ;;  %v5989_v54 = vor.u32 %v7872_v45, %v5988_v44  ;;  %v5318_v38 = vld [vmem:[#allocation8 + $0x130] sm:$0xf0] }
  0xe4   :  { %2022 = vmatpush.bf16.msra.mxu3 %v6085_v12  ;;  %1997 = vmatpush.bf16.msra.mxu1 %v5541_v23  ;;  %v7672_v48 = vld [vmem:[#allocation8 + $0x2c] sm:$0xf0]  ;;  %v6185_v12 = vor.u32 %v7916_v3, %v6182_v4  ;;  %v5641_v23 = vor.u32 %v7780_v11, %v5638_v13  ;;  %v7764_v39 = vld [vmem:[#allocation8 + $0x314] sm:$0xf] }
  0xe5   :  { %v5444_v51 = vld [vmem:[#allocation8 + $0x210] sm:$0xf]  ;;  %v5189_v61 = vor.u32 %v7672_v48, %v5188_v47  ;;  %v5574_v41 = vld [vmem:[#allocation8 + $0x330] sm:$0xf0] }
  0xe6   :  { %2010 = vmatpush.bf16.msra.mxu2 %v5797_v24  ;;  %1985 = vmatpush.bf16.msra.mxu0 %v5253_v34  ;;  %v7736_v52 = vld [vmem:[#allocation8 + $0x22c] sm:$0xf0]  ;;  %v5897_v24 = vor.u32 %v7844_v14, %v5894_v15  ;;  %v5353_v34 = vor.u32 %v7708_v25, %v5350_v26  ;;  %v7828_v42 = vld [vmem:[#allocation8 + $0x514] sm:$0xf]  ;;  %v5577_v48 = vor.u32 %v7764_v39, %v5574_v41 }
  0xe7   :  { %v5700_v53 = vld [vmem:[#allocation8 + $0x410] sm:$0xf]  ;;  %v5445_v1 = vor.u32 %v7736_v52, %v5444_v51  ;;  %v5830_v43 = vld [vmem:[#allocation8 + $0x530] sm:$0xf0] }
  0xe8   :  { %2023 = vmatpush.bf16.msra.mxu3 %v6053_v28  ;;  %1998 = vmatpush.bf16.msra.mxu1 %v5509_v35  ;;  %v7800_v55 = vld [vmem:[#allocation8 + $0x42c] sm:$0xf0]  ;;  %v6153_v28 = vor.u32 %v7908_v16, %v6150_v17  ;;  %v5609_v35 = vor.u32 %v7772_v27, %v5606_v29  ;;  %v7892_v44 = vld [vmem:[#allocation8 + $0x714] sm:$0xf] }
  0xe9   :  { %v5956_v56 = vld [vmem:[#allocation8 + $0x610] sm:$0xf]  ;;  %v5701_v2 = vor.u32 %v7800_v55, %v5700_v53  ;;  %v6086_v45 = vld [vmem:[#allocation8 + $0x730] sm:$0xf0] }
  0xea   :  { %2011 = vmatpush.bf16.msra.mxu2 %v5765_v36  ;;  %v7864_v57 = vld [vmem:[#allocation8 + $0x62c] sm:$0xf0]  ;;  %1986 = vmatpush.bf16.msra.mxu0 %v5221_v46  ;;  %v5865_v36 = vor.u32 %v7836_v30, %v5862_v31  ;;  %v5321_v46 = vor.u32 %v7700_v37, %v5318_v38  ;;  %v7692_v47 = vld [vmem:[#allocation8 + $0xd4] sm:$0xf]  ;;  %v6089_v53 = vor.u32 %v7892_v44, %v6086_v45  ;;  %v7729_v44 = vld [vmem:[#allocation8 + $0x1f4] sm:$0xf0] }
  0xeb   :  { %v5957_v5 = vor.u32 %v7864_v57, %v5956_v56  ;;  %v7756_v51 = vld [vmem:[#allocation8 + $0x2d4] sm:$0xf]  ;;  %v8789_v56 = vld [vmem:[#allocation10] sm:$0xff]  ;;  %v5676_v45 = vld [vmem:[#allocation8 + $0x3d8] sm:$0xf] }
  0xec   :  { %2024 = vmatpush.bf16.msra.mxu3 %v6021_v40  ;;  %1999 = vmatpush.bf16.msra.mxu1 %v5477_v49  ;;  %v6121_v40 = vor.u32 %v7900_v32, %v6118_v33  ;;  %v5833_v49 = vor.u32 %v7828_v42, %v5830_v43  ;;  %v5542_v52 = vld [vmem:[#allocation8 + $0x2f0] sm:$0xf0]  ;;  %v5420_v43 = vld [vmem:[#allocation8 + $0x1d8] sm:$0xf] }
  0xed   :  { %v5798_v55 = vld [vmem:[#allocation8 + $0x4f0] sm:$0xf0] }
  0xee   :  { %2012 = vmatpush.bf16.msra.mxu2 %v5733_v50  ;;  %1987 = vmatpush.bf16.msra.mxu0 %v5189_v61  ;;  %v5286_v50 = vld [vmem:[#allocation8 + $0xf0] sm:$0xf0]  ;;  %v5545_v61 = vor.u32 %v7756_v51, %v5542_v52 }
  0xef   :  { %v7884_v57 = vld [vmem:[#allocation8 + $0x6d4] sm:$0xf]  ;;  %v5289_v59 = vor.u32 %v7692_v47, %v5286_v50  ;;  %v7793_v47 = vld [vmem:[#allocation8 + $0x3f4] sm:$0xf0] }
  0xf0   :  { %2025 = vmatpush.bf16.msra.mxu3 %v5989_v54  ;;  %2000 = vmatpush.bf16.msra.mxu1 %v5445_v1  ;;  %v7820_v54 = vld [vmem:[#allocation8 + $0x4d4] sm:$0xf]  ;;  %v462_v1 = vperm.slane %v8789_v56, 0 }
  0xf1   :  { %1988 = vmatmul.bf16.vlgmr.msra.gmra.mxu0 %v8763_v19  ;;  %v6054_v58 = vld [vmem:[#allocation8 + $0x6f0] sm:$0xf0]  ;;  %v5801_v62 = vor.u32 %v7820_v54, %v5798_v55  ;;  %v6188_v54 = vld [vmem:[#allocation8 + $0x7d8] sm:$0xf] }
  0xf2   :  { %2013 = vmatpush.bf16.msra.mxu2 %v5701_v2  ;;  %2032 = vmatpush.bf16.msrb.mxu0 %v5417_v6  ;;  %v7684_v60 = vld [vmem:[#allocation8 + $0x94] sm:$0xf]  ;;  %v6057_v2 = vor.u32 %v7884_v57, %v6054_v58  ;;  %v7921_v55 = vld [vmem:[#allocation8 + $0x7f4] sm:$0xf0] }
  0xf3   :  { %2001 = vmatmul.bf16.vlgmr.msra.gmra.mxu1 %v8767_v22  ;;  %v5254_v63 = vld [vmem:[#allocation8 + $0xb0] sm:$0xf0] }
  0xf4   :  { %2026 = vmatpush.bf16.msra.mxu3 %v5957_v5  ;;  %2045 = vmatpush.bf16.msrb.mxu1 %v5673_v7  ;;  %v7748_v0 = vld [vmem:[#allocation8 + $0x294] sm:$0xf]  ;;  %v1781_v9 = vpop.f32.mrf.mxu0 }
  0xf5   :  { %2014 = vmatmul.bf16.vlgmr.msra.gmra.mxu2 %v8761_v18  ;;  %v5510_v3 = vld [vmem:[#allocation8 + $0x2b0] sm:$0xf0]  ;;  %v1782_v15 = vadd.f32 %v1781_v9, %v462_v1  ;;  %v6189_v1 = vor.u32 %v7921_v55, %v6188_v54 }
  0xf6   :  { %2058 = vmatpush.bf16.msrb.mxu2 %v5929_v8  ;;  %2033 = vmatpush.bf16.msrb.mxu0 %v5385_v21  ;;  %v7812_v4 = vld [vmem:[#allocation8 + $0x494] sm:$0xf]  ;;  %v5257_v8 = vor.u32 %v7684_v60, %v5254_v63  ;;  %v5513_v10 = vor.u32 %v7748_v0, %v5510_v3  ;;  %v1794_v16 = vpop.f32.mrf.mxu1  ;;  %v5677_v60 = vor.u32 %v7793_v47, %v5676_v45  ;;  %v7721_v63 = vld [vmem:[#allocation8 + $0x1b4] sm:$0xf0] }
  0xf7   :  { %2027 = vmatmul.bf16.vlgmr.msra.gmra.mxu3 %v8765_v20  ;;  %v5766_v5 = vld [vmem:[#allocation8 + $0x4b0] sm:$0xf0]  ;;  %v1795_v27 = vadd.f32 %v1794_v16, %v1782_v15  ;;  %v5644_v0 = vld [vmem:[#allocation8 + $0x398] sm:$0xf] }
  0xf8   :  { %2071 = vmatpush.bf16.msrb.mxu3 %v6185_v12  ;;  %2046 = vmatpush.bf16.msrb.mxu1 %v5641_v23  ;;  %v7876_v6 = vld [vmem:[#allocation8 + $0x694] sm:$0xf]  ;;  %v5769_v11 = vor.u32 %v7812_v4, %v5766_v5  ;;  %v5900_v3 = vld [vmem:[#allocation8 + $0x598] sm:$0xf] }
  0xf9   :  { %v6022_v7 = vld [vmem:[#allocation8 + $0x6b0] sm:$0xf0]  ;;  %v7849_v4 = vld [vmem:[#allocation8 + $0x5b4] sm:$0xf0] }
  0xfa   :  { %2059 = vmatpush.bf16.msrb.mxu2 %v5897_v24  ;;  %2034 = vmatpush.bf16.msrb.mxu0 %v5353_v34  ;;  %v7676_v12 = vld [vmem:[#allocation8 + $0x54] sm:$0xf]  ;;  %v6025_v17 = vor.u32 %v7876_v6, %v6022_v7  ;;  %v1820_v42 = vpop.f32.mrf.mxu3  ;;  %v6156_v5 = vld [vmem:[#allocation8 + $0x798] sm:$0xf] }
  0xfb   :  { %v5222_v13 = vld [vmem:[#allocation8 + $0x70] sm:$0xf0]  ;;  %v7913_v6 = vld [vmem:[#allocation8 + $0x7b4] sm:$0xf0] }
  0xfc   :  { %2072 = vmatpush.bf16.msrb.mxu3 %v6153_v28  ;;  %2047 = vmatpush.bf16.msrb.mxu1 %v5609_v35  ;;  %v7740_v14 = vld [vmem:[#allocation8 + $0x254] sm:$0xf]  ;;  %v5225_v28 = vor.u32 %v7676_v12, %v5222_v13  ;;  %v1783_v51 = vpop.f32.mrf.mxu0  ;;  %v5356_v12 = vld [vmem:[#allocation8 + $0x158] sm:$0xf]  ;;  %v6157_v15 = vor.u32 %v7913_v6, %v6156_v5 }
  0xfd   :  { %v5478_v21 = vld [vmem:[#allocation8 + $0x270] sm:$0xf0]  ;;  %v7713_v13 = vld [vmem:[#allocation8 + $0x174] sm:$0xf0] }
  0xfe   :  { %2060 = vmatpush.bf16.msrb.mxu2 %v5865_v36  ;;  %2035 = vmatpush.bf16.msrb.mxu0 %v5321_v46  ;;  %v7804_v23 = vld [vmem:[#allocation8 + $0x454] sm:$0xf]  ;;  %v5481_v31 = vor.u32 %v7740_v14, %v5478_v21  ;;  %v1807_v36 = vpop.f32.mrf.mxu2  ;;  %v1796_v57 = vpop.f32.mrf.mxu1  ;;  %v5612_v14 = vld [vmem:[#allocation8 + $0x358] sm:$0xf] }
  0xff   :  { %v5734_v24 = vld [vmem:[#allocation8 + $0x470] sm:$0xf0]  ;;  %v1808_v41 = vadd.f32 %v1807_v36, %v1795_v27  ;;  %v7777_v16 = vld [vmem:[#allocation8 + $0x374] sm:$0xf0] }
 0x100   :  { %2073 = vmatpush.bf16.msrb.mxu3 %v6121_v40  ;;  %2048 = vmatpush.bf16.msrb.mxu1 %v5577_v48  ;;  %v7868_v25 = vld [vmem:[#allocation8 + $0x654] sm:$0xf]  ;;  %v5737_v32 = vor.u32 %v7804_v23, %v5734_v24  ;;  %v5932_v48 = vld [vmem:[#allocation8 + $0x5d8] sm:$0xf]  ;;  %v5613_v27 = vor.u32 %v7777_v16, %v5612_v14 }
 0x101   :  { %v5990_v26 = vld [vmem:[#allocation8 + $0x670] sm:$0xf0]  ;;  %v8792_v50 = vadd.f32 %v1820_v42, %v1808_v41  ;;  %v7841_v21 = vld [vmem:[#allocation8 + $0x574] sm:$0xf0] }
 0x102   :  { %2061 = vmatpush.bf16.msrb.mxu2 %v5833_v49  ;;  %2036 = vmatpush.bf16.msrb.mxu0 %v5289_v59  ;;  %v7668_v29 = vld [vmem:[#allocation8 + $0x14] sm:$0xf]  ;;  %v5993_v37 = vor.u32 %v7868_v25, %v5990_v26  ;;  %v7857_v49 = vld [vmem:[#allocation8 + $0x5f4] sm:$0xf0]  ;;  %v5421_v59 = vor.u32 %v7729_v44, %v5420_v43  ;;  %v1822_v9 = vpop.f32.mrf.mxu3  ;;  %v5357_v25 = vor.u32 %v7713_v13, %v5356_v12 }
 0x103   :  { %v5190_v30 = vld [vmem:[#allocation8 + $0x30] sm:$0xf0]  ;;  %v6124_v23 = vld [vmem:[#allocation8 + $0x758] sm:$0xf] }
 0x104   :  { %2074 = vmatpush.bf16.msrb.mxu3 %v6089_v53  ;;  %2049 = vmatpush.bf16.msrb.mxu1 %v5545_v61  ;;  %v7732_v33 = vld [vmem:[#allocation8 + $0x214] sm:$0xf]  ;;  %v5193_v46 = vor.u32 %v7668_v29, %v5190_v30  ;;  %v5933_v61 = vor.u32 %v7857_v49, %v5932_v48  ;;  %v7905_v24 = vld [vmem:[#allocation8 + $0x774] sm:$0xf0] }
 0x105   :  { %v5446_v34 = vld [vmem:[#allocation8 + $0x230] sm:$0xf0]  ;;  %v5324_v26 = vld [vmem:[#allocation8 + $0x118] sm:$0xf] }
 0x106   :  { %2062 = vmatpush.bf16.msrb.mxu2 %v5801_v62  ;;  %2037 = vmatpush.bf16.msrb.mxu0 %v5257_v8  ;;  %v7796_v35 = vld [vmem:[#allocation8 + $0x414] sm:$0xf]  ;;  %v5449_v52 = vor.u32 %v7732_v33, %v5446_v34  ;;  %v5388_v62 = vld [vmem:[#allocation8 + $0x198] sm:$0xf]  ;;  %v1809_v7 = vpop.f32.mrf.mxu2 }
 0x107   :  { %v5702_v38 = vld [vmem:[#allocation8 + $0x430] sm:$0xf0]  ;;  %v5389_v8 = vor.u32 %v7721_v63, %v5388_v62  ;;  %v7705_v29 = vld [vmem:[#allocation8 + $0x134] sm:$0xf0] }
 0x108   :  { %2075 = vmatpush.bf16.msrb.mxu3 %v6057_v2  ;;  %2050 = vmatpush.bf16.msrb.mxu1 %v5513_v10  ;;  %v7860_v39 = vld [vmem:[#allocation8 + $0x614] sm:$0xf]  ;;  %v5705_v53 = vor.u32 %v7796_v35, %v5702_v38  ;;  %v7785_v2 = vld [vmem:[#allocation8 + $0x3b4] sm:$0xf0]  ;;  %v5325_v38 = vor.u32 %v7705_v29, %v5324_v26 }
 0x109   :  { %v5958_v40 = vld [vmem:[#allocation8 + $0x630] sm:$0xf0]  ;;  %v5645_v10 = vor.u32 %v7785_v2, %v5644_v0  ;;  %v5580_v30 = vld [vmem:[#allocation8 + $0x318] sm:$0xf] }
 0x10a   :  { %2063 = vmatpush.bf16.msrb.mxu2 %v5769_v11  ;;  %2038 = vmatpush.bf16.msrb.mxu0 %v5225_v28  ;;  %v5961_v58 = vor.u32 %v7860_v39, %v5958_v40  ;;  %v5901_v11 = vor.u32 %v7849_v4, %v5900_v3  ;;  %v7769_v33 = vld [vmem:[#allocation8 + $0x334] sm:$0xf0] }
 0x10b   :  { %v5836_v34 = vld [vmem:[#allocation8 + $0x518] sm:$0xf]  ;;  %v5581_v40 = vor.u32 %v7769_v33, %v5580_v30 }
 0x10c   :  { %2076 = vmatpush.bf16.msrb.mxu3 %v6025_v17  ;;  %2051 = vmatpush.bf16.msrb.mxu1 %v5481_v31  ;;  %v5868_v17 = vld [vmem:[#allocation8 + $0x558] sm:$0xf]  ;;  %v463_v31 = vperm.slane %v8789_v56, 1 }
 0x10d   :  { %v5869_v28 = vor.u32 %v7841_v21, %v5868_v17  ;;  %v7833_v35 = vld [vmem:[#allocation8 + $0x534] sm:$0xf0] }
 0x10e   :  { %2064 = vmatpush.bf16.msrb.mxu2 %v5737_v32  ;;  %2039 = vmatpush.bf16.msrb.mxu0 %v5193_v46  ;;  %v6125_v32 = vor.u32 %v7905_v24, %v6124_v23  ;;  %v6092_v36 = vld [vmem:[#allocation8 + $0x718] sm:$0xf]  ;;  %v1833_v39 = vpop.f32.mrf.mxu0  ;;  %v5837_v41 = vor.u32 %v7833_v35, %v5836_v34 }
 0x10f   :  { %v5292_v42 = vld [vmem:[#allocation8 + $0xd8] sm:$0xf]  ;;  %v1834_v45 = vadd.f32 %v1833_v39, %v463_v31 }
 0x110   :  { %2077 = vmatpush.bf16.msrb.mxu3 %v5993_v37  ;;  %2052 = vmatpush.bf16.msrb.mxu1 %v5449_v52  ;;  %v7897_v37 = vld [vmem:[#allocation8 + $0x734] sm:$0xf0]  ;;  %v1846_v46 = vpop.f32.mrf.mxu1 }
 0x111   :  { %2040 = vmatmul.bf16.vlgmr.msrb.gmra.mxu0 %v8763_v19  ;;  %v7697_v43 = vld [vmem:[#allocation8 + $0xf4] sm:$0xf0]  ;;  %v6093_v47 = vor.u32 %v7897_v37, %v6092_v36  ;;  %v1847_v54 = vadd.f32 %v1846_v46, %v1834_v45  ;;  %v7853_v45 = vld [vmem:[#allocation8 + $0x5dc] sm:$0xf] }
 0x112   :  { %2065 = vmatpush.bf16.msrb.mxu2 %v5705_v53  ;;  %2084 = vmatpush.bf16.msra.mxu0 %v5421_v59  ;;  %v5548_v44 = vld [vmem:[#allocation8 + $0x2d8] sm:$0xf]  ;;  %v5293_v55 = vor.u32 %v7697_v43, %v5292_v42  ;;  %v7789_v42 = vld [vmem:[#allocation8 + $0x3dc] sm:$0xf] }
 0x113   :  { %2053 = vmatmul.bf16.vlgmr.msrb.gmra.mxu1 %v8767_v22  ;;  %v7761_v48 = vld [vmem:[#allocation8 + $0x2f4] sm:$0xf0]  ;;  %v5934_v46 = vld [vmem:[#allocation8 + $0x5f8] sm:$0xf0] }
 0x114   :  { %2078 = vmatpush.bf16.msrb.mxu3 %v5961_v58  ;;  %2097 = vmatpush.bf16.msra.mxu1 %v5677_v60  ;;  %v5804_v49 = vld [vmem:[#allocation8 + $0x4d8] sm:$0xf]  ;;  %v5549_v57 = vor.u32 %v7761_v48, %v5548_v44  ;;  %v5678_v44 = vld [vmem:[#allocation8 + $0x3f8] sm:$0xf0] }
 0x115   :  { %2066 = vmatmul.bf16.vlgmr.msrb.gmra.mxu2 %v8761_v18  ;;  %v7825_v51 = vld [vmem:[#allocation8 + $0x4f4] sm:$0xf0] }
 0x116   :  { %2110 = vmatpush.bf16.msra.mxu2 %v5933_v61  ;;  %2085 = vmatpush.bf16.msra.mxu0 %v5389_v8  ;;  %v6060_v52 = vld [vmem:[#allocation8 + $0x6d8] sm:$0xf]  ;;  %v5805_v58 = vor.u32 %v7825_v51, %v5804_v49  ;;  %v1835_v9 = vpop.f32.mrf.mxu0  ;;  %v7917_v49 = vld [vmem:[#allocation8 + $0x7dc] sm:$0xf] }
 0x117   :  { %2079 = vmatmul.bf16.vlgmr.msrb.gmra.mxu3 %v8765_v20  ;;  %v7889_v53 = vld [vmem:[#allocation8 + $0x6f4] sm:$0xf0]  ;;  %v6190_v51 = vld [vmem:[#allocation8 + $0x7f8] sm:$0xf0] }
 0x118   :  { %2123 = vmatpush.bf16.msra.mxu3 %v6189_v1  ;;  %2098 = vmatpush.bf16.msra.mxu1 %v5645_v10  ;;  %v5260_v59 = vld [vmem:[#allocation8 + $0x98] sm:$0xf]  ;;  %v1859_v62 = vpop.f32.mrf.mxu2  ;;  %v6061_v63 = vor.u32 %v7889_v53, %v6060_v52 }
 0x119   :  { %v7689_v60 = vld [vmem:[#allocation8 + $0xb4] sm:$0xf0]  ;;  %v1860_v3 = vadd.f32 %v1859_v62, %v1847_v54  ;;  %v5681_v54 = vor.u32 %v7789_v42, %v5678_v44  ;;  %v7845_v62 = vld [vmem:[#allocation8 + $0x59c] sm:$0xf] }
 0x11a   :  { %2111 = vmatpush.bf16.msra.mxu2 %v5901_v11  ;;  %2086 = vmatpush.bf16.msra.mxu0 %v5357_v25  ;;  %v5516_v61 = vld [vmem:[#allocation8 + $0x298] sm:$0xf]  ;;  %v1872_v4 = vpop.f32.mrf.mxu3  ;;  %v5261_v7 = vor.u32 %v7689_v60, %v5260_v59  ;;  %v7781_v59 = vld [vmem:[#allocation8 + $0x39c] sm:$0xf]  ;;  %v6193_v60 = vor.u32 %v7917_v49, %v6190_v51 }
 0x11b   :  { %v7753_v0 = vld [vmem:[#allocation8 + $0x2b4] sm:$0xf0]  ;;  %v8799_v8 = vadd.f32 %v1872_v4, %v1860_v3  ;;  %v5806_v42 = vld [vmem:[#allocation8 + $0x4f8] sm:$0xf0] }
 0x11c   :  { %2124 = vmatpush.bf16.msra.mxu3 %v6157_v15  ;;  %2099 = vmatpush.bf16.msra.mxu1 %v5613_v27  ;;  %v5772_v1 = vld [vmem:[#allocation8 + $0x498] sm:$0xf]  ;;  %v5517_v10 = vor.u32 %v7753_v0, %v5516_v61  ;;  %v1848_v15 = vpop.f32.mrf.mxu1  ;;  %v5646_v61 = vld [vmem:[#allocation8 + $0x3b8] sm:$0xf0] }
 0x11d   :  { %v7817_v2 = vld [vmem:[#allocation8 + $0x4b4] sm:$0xf0]  ;;  %v7909_v0 = vld [vmem:[#allocation8 + $0x79c] sm:$0xf]  ;;  %v5649_v3 = vor.u32 %v7781_v59, %v5646_v61 }
 0x11e   :  { %2112 = vmatpush.bf16.msra.mxu2 %v5869_v28  ;;  %2087 = vmatpush.bf16.msra.mxu0 %v5325_v38  ;;  %v6028_v5 = vld [vmem:[#allocation8 + $0x698] sm:$0xf]  ;;  %v5773_v11 = vor.u32 %v7817_v2, %v5772_v1  ;;  %v6158_v1 = vld [vmem:[#allocation8 + $0x7b8] sm:$0xf0] }
 0x11f   :  { %v7881_v6 = vld [vmem:[#allocation8 + $0x6b4] sm:$0xf0]  ;;  %v6161_v9 = vor.u32 %v7909_v0, %v6158_v1  ;;  %v6062_v44 = vld [vmem:[#allocation8 + $0x6f8] sm:$0xf0] }
 0x120   :  { %2125 = vmatpush.bf16.msra.mxu3 %v6125_v32  ;;  %2100 = vmatpush.bf16.msra.mxu1 %v5581_v40  ;;  %v5228_v12 = vld [vmem:[#allocation8 + $0x58] sm:$0xf]  ;;  %v6029_v16 = vor.u32 %v7881_v6, %v6028_v5  ;;  %v1861_v34 = vpop.f32.mrf.mxu2  ;;  %v7725_v40 = vld [vmem:[#allocation8 + $0x1dc] sm:$0xf] }
 0x121   :  { %v7681_v13 = vld [vmem:[#allocation8 + $0x74] sm:$0xf0]  ;;  %v7709_v5 = vld [vmem:[#allocation8 + $0x15c] sm:$0xf] }
 0x122   :  { %2113 = vmatpush.bf16.msra.mxu2 %v5837_v41  ;;  %2088 = vmatpush.bf16.msra.mxu0 %v5293_v55  ;;  %v5484_v14 = vld [vmem:[#allocation8 + $0x258] sm:$0xf]  ;;  %v5229_v26 = vor.u32 %v7681_v13, %v5228_v12  ;;  %v1874_v39 = vpop.f32.mrf.mxu3  ;;  %v5422_v41 = vld [vmem:[#allocation8 + $0x1f8] sm:$0xf0]  ;;  %v5937_v55 = vor.u32 %v7853_v45, %v5934_v46 }
 0x123   :  { %v7745_v17 = vld [vmem:[#allocation8 + $0x274] sm:$0xf0]  ;;  %v5425_v53 = vor.u32 %v7725_v40, %v5422_v41  ;;  %v5358_v6 = vld [vmem:[#allocation8 + $0x178] sm:$0xf0] }
 0x124   :  { %2126 = vmatpush.bf16.msra.mxu3 %v6093_v47  ;;  %2101 = vmatpush.bf16.msra.mxu1 %v5549_v57  ;;  %v5740_v21 = vld [vmem:[#allocation8 + $0x458] sm:$0xf]  ;;  %v5485_v29 = vor.u32 %v7745_v17, %v5484_v14  ;;  %v7717_v57 = vld [vmem:[#allocation8 + $0x19c] sm:$0xf]  ;;  %v5361_v15 = vor.u32 %v7709_v5, %v5358_v6 }
 0x125   :  { %v7809_v23 = vld [vmem:[#allocation8 + $0x474] sm:$0xf0]  ;;  %v5870_v12 = vld [vmem:[#allocation8 + $0x578] sm:$0xf0] }
 0x126   :  { %2114 = vmatpush.bf16.msra.mxu2 %v5805_v58  ;;  %v5996_v24 = vld [vmem:[#allocation8 + $0x658] sm:$0xf]  ;;  %2089 = vmatpush.bf16.msra.mxu0 %v5261_v7  ;;  %v5741_v30 = vor.u32 %v7809_v23, %v5740_v21  ;;  %v5390_v58 = vld [vmem:[#allocation8 + $0x1b8] sm:$0xf0] }
 0x127   :  { %v7873_v25 = vld [vmem:[#allocation8 + $0x674] sm:$0xf0]  ;;  %v5393_v2 = vor.u32 %v7717_v57, %v5390_v58  ;;  %v7773_v7 = vld [vmem:[#allocation8 + $0x35c] sm:$0xf] }
 0x128   :  { %2127 = vmatpush.bf16.msra.mxu3 %v6061_v63  ;;  %v5196_v27 = vld [vmem:[#allocation8 + $0x18] sm:$0xf]  ;;  %2102 = vmatpush.bf16.msra.mxu1 %v5517_v10  ;;  %v5997_v35 = vor.u32 %v7873_v25, %v5996_v24  ;;  %v5902_v63 = vld [vmem:[#allocation8 + $0x5b8] sm:$0xf0] }
 0x129   :  { %v7673_v28 = vld [vmem:[#allocation8 + $0x34] sm:$0xf0]  ;;  %v5905_v4 = vor.u32 %v7845_v62, %v5902_v63  ;;  %v5614_v10 = vld [vmem:[#allocation8 + $0x378] sm:$0xf0] }
 0x12a   :  { %2115 = vmatpush.bf16.msra.mxu2 %v5773_v11  ;;  %v5452_v31 = vld [vmem:[#allocation8 + $0x218] sm:$0xf]  ;;  %2090 = vmatpush.bf16.msra.mxu0 %v5229_v26  ;;  %v5197_v43 = vor.u32 %v7673_v28, %v5196_v27  ;;  %v7837_v11 = vld [vmem:[#allocation8 + $0x55c] sm:$0xf] }
 0x12b   :  { %v7737_v32 = vld [vmem:[#allocation8 + $0x234] sm:$0xf0]  ;;  %v7901_v13 = vld [vmem:[#allocation8 + $0x75c] sm:$0xf]  ;;  %v5873_v17 = vor.u32 %v7837_v11, %v5870_v12 }
 0x12c   :  { %v5708_v33 = vld [vmem:[#allocation8 + $0x418] sm:$0xf]  ;;  %2128 = vmatpush.bf16.msra.mxu3 %v6029_v16  ;;  %2103 = vmatpush.bf16.msra.mxu1 %v5485_v29  ;;  %v5453_v47 = vor.u32 %v7737_v32, %v5452_v31  ;;  %v6126_v14 = vld [vmem:[#allocation8 + $0x778] sm:$0xf0]  ;;  %v5617_v16 = vor.u32 %v7773_v7, %v5614_v10 }
 0x12d   :  { %v7801_v36 = vld [vmem:[#allocation8 + $0x434] sm:$0xf0]  ;;  %v7701_v21 = vld [vmem:[#allocation8 + $0x11c] sm:$0xf]  ;;  %v6129_v25 = vor.u32 %v7901_v13, %v6126_v14 }
 0x12e   :  { %v5964_v37 = vld [vmem:[#allocation8 + $0x618] sm:$0xf]  ;;  %2116 = vmatpush.bf16.msra.mxu2 %v5741_v30  ;;  %v5709_v48 = vor.u32 %v7801_v36, %v5708_v33  ;;  %2091 = vmatpush.bf16.msra.mxu0 %v5197_v43  ;;  %v5326_v23 = vld [vmem:[#allocation8 + $0x138] sm:$0xf0]  ;;  %v8805_v32 = vpop.f32.mrf.mxu0 }
 0x12f   :  { %v7865_v38 = vld [vmem:[#allocation8 + $0x634] sm:$0xf0]  ;;  %v7765_v24 = vld [vmem:[#allocation8 + $0x31c] sm:$0xf]  ;;  %v5329_v31 = vor.u32 %v7701_v21, %v5326_v23 }
 0x130   :  { %2129 = vmatpush.bf16.msra.mxu3 %v5997_v35  ;;  %v5965_v52 = vor.u32 %v7865_v38, %v5964_v37  ;;  %2104 = vmatpush.bf16.msra.mxu1 %v5453_v47  ;;  %v5582_v26 = vld [vmem:[#allocation8 + $0x338] sm:$0xf0]  ;;  %v8807_v38 = vpop.f32.mrf.mxu1 }
 0x131   :  { %2092 = vmatmul.bf16.vlgmr.msra.gmra.mxu0 %v8763_v19  ;;  %v7829_v27 = vld [vmem:[#allocation8 + $0x51c] sm:$0xf]  ;;  %v5585_v33 = vor.u32 %v7765_v24, %v5582_v26 }
 0x132   :  { %2117 = vmatpush.bf16.msra.mxu2 %v5709_v48  ;;  %2136 = vmatpush.bf16.msrb.mxu0 %v5425_v53  ;;  %v5838_v28 = vld [vmem:[#allocation8 + $0x538] sm:$0xf0] }
 0x133   :  { %2105 = vmatmul.bf16.vlgmr.msra.gmra.mxu1 %v8767_v22  ;;  %v7893_v29 = vld [vmem:[#allocation8 + $0x71c] sm:$0xf]  ;;  %v5841_v34 = vor.u32 %v7829_v27, %v5838_v28 }
 0x134   :  { %2130 = vmatpush.bf16.msra.mxu3 %v5965_v52  ;;  %2149 = vmatpush.bf16.msrb.mxu1 %v5681_v54  ;;  %v6094_v30 = vld [vmem:[#allocation8 + $0x738] sm:$0xf0] }
 0x135   :  { %2118 = vmatmul.bf16.vlgmr.msra.gmra.mxu2 %v8761_v18  ;;  %v7693_v35 = vld [vmem:[#allocation8 + $0xdc] sm:$0xf]  ;;  %v6097_v39 = vor.u32 %v7893_v29, %v6094_v30  ;;  %v6308_v30 = vld [vmem:[#allocation11 + $0xe0] sm:$0xf] }
 0x136   :  { %2162 = vmatpush.bf16.msrb.mxu2 %v5937_v55  ;;  %2137 = vmatpush.bf16.msrb.mxu0 %v5393_v2  ;;  %v5294_v36 = vld [vmem:[#allocation8 + $0xf8] sm:$0xf0]  ;;  %v1887_v62 = vpop.f32.mrf.mxu0 }
 0x137   :  { %2131 = vmatmul.bf16.vlgmr.msra.gmra.mxu3 %v8765_v20  ;;  %v7757_v37 = vld [vmem:[#allocation8 + $0x2dc] sm:$0xf]  ;;  %v5297_v45 = vor.u32 %v7693_v35, %v5294_v36  ;;  %v7984_v35 = vld [vmem:[#allocation11 + $0x1ec] sm:$0xf0]  ;;  %v6564_v36 = vld [vmem:[#allocation11 + $0x2e0] sm:$0xf] }
 0x138   :  { %2175 = vmatpush.bf16.msrb.mxu3 %v6193_v60  ;;  %2150 = vmatpush.bf16.msrb.mxu1 %v5649_v3  ;;  %v5550_v40 = vld [vmem:[#allocation8 + $0x2f8] sm:$0xf0]  ;;  %v8809_v52 = vpop.f32.mrf.mxu2 }
 0x139   :  { %v7821_v41 = vld [vmem:[#allocation8 + $0x4dc] sm:$0xf]  ;;  %v5553_v46 = vor.u32 %v7757_v37, %v5550_v40  ;;  %v8016_v37 = vld [vmem:[#allocation11 + $0x2ec] sm:$0xf0] }
 0x13a   :  { %2163 = vmatpush.bf16.msrb.mxu2 %v5905_v4  ;;  %2138 = vmatpush.bf16.msrb.mxu0 %v5361_v15  ;;  %v7885_v43 = vld [vmem:[#allocation8 + $0x6dc] sm:$0xf]  ;;  %v5809_v47 = vor.u32 %v7821_v41, %v5806_v42  ;;  %v8811_v58 = vpop.f32.mrf.mxu3  ;;  %v1900_v4 = vpop.f32.mrf.mxu1 }
 0x13b   :  { %v7685_v48 = vld [vmem:[#allocation8 + $0x9c] sm:$0xf]  ;;  %v6065_v53 = vor.u32 %v7885_v43, %v6062_v44  ;;  %v6692_v43 = vld [vmem:[#allocation11 + $0x3e0] sm:$0xf]  ;;  %v8048_v44 = vld [vmem:[#allocation11 + $0x3ec] sm:$0xf0] }
 0x13c   :  { %2176 = vmatpush.bf16.msrb.mxu3 %v6161_v9  ;;  %2151 = vmatpush.bf16.msrb.mxu1 %v5617_v16  ;;  %v5262_v49 = vld [vmem:[#allocation8 + $0xb8] sm:$0xf0]  ;;  %v8008_v4 = vld [vmem:[#allocation11 + $0x2ac] sm:$0xf0] }
 0x13d   :  { %v7749_v51 = vld [vmem:[#allocation8 + $0x29c] sm:$0xf]  ;;  %v5265_v61 = vor.u32 %v7685_v48, %v5262_v49  ;;  %v7948_v48 = vld [vmem:[#allocation11 + $0xcc] sm:$0xf0]  ;;  %v6420_v49 = vld [vmem:[#allocation11 + $0x1c0] sm:$0xf] }
 0x13e   :  { %2164 = vmatpush.bf16.msrb.mxu2 %v5873_v17  ;;  %2139 = vmatpush.bf16.msrb.mxu0 %v5329_v31  ;;  %v5518_v54 = vld [vmem:[#allocation8 + $0x2b8] sm:$0xf0]  ;;  %v7952_v31 = vld [vmem:[#allocation11 + $0xec] sm:$0xf0] }
 0x13f   :  { %v7813_v55 = vld [vmem:[#allocation8 + $0x49c] sm:$0xf]  ;;  %v5521_v63 = vor.u32 %v7749_v51, %v5518_v54  ;;  %v6309_v42 = vor.u32 %v7952_v31, %v6308_v30  ;;  %v7980_v51 = vld [vmem:[#allocation11 + $0x1cc] sm:$0xf0] }
 0x140   :  { %2177 = vmatpush.bf16.msrb.mxu3 %v6129_v25  ;;  %2152 = vmatpush.bf16.msrb.mxu1 %v5585_v33  ;;  %v5774_v57 = vld [vmem:[#allocation8 + $0x4b8] sm:$0xf0]  ;;  %v1913_v24 = vpop.f32.mrf.mxu2  ;;  %v6436_v33 = vld [vmem:[#allocation11 + $0x1e0] sm:$0xf]  ;;  %v8012_v54 = vld [vmem:[#allocation11 + $0x2cc] sm:$0xf0] }
 0x141   :  { %v7877_v59 = vld [vmem:[#allocation8 + $0x69c] sm:$0xf]  ;;  %v5777_v0 = vor.u32 %v7813_v55, %v5774_v57  ;;  %v6693_v55 = vor.u32 %v8048_v44, %v6692_v43  ;;  %v7968_v31 = vld [vmem:[#allocation11 + $0x16c] sm:$0xf0]  ;;  %v6228_v43 = vld [vmem:[#allocation11 + $0x40] sm:$0xf] }
 0x142   :  { %2165 = vmatpush.bf16.msrb.mxu2 %v5841_v34  ;;  %v6030_v60 = vld [vmem:[#allocation8 + $0x6b8] sm:$0xf0]  ;;  %2140 = vmatpush.bf16.msrb.mxu0 %v5297_v45  ;;  %v1926_v29 = vpop.f32.mrf.mxu3  ;;  %v6437_v45 = vor.u32 %v7984_v35, %v6436_v33  ;;  %v6500_v33 = vld [vmem:[#allocation11 + $0x260] sm:$0xf]  ;;  %v7932_v44 = vld [vmem:[#allocation11 + $0x4c] sm:$0xf0] }
 0x143   :  { %v7677_v1 = vld [vmem:[#allocation8 + $0x5c] sm:$0xf]  ;;  %v6033_v5 = vor.u32 %v7877_v59, %v6030_v60  ;;  %v6676_v59 = vld [vmem:[#allocation11 + $0x3c0] sm:$0xf]  ;;  %v8044_v60 = vld [vmem:[#allocation11 + $0x3cc] sm:$0xf0] }
 0x144   :  { %2178 = vmatpush.bf16.msrb.mxu3 %v6097_v39  ;;  %2153 = vmatpush.bf16.msrb.mxu1 %v5553_v46  ;;  %v5230_v2 = vld [vmem:[#allocation8 + $0x78] sm:$0xf0]  ;;  %v6565_v46 = vor.u32 %v8016_v37, %v6564_v36  ;;  %v6372_v29 = vld [vmem:[#allocation11 + $0x160] sm:$0xf] }
 0x145   :  { %v7741_v3 = vld [vmem:[#allocation8 + $0x25c] sm:$0xf]  ;;  %v5233_v12 = vor.u32 %v7677_v1, %v5230_v2  ;;  %v6404_v1 = vld [vmem:[#allocation11 + $0x1a0] sm:$0xf]  ;;  %v7976_v2 = vld [vmem:[#allocation11 + $0x1ac] sm:$0xf0] }
 0x146   :  { %2166 = vmatpush.bf16.msrb.mxu2 %v5809_v47  ;;  %v5486_v6 = vld [vmem:[#allocation8 + $0x278] sm:$0xf0]  ;;  %2141 = vmatpush.bf16.msrb.mxu0 %v5265_v61  ;;  %v6292_v47 = vld [vmem:[#allocation11 + $0xc0] sm:$0xf]  ;;  %v6421_v61 = vor.u32 %v7980_v51, %v6420_v49  ;;  %v7996_v49 = vld [vmem:[#allocation11 + $0x24c] sm:$0xf0] }
 0x147   :  { %v7805_v7 = vld [vmem:[#allocation8 + $0x45c] sm:$0xf]  ;;  %v5489_v15 = vor.u32 %v7741_v3, %v5486_v6  ;;  %v6293_v57 = vor.u32 %v7948_v48, %v6292_v47  ;;  %v6532_v3 = vld [vmem:[#allocation11 + $0x2a0] sm:$0xf]  ;;  %v7964_v47 = vld [vmem:[#allocation11 + $0x14c] sm:$0xf0] }
 0x148   :  { %2179 = vmatpush.bf16.msrb.mxu3 %v6065_v53  ;;  %v5742_v9 = vld [vmem:[#allocation8 + $0x478] sm:$0xf0]  ;;  %2154 = vmatpush.bf16.msrb.mxu1 %v5521_v63  ;;  %v6548_v53 = vld [vmem:[#allocation11 + $0x2c0] sm:$0xf] }
 0x149   :  { %v7869_v10 = vld [vmem:[#allocation8 + $0x65c] sm:$0xf]  ;;  %v5745_v16 = vor.u32 %v7805_v7, %v5742_v9  ;;  %v6549_v62 = vor.u32 %v8012_v54, %v6548_v53  ;;  %v6276_v63 = vld [vmem:[#allocation11 + $0xa0] sm:$0xf]  ;;  %v8040_v9 = vld [vmem:[#allocation11 + $0x3ac] sm:$0xf0] }
 0x14a   :  { %v5998_v11 = vld [vmem:[#allocation8 + $0x678] sm:$0xf0]  ;;  %2167 = vmatpush.bf16.msrb.mxu2 %v5777_v0  ;;  %2142 = vmatpush.bf16.msrb.mxu0 %v5233_v12  ;;  %v7944_v0 = vld [vmem:[#allocation11 + $0xac] sm:$0xf0]  ;;  %v6660_v7 = vld [vmem:[#allocation11 + $0x3a0] sm:$0xf] }
 0x14b   :  { %v7669_v13 = vld [vmem:[#allocation8 + $0x1c] sm:$0xf]  ;;  %v6001_v25 = vor.u32 %v7869_v10, %v5998_v11  ;;  %v6277_v6 = vor.u32 %v7944_v0, %v6276_v63  ;;  %v6405_v10 = vor.u32 %v7976_v2, %v6404_v1  ;;  %v6533_v11 = vor.u32 %v8008_v4, %v6532_v3  ;;  %v7940_v12 = vld [vmem:[#allocation11 + $0x8c] sm:$0xf0]  ;;  %v6484_v48 = vld [vmem:[#allocation11 + $0x240] sm:$0xf] }
 0x14c   :  { %v5198_v14 = vld [vmem:[#allocation8 + $0x38] sm:$0xf0]  ;;  %2180 = vmatpush.bf16.msrb.mxu3 %v6033_v5  ;;  %2155 = vmatpush.bf16.msrb.mxu1 %v5489_v15  ;;  %v6677_v5 = vor.u32 %v8044_v60, %v6676_v59  ;;  %v8004_v15 = vld [vmem:[#allocation11 + $0x28c] sm:$0xf0]  ;;  %v6212_v63 = vld [vmem:[#allocation11 + $0x20] sm:$0xf] }
 0x14d   :  { %v7733_v17 = vld [vmem:[#allocation8 + $0x21c] sm:$0xf]  ;;  %v5201_v34 = vor.u32 %v7669_v13, %v5198_v14  ;;  %v7972_v13 = vld [vmem:[#allocation11 + $0x18c] sm:$0xf0]  ;;  %v6516_v14 = vld [vmem:[#allocation11 + $0x280] sm:$0xf] }
 0x14e   :  { %v5454_v21 = vld [vmem:[#allocation8 + $0x238] sm:$0xf0]  ;;  %2168 = vmatpush.bf16.msrb.mxu2 %v5745_v16  ;;  %v6661_v16 = vor.u32 %v8040_v9, %v6660_v7  ;;  %v1937_v24 = vpop.f32.mrf.mxu0  ;;  %v8028_v59 = vld [vmem:[#allocation11 + $0x34c] sm:$0xf0]  ;;  %v6340_v1 = vld [vmem:[#allocation11 + $0x120] sm:$0xf] }
 0x14f   :  { %v7797_v23 = vld [vmem:[#allocation8 + $0x41c] sm:$0xf]  ;;  %v5457_v39 = vor.u32 %v7733_v17, %v5454_v21  ;;  %2143 = vmatpush.bf16.msrb.mxu0 %v5201_v34  ;;  %v6644_v21 = vld [vmem:[#allocation11 + $0x380] sm:$0xf]  ;;  %v8000_v34 = vld [vmem:[#allocation11 + $0x26c] sm:$0xf0] }
 0x150   :  { %v5710_v26 = vld [vmem:[#allocation8 + $0x438] sm:$0xf0]  ;;  %2181 = vmatpush.bf16.msrb.mxu3 %v6001_v25  ;;  %v1950_v30 = vpop.f32.mrf.mxu1  ;;  %v7928_v0 = vld [vmem:[#allocation11 + $0x2c] sm:$0xf0]  ;;  %v6468_v4 = vld [vmem:[#allocation11 + $0x220] sm:$0xf] }
 0x151   :  { %v7861_v27 = vld [vmem:[#allocation8 + $0x61c] sm:$0xf]  ;;  %v5713_v40 = vor.u32 %v7797_v23, %v5710_v26  ;;  %2156 = vmatpush.bf16.msrb.mxu1 %v5457_v39  ;;  %v8036_v23 = vld [vmem:[#allocation11 + $0x38c] sm:$0xf0]  ;;  %v6517_v26 = vor.u32 %v8004_v15, %v6516_v14  ;;  %v6628_v39 = vld [vmem:[#allocation11 + $0x360] sm:$0xf]  ;;  %v6213_v9 = vor.u32 %v7928_v0, %v6212_v63 }
 0x152   :  { %v5966_v28 = vld [vmem:[#allocation8 + $0x638] sm:$0xf0]  ;;  %2144 = vmatmul.bf16.vlgmr.msrb.gmra.mxu0 %v8763_v19  ;;  %v6260_v19 = vld [vmem:[#allocation11 + $0x80] sm:$0xf]  ;;  %v6645_v36 = vor.u32 %v8036_v23, %v6644_v21  ;;  %v7960_v3 = vld [vmem:[#allocation11 + $0x12c] sm:$0xf0] }
 0x153   :  { %v5969_v41 = vor.u32 %v7861_v27, %v5966_v28  ;;  %2169 = vmatpush.bf16.msrb.mxu2 %v5713_v40  ;;  %3750 = vmatpush.bf16.msra.mxu0 %v6309_v42  ;;  %v6261_v17 = vor.u32 %v7940_v12, %v6260_v19  ;;  %v6244_v27 = vld [vmem:[#allocation11 + $0x60] sm:$0xf]  ;;  %v7936_v28 = vld [vmem:[#allocation11 + $0x6c] sm:$0xf0]  ;;  %v6501_v42 = vor.u32 %v8000_v34, %v6500_v33 }
 0x154   :  { %2157 = vmatmul.bf16.vlgmr.msrb.gmra.mxu1 %v8767_v22  ;;  %v6388_v22 = vld [vmem:[#allocation11 + $0x180] sm:$0xf]  ;;  %v6245_v37 = vor.u32 %v7936_v28, %v6244_v27  ;;  %v8032_v40 = vld [vmem:[#allocation11 + $0x36c] sm:$0xf0]  ;;  %v6341_v12 = vor.u32 %v7960_v3, %v6340_v1 }
 0x155   :  { %2182 = vmatpush.bf16.msrb.mxu3 %v5969_v41  ;;  %3763 = vmatpush.bf16.msra.mxu1 %v6437_v45  ;;  %v6389_v25 = vor.u32 %v7972_v13, %v6388_v22  ;;  %v6373_v41 = vor.u32 %v7968_v31, %v6372_v29  ;;  %v6356_v45 = vld [vmem:[#allocation11 + $0x140] sm:$0xf]  ;;  %v6629_v54 = vor.u32 %v8032_v40, %v6628_v39  ;;  %v7924_v13 = vld [vmem:[#allocation11 + $0xc] sm:$0xf0]  ;;  %v2188_v31 = vmax.f32 %v8792_v50, 0.0 }
 0x156   :  { %2170 = vmatmul.bf16.vlgmr.msrb.gmra.mxu2 %v8761_v18  ;;  %v464_v18 = vperm.slane %v8789_v56, 2  ;;  %v1939_v60 = vpop.f32.mrf.mxu0  ;;  %v6196_v19 = vld [vmem:[#allocation11] sm:$0xf]  ;;  %v7956_v15 = vld [vmem:[#allocation11 + $0x10c] sm:$0xf0] }
 0x157   :  { %3776 = vmatpush.bf16.msra.mxu2 %v6565_v46  ;;  %3751 = vmatpush.bf16.msra.mxu0 %v6293_v57  ;;  %v6612_v57 = vld [vmem:[#allocation11 + $0x340] sm:$0xf]  ;;  %v6197_v28 = vor.u32 %v7924_v13, %v6196_v19  ;;  %v8076_v40 = vld [vmem:[#allocation11 + $0x4cc] sm:$0xf0] }
 0x158   :  { %2183 = vmatmul.bf16.vlgmr.msrb.gmra.mxu3 %v8765_v20  ;;  %v465_v20 = vperm.slane %v8789_v56, 3  ;;  %v1886_v56 = vadd.f32 %v8805_v32, %v464_v18  ;;  %v1963_v46 = vpop.f32.mrf.mxu2  ;;  %v1952_v2 = vpop.f32.mrf.mxu1  ;;  %v6613_v7 = vor.u32 %v8028_v59, %v6612_v57  ;;  %v6324_v14 = vld [vmem:[#allocation11 + $0x100] sm:$0xf]  ;;  %v8104_v59 = vld [vmem:[#allocation11 + $0x5ac] sm:$0xf0] }
 0x159   :  { %3789 = vmatpush.bf16.msra.mxu3 %v6693_v55  ;;  %3764 = vmatpush.bf16.msra.mxu1 %v6421_v61  ;;  %v6229_v55 = vor.u32 %v7932_v44, %v6228_v43  ;;  %v6357_v61 = vor.u32 %v7964_v47, %v6356_v45  ;;  %v7076_v29 = vld [vmem:[#allocation11 + $0x6e0] sm:$0xf]  ;;  %v6325_v33 = vor.u32 %v7956_v15, %v6324_v14  ;;  %v8108_v44 = vld [vmem:[#allocation11 + $0x5cc] sm:$0xf0] }
 0x15a   :  { %v1938_v35 = vadd.f32 %v1937_v24, %v465_v20  ;;  %v1976_v51 = vpop.f32.mrf.mxu3  ;;  %v1899_v32 = vadd.f32 %v8807_v38, %v1886_v56  ;;  %v6452_v20 = vld [vmem:[#allocation11 + $0x200] sm:$0xf]  ;;  %v8080_v24 = vld [vmem:[#allocation11 + $0x4ec] sm:$0xf0] }
 0x15b   :  { %3777 = vmatpush.bf16.msra.mxu2 %v6549_v62  ;;  %3752 = vmatpush.bf16.msra.mxu0 %v6277_v6  ;;  %v6485_v62 = vor.u32 %v7996_v49, %v6484_v48  ;;  %v6580_v56 = vld [vmem:[#allocation11 + $0x300] sm:$0xf]  ;;  %v8140_v47 = vld [vmem:[#allocation11 + $0x6cc] sm:$0xf0]  ;;  %v8825_v48 = vpack.c.bf16 %v2188_v31, %v2188_v31 }
 0x15c   :  { %v1951_v53 = vadd.f32 %v1950_v30, %v1938_v35  ;;  %v1912_v38 = vadd.f32 %v8809_v52, %v1899_v32  ;;  %v8144_v30 = vld [vmem:[#allocation11 + $0x6ec] sm:$0xf0]  ;;  %v6804_v39 = vld [vmem:[#allocation11 + $0x4c0] sm:$0xf] }
 0x15d   :  { %3790 = vmatpush.bf16.msra.mxu3 %v6677_v5  ;;  %3765 = vmatpush.bf16.msra.mxu1 %v6405_v10  ;;  %v7992_v5 = vld [vmem:[#allocation11 + $0x22c] sm:$0xf0]  ;;  %v6596_v10 = vld [vmem:[#allocation11 + $0x320] sm:$0xf]  ;;  %v7077_v45 = vor.u32 %v8144_v30, %v7076_v29 }
 0x15e   :  { %v1964_v6 = vadd.f32 %v1963_v46, %v1951_v53  ;;  %v6469_v22 = vor.u32 %v7992_v5, %v6468_v4  ;;  %v1925_v21 = vadd.f32 %v8811_v58, %v1912_v38  ;;  %v8020_v35 = vld [vmem:[#allocation11 + $0x30c] sm:$0xf0]  ;;  %v2189_v58 = vmax.f32 %v8799_v8, 0.0  ;;  %v6932_v43 = vld [vmem:[#allocation11 + $0x5c0] sm:$0xf]  ;;  %v8837_v5 = vld [vmem:[#allocation10] sm:$0xff] }
 0x15f   :  { %3778 = vmatpush.bf16.msra.mxu2 %v6533_v11  ;;  %3753 = vmatpush.bf16.msra.mxu0 %v6261_v17  ;;  %v8024_v11 = vld [vmem:[#allocation11 + $0x32c] sm:$0xf0]  ;;  %v6820_v17 = vld [vmem:[#allocation11 + $0x4e0] sm:$0xf]  ;;  %v6581_v50 = vor.u32 %v8020_v35, %v6580_v56  ;;  %v6805_v8 = vor.u32 %v8076_v40, %v6804_v39  ;;  %v466_v38 = vperm.slane %v8837_v5, 4 }
 0x160   :  { %v1965_v18 = vpop.f32.mrf.mxu2  ;;  %v1977_v23 = vadd.f32 %v1976_v51, %v1964_v6  ;;  %v6597_v27 = vor.u32 %v8024_v11, %v6596_v10  ;;  %v7060_v46 = vld [vmem:[#allocation11 + $0x6c0] sm:$0xf]  ;;  %v8827_v49 = vpack.c.bf16 %v2189_v58, %v2189_v58  ;;  %v6933_v51 = vor.u32 %v8108_v44, %v6932_v43  ;;  %v8068_v2 = vld [vmem:[#allocation11 + $0x48c] sm:$0xf0] }
 0x161   :  { %3791 = vmatpush.bf16.msra.mxu3 %v6661_v16  ;;  %3766 = vmatpush.bf16.msra.mxu1 %v6389_v25  ;;  %v7988_v16 = vld [vmem:[#allocation11 + $0x20c] sm:$0xf0]  ;;  %v6948_v25 = vld [vmem:[#allocation11 + $0x5e0] sm:$0xf]  ;;  %v7061_v60 = vor.u32 %v8140_v47, %v7060_v46 }
 0x162   :  { %v1978_v52 = vpop.f32.mrf.mxu3  ;;  %v6453_v34 = vor.u32 %v7988_v16, %v6452_v20  ;;  %v6788_v32 = vld [vmem:[#allocation11 + $0x4a0] sm:$0xf]  ;;  %v8100_v4 = vld [vmem:[#allocation11 + $0x58c] sm:$0xf0] }
 0x163   :  { %3779 = vmatpush.bf16.msra.mxu2 %v6517_v26  ;;  %3754 = vmatpush.bf16.msra.mxu0 %v6245_v37  ;;  %v8112_v26 = vld [vmem:[#allocation11 + $0x5ec] sm:$0xf0]  ;;  %v6916_v57 = vld [vmem:[#allocation11 + $0x5a0] sm:$0xf] }
 0x164   :  { %v6949_v37 = vor.u32 %v8112_v26, %v6948_v25  ;;  %v6917_v0 = vor.u32 %v8104_v59, %v6916_v57  ;;  %v6772_v1 = vld [vmem:[#allocation11 + $0x480] sm:$0xf]  ;;  %v8096_v14 = vld [vmem:[#allocation11 + $0x56c] sm:$0xf0] }
 0x165   :  { %3792 = vmatpush.bf16.msra.mxu3 %v6645_v36  ;;  %3767 = vmatpush.bf16.msra.mxu1 %v6373_v41  ;;  %v6821_v36 = vor.u32 %v8080_v24, %v6820_v17  ;;  %v2190_v41 = vmax.f32 %v1925_v21, 0.0  ;;  %v6900_v3 = vld [vmem:[#allocation11 + $0x580] sm:$0xf]  ;;  %v6773_v10 = vor.u32 %v8068_v2, %v6772_v1  ;;  %v8128_v17 = vld [vmem:[#allocation11 + $0x66c] sm:$0xf0] }
 0x166   :  { %v6901_v11 = vor.u32 %v8100_v4, %v6900_v3  ;;  %v6756_v19 = vld [vmem:[#allocation11 + $0x460] sm:$0xf]  ;;  %v8060_v25 = vld [vmem:[#allocation11 + $0x44c] sm:$0xf0] }
 0x167   :  { %3780 = vmatpush.bf16.msra.mxu2 %v6501_v42  ;;  %3755 = vmatpush.bf16.msra.mxu0 %v6229_v55  ;;  %v2191_v42 = vmax.f32 %v1977_v23, 0.0  ;;  %v8829_v53 = vpack.c.bf16 %v2190_v41, %v2190_v41  ;;  %v8072_v55 = vld [vmem:[#allocation11 + $0x4ac] sm:$0xf0]  ;;  %v6884_v13 = vld [vmem:[#allocation11 + $0x560] sm:$0xf] }
 0x168   :  { %v6789_v63 = vor.u32 %v8072_v55, %v6788_v32  ;;  %v7012_v16 = vld [vmem:[#allocation11 + $0x660] sm:$0xf]  ;;  %v6885_v23 = vor.u32 %v8096_v14, %v6884_v13  ;;  %v8088_v40 = vld [vmem:[#allocation11 + $0x52c] sm:$0xf0]  ;;  %v7950_v55 = vld [vmem:[#allocation11 + $0xe4] sm:$0xf] }
 0x169   :  { %3793 = vmatpush.bf16.msra.mxu3 %v6629_v54  ;;  %3768 = vmatpush.bf16.msra.mxu1 %v6357_v61  ;;  %v8831_v54 = vpack.c.bf16 %v2191_v42, %v2191_v42  ;;  %v7044_v61 = vld [vmem:[#allocation11 + $0x6a0] sm:$0xf]  ;;  %v7013_v29 = vor.u32 %v8128_v17, %v7012_v16  ;;  %v8120_v44 = vld [vmem:[#allocation11 + $0x62c] sm:$0xf0]  ;;  %v6294_v14 = vld [vmem:[#allocation11 + $0xd0] sm:$0xf0] }
 0x16a   :  { %v6740_v24 = vld [vmem:[#allocation11 + $0x440] sm:$0xf]  ;;  %v8084_v32 = vld [vmem:[#allocation11 + $0x50c] sm:$0xf0] }
 0x16b   :  { %3781 = vmatpush.bf16.msra.mxu2 %v6485_v62  ;;  %3756 = vmatpush.bf16.msra.mxu0 %v6213_v9  ;;  %v8136_v62 = vld [vmem:[#allocation11 + $0x6ac] sm:$0xf0]  ;;  %v6868_v26 = vld [vmem:[#allocation11 + $0x540] sm:$0xf]  ;;  %v6741_v56 = vor.u32 %v8060_v25, %v6740_v24 }
 0x16c   :  { %v7045_v6 = vor.u32 %v8136_v62, %v7044_v61  ;;  %v8132_v9 = vld [vmem:[#allocation11 + $0x68c] sm:$0xf0]  ;;  %v6996_v31 = vld [vmem:[#allocation11 + $0x640] sm:$0xf]  ;;  %v6310_v62 = vld [vmem:[#allocation11 + $0xf0] sm:$0xf0] }
 0x16d   :  { %3794 = vmatpush.bf16.msra.mxu3 %v6613_v7  ;;  %3769 = vmatpush.bf16.msra.mxu1 %v6341_v12  ;;  %v7028_v7 = vld [vmem:[#allocation11 + $0x680] sm:$0xf]  ;;  %v8176_v61 = vld [vmem:[#allocation11 + $0x7ec] sm:$0xf0] }
 0x16e   :  { %v1989_v12 = vpop.f32.mrf.mxu0  ;;  %v7029_v20 = vor.u32 %v8132_v9, %v7028_v7  ;;  %v6724_v58 = vld [vmem:[#allocation11 + $0x420] sm:$0xf]  ;;  %v8014_v9 = vld [vmem:[#allocation11 + $0x2e4] sm:$0xf]  ;;  %v8172_v13 = vld [vmem:[#allocation11 + $0x7cc] sm:$0xf0] }
 0x16f   :  { %3782 = vmatpush.bf16.msra.mxu2 %v6469_v22  ;;  %3757 = vmatpush.bf16.msra.mxu0 %v6197_v28  ;;  %v8064_v22 = vld [vmem:[#allocation11 + $0x46c] sm:$0xf0]  ;;  %v1990_v15 = vadd.f32 %v1989_v12, %v466_v38  ;;  %v6852_v39 = vld [vmem:[#allocation11 + $0x520] sm:$0xf]  ;;  %v7946_v12 = vld [vmem:[#allocation11 + $0xc4] sm:$0xf] }
 0x170   :  { %v2002_v18 = vpop.f32.mrf.mxu1  ;;  %v6757_v21 = vor.u32 %v8064_v22, %v6756_v19  ;;  %v6980_v43 = vld [vmem:[#allocation11 + $0x620] sm:$0xf]  ;;  %v6853_v47 = vor.u32 %v8088_v40, %v6852_v39  ;;  %v8116_v38 = vld [vmem:[#allocation11 + $0x60c] sm:$0xf0]  ;;  %v6297_v24 = vor.u32 %v7946_v12, %v6294_v14  ;;  %v7962_v12 = vld [vmem:[#allocation11 + $0x144] sm:$0xf] }
 0x171   :  { %3795 = vmatpush.bf16.msra.mxu3 %v6597_v27  ;;  %3770 = vmatpush.bf16.msra.mxu1 %v6325_v33  ;;  %v2003_v52 = vadd.f32 %v2002_v18, %v1990_v15  ;;  %v8092_v27 = vld [vmem:[#allocation11 + $0x54c] sm:$0xf0]  ;;  %v6981_v59 = vor.u32 %v8120_v44, %v6980_v43  ;;  %v6964_v4 = vld [vmem:[#allocation11 + $0x600] sm:$0xf]  ;;  %v7978_v15 = vld [vmem:[#allocation11 + $0x1c4] sm:$0xf] }
 0x172   :  { %3758 = vmatmul.bf16.vlgmr.msra.gmra.mxu0 %v8825_v48  ;;  %v8124_v33 = vld [vmem:[#allocation11 + $0x64c] sm:$0xf0]  ;;  %v6869_v35 = vor.u32 %v8092_v27, %v6868_v26  ;;  %v7188_v22 = vld [vmem:[#allocation11 + $0x7c0] sm:$0xf]  ;;  %v6422_v18 = vld [vmem:[#allocation11 + $0x1d0] sm:$0xf0] }
 0x173   :  { %3783 = vmatpush.bf16.msra.mxu2 %v6453_v34  ;;  %3802 = vmatpush.bf16.msrb.mxu0 %v6821_v36  ;;  %v6997_v42 = vor.u32 %v8124_v33, %v6996_v31  ;;  %v7189_v16 = vor.u32 %v8172_v13, %v7188_v22  ;;  %v6425_v25 = vor.u32 %v7978_v15, %v6422_v18  ;;  %v7942_v26 = vld [vmem:[#allocation11 + $0xa4] sm:$0xf]  ;;  %v7172_v27 = vld [vmem:[#allocation11 + $0x7a0] sm:$0xf]  ;;  %v6406_v31 = vld [vmem:[#allocation11 + $0x1b0] sm:$0xf0] }
 0x174   :  { %3771 = vmatmul.bf16.vlgmr.msra.gmra.mxu1 %v8827_v49  ;;  %v7156_v39 = vld [vmem:[#allocation11 + $0x780] sm:$0xf]  ;;  %v8164_v40 = vld [vmem:[#allocation11 + $0x78c] sm:$0xf0]  ;;  %v6390_v43 = vld [vmem:[#allocation11 + $0x190] sm:$0xf0] }
 0x175   :  { %3815 = vmatpush.bf16.msrb.mxu1 %v6949_v37  ;;  %3796 = vmatpush.bf16.msra.mxu3 %v6581_v50  ;;  %v8056_v37 = vld [vmem:[#allocation11 + $0x42c] sm:$0xf0]  ;;  %v6708_v50 = vld [vmem:[#allocation11 + $0x400] sm:$0xf]  ;;  %v7157_v44 = vor.u32 %v8164_v40, %v7156_v39  ;;  %v6358_v22 = vld [vmem:[#allocation11 + $0x150] sm:$0xf0] }
 0x176   :  { %3784 = vmatmul.bf16.vlgmr.msra.gmra.mxu2 %v8829_v53  ;;  %v1991_v36 = vpop.f32.mrf.mxu0  ;;  %v6725_v46 = vor.u32 %v8056_v37, %v6724_v58  ;;  %v7938_v37 = vld [vmem:[#allocation11 + $0x84] sm:$0xf]  ;;  %v6470_v40 = vld [vmem:[#allocation11 + $0x230] sm:$0xf0] }
 0x177   :  { %3828 = vmatpush.bf16.msrb.mxu2 %v7077_v45  ;;  %3803 = vmatpush.bf16.msrb.mxu0 %v6805_v8  ;;  %v8052_v8 = vld [vmem:[#allocation11 + $0x40c] sm:$0xf0]  ;;  %v7990_v39 = vld [vmem:[#allocation11 + $0x224] sm:$0xf] }
 0x178   :  { %3797 = vmatmul.bf16.vlgmr.msra.gmra.mxu3 %v8831_v54  ;;  %v2015_v28 = vpop.f32.mrf.mxu2  ;;  %v2004_v41 = vpop.f32.mrf.mxu1 }
 0x179   :  { %3816 = vmatpush.bf16.msrb.mxu1 %v6933_v51  ;;  %v2016_v34 = vadd.f32 %v2015_v28, %v2003_v52  ;;  %v6836_v51 = vld [vmem:[#allocation11 + $0x500] sm:$0xf]  ;;  %v8168_v28 = vld [vmem:[#allocation11 + $0x7ac] sm:$0xf0]  ;;  %v6262_v41 = vld [vmem:[#allocation11 + $0x90] sm:$0xf0] }
 0x17a   :  { %v2028_v30 = vpop.f32.mrf.mxu3  ;;  %v6837_v7 = vor.u32 %v8084_v32, %v6836_v51  ;;  %v7173_v33 = vor.u32 %v8168_v28, %v7172_v27  ;;  %v7934_v32 = vld [vmem:[#allocation11 + $0x64] sm:$0xf]  ;;  %v6214_v28 = vld [vmem:[#allocation11 + $0x30] sm:$0xf0] }
 0x17b   :  { %3829 = vmatpush.bf16.msrb.mxu2 %v7061_v60  ;;  %3804 = vmatpush.bf16.msrb.mxu0 %v6789_v63  ;;  %v2029_v45 = vadd.f32 %v2028_v30, %v2016_v34  ;;  %v7204_v60 = vld [vmem:[#allocation11 + $0x7e0] sm:$0xf]  ;;  %v7982_v63 = vld [vmem:[#allocation11 + $0x1e4] sm:$0xf] }
 0x17c   :  { %v7205_v2 = vor.u32 %v8176_v61, %v7204_v60  ;;  %v7974_v30 = vld [vmem:[#allocation11 + $0x1a4] sm:$0xf]  ;;  %v6246_v60 = vld [vmem:[#allocation11 + $0x70] sm:$0xf0] }
 0x17d   :  { %3817 = vmatpush.bf16.msrb.mxu1 %v6917_v0  ;;  %v6438_v0 = vld [vmem:[#allocation11 + $0x1f0] sm:$0xf0]  ;;  %v2192_v3 = vmax.f32 %v2029_v45, 0.0  ;;  %v6409_v36 = vor.u32 %v7974_v30, %v6406_v31  ;;  %v467_v45 = vperm.slane %v8837_v5, 5  ;;  %v7966_v61 = vld [vmem:[#allocation11 + $0x164] sm:$0xf] }
 0x17e   :  { %v6441_v19 = vor.u32 %v7982_v63, %v6438_v0  ;;  %3841 = vmatpush.bf16.msrb.mxu3 %v7205_v2  ;;  %v6342_v30 = vld [vmem:[#allocation11 + $0x130] sm:$0xf0] }
 0x17f   :  { %3830 = vmatpush.bf16.msrb.mxu2 %v7045_v6  ;;  %3805 = vmatpush.bf16.msrb.mxu0 %v6773_v10  ;;  %v6709_v6 = vor.u32 %v8052_v8, %v6708_v50  ;;  %v6566_v10 = vld [vmem:[#allocation11 + $0x2f0] sm:$0xf0]  ;;  %v8840_v17 = vpack.c.bf16 %v2192_v3, %v2192_v3  ;;  %v6265_v8 = vor.u32 %v7938_v37, %v6262_v41  ;;  %v7998_v3 = vld [vmem:[#allocation11 + $0x264] sm:$0xf] }
 0x180   :  { %v2017_v57 = vpop.f32.mrf.mxu2  ;;  %v6569_v52 = vor.u32 %v8014_v9, %v6566_v10  ;;  %v7930_v9 = vld [vmem:[#allocation11 + $0x44] sm:$0xf]  ;;  %v7124_v10 = vld [vmem:[#allocation11 + $0x740] sm:$0xf] }
 0x181   :  { %3818 = vmatpush.bf16.msrb.mxu1 %v6901_v11  ;;  %v6313_v11 = vor.u32 %v7950_v55, %v6310_v62  ;;  %v7140_v55 = vld [vmem:[#allocation11 + $0x760] sm:$0xf]  ;;  %v8160_v57 = vld [vmem:[#allocation11 + $0x76c] sm:$0xf0]  ;;  %v6374_v62 = vld [vmem:[#allocation11 + $0x170] sm:$0xf0] }
 0x182   :  { %v2030_v1 = vpop.f32.mrf.mxu3  ;;  %3842 = vmatpush.bf16.msrb.mxu3 %v7189_v16  ;;  %v7141_v63 = vor.u32 %v8160_v57, %v7140_v55  ;;  %v7994_v16 = vld [vmem:[#allocation11 + $0x244] sm:$0xf]  ;;  %v6473_v55 = vor.u32 %v7990_v39, %v6470_v40  ;;  %v6886_v40 = vld [vmem:[#allocation11 + $0x570] sm:$0xf0] }
 0x183   :  { %3831 = vmatpush.bf16.msrb.mxu2 %v7029_v20  ;;  %3806 = vmatpush.bf16.msrb.mxu0 %v6757_v21  ;;  %v6965_v20 = vor.u32 %v8116_v38, %v6964_v4  ;;  %v8010_v21 = vld [vmem:[#allocation11 + $0x2c4] sm:$0xf]  ;;  %v6502_v4 = vld [vmem:[#allocation11 + $0x270] sm:$0xf0] }
 0x184   :  { %v6505_v15 = vor.u32 %v7998_v3, %v6502_v4  ;;  %v7954_v37 = vld [vmem:[#allocation11 + $0x104] sm:$0xf] }
 0x185   :  { %3819 = vmatpush.bf16.msrb.mxu1 %v6885_v23  ;;  %v6550_v23 = vld [vmem:[#allocation11 + $0x2d0] sm:$0xf0]  ;;  %v8094_v39 = vld [vmem:[#allocation11 + $0x564] sm:$0xf] }
 0x186   :  { %v6553_v34 = vor.u32 %v8010_v21, %v6550_v23  ;;  %3843 = vmatpush.bf16.msrb.mxu3 %v7173_v33  ;;  %v6361_v23 = vor.u32 %v7962_v12, %v6358_v22 }
 0x187   :  { %3832 = vmatpush.bf16.msrb.mxu2 %v7013_v29  ;;  %3807 = vmatpush.bf16.msrb.mxu0 %v6741_v56  ;;  %v6278_v29 = vld [vmem:[#allocation11 + $0xb0] sm:$0xf0]  ;;  %v8006_v56 = vld [vmem:[#allocation11 + $0x2a4] sm:$0xf] }
 0x188   :  { %v6281_v58 = vor.u32 %v7942_v26, %v6278_v29  ;;  %v8152_v26 = vld [vmem:[#allocation11 + $0x72c] sm:$0xf0]  ;;  %v7958_v29 = vld [vmem:[#allocation11 + $0x124] sm:$0xf] }
 0x189   :  { %3820 = vmatpush.bf16.msrb.mxu1 %v6869_v35  ;;  %v6534_v35 = vld [vmem:[#allocation11 + $0x2b0] sm:$0xf0] }
 0x18a   :  { %v6537_v50 = vor.u32 %v8006_v56, %v6534_v35  ;;  %3844 = vmatpush.bf16.msrb.mxu3 %v7157_v44  ;;  %v8078_v44 = vld [vmem:[#allocation11 + $0x4e4] sm:$0xf] }
 0x18b   :  { %3833 = vmatpush.bf16.msrb.mxu2 %v6997_v42  ;;  %3808 = vmatpush.bf16.msrb.mxu0 %v6725_v46  ;;  %v7970_v42 = vld [vmem:[#allocation11 + $0x184] sm:$0xf] }
 0x18c   :  { %v8002_v46 = vld [vmem:[#allocation11 + $0x284] sm:$0xf]  ;;  %v6393_v51 = vor.u32 %v7970_v42, %v6390_v43  ;;  %v6345_v42 = vor.u32 %v7958_v29, %v6342_v30  ;;  %v6326_v43 = vld [vmem:[#allocation11 + $0x110] sm:$0xf0] }
 0x18d   :  { %3821 = vmatpush.bf16.msrb.mxu1 %v6853_v47  ;;  %v6518_v47 = vld [vmem:[#allocation11 + $0x290] sm:$0xf0]  ;;  %v8098_v29 = vld [vmem:[#allocation11 + $0x584] sm:$0xf] }
 0x18e   :  { %v6521_v2 = vor.u32 %v8002_v46, %v6518_v47  ;;  %3845 = vmatpush.bf16.msrb.mxu3 %v7141_v63  ;;  %v6822_v46 = vld [vmem:[#allocation11 + $0x4f0] sm:$0xf0]  ;;  %v8110_v47 = vld [vmem:[#allocation11 + $0x5e4] sm:$0xf] }
 0x18f   :  { %3834 = vmatpush.bf16.msrb.mxu2 %v6981_v59  ;;  %3809 = vmatpush.bf16.msrb.mxu0 %v6709_v6  ;;  %v2041_v59 = vpop.f32.mrf.mxu0  ;;  %v6249_v6 = vor.u32 %v7934_v32, %v6246_v60  ;;  %v6694_v60 = vld [vmem:[#allocation11 + $0x3f0] sm:$0xf0]  ;;  %v6825_v3 = vor.u32 %v8078_v44, %v6822_v46  ;;  %v6889_v46 = vor.u32 %v8094_v39, %v6886_v40  ;;  %v6300_v39 = vld [vmem:[#allocation11 + $0xc8] sm:$0xf] }
 0x190   :  { %v2042_v0 = vadd.f32 %v2041_v59, %v467_v45  ;;  %v2054_v1 = vpop.f32.mrf.mxu1  ;;  %v7092_v45 = vld [vmem:[#allocation11 + $0x700] sm:$0xf]  ;;  %v8046_v59 = vld [vmem:[#allocation11 + $0x3e4] sm:$0xf]  ;;  %v6454_v63 = vld [vmem:[#allocation11 + $0x210] sm:$0xf0] }
 0x191   :  { %3822 = vmatpush.bf16.msrb.mxu1 %v6837_v7  ;;  %v6377_v7 = vor.u32 %v7966_v61, %v6374_v62  ;;  %v7986_v62 = vld [vmem:[#allocation11 + $0x204] sm:$0xf]  ;;  %v6902_v30 = vld [vmem:[#allocation11 + $0x590] sm:$0xf0] }
 0x192   :  { %3810 = vmatmul.bf16.vlgmr.msrb.gmra.mxu0 %v8840_v17  ;;  %v2055_v38 = vadd.f32 %v2054_v1, %v2042_v0  ;;  %v6697_v0 = vor.u32 %v8046_v59, %v6694_v60  ;;  %v6870_v59 = vld [vmem:[#allocation11 + $0x550] sm:$0xf0] }
 0x193   :  { %3854 = vmatpush.bf16.msra.mxu0 %v6313_v11  ;;  %3835 = vmatpush.bf16.msrb.mxu2 %v6965_v20  ;;  %v8156_v11 = vld [vmem:[#allocation11 + $0x74c] sm:$0xf0] }
 0x194   :  { %v7125_v13 = vor.u32 %v8156_v11, %v7124_v10  ;;  %v6457_v10 = vor.u32 %v7986_v62, %v6454_v63  ;;  %v8042_v11 = vld [vmem:[#allocation11 + $0x3c4] sm:$0xf] }
 0x195   :  { %3867 = vmatpush.bf16.msra.mxu1 %v6441_v19  ;;  %v6230_v19 = vld [vmem:[#allocation11 + $0x50] sm:$0xf0] }
 0x196   :  { %v6233_v21 = vor.u32 %v7930_v9, %v6230_v19  ;;  %3846 = vmatpush.bf16.msrb.mxu3 %v7125_v13  ;;  %v6934_v9 = vld [vmem:[#allocation11 + $0x5d0] sm:$0xf0] }
 0x197   :  { %3880 = vmatpush.bf16.msra.mxu2 %v6569_v52  ;;  %3855 = vmatpush.bf16.msra.mxu0 %v6297_v24  ;;  %v6486_v52 = vld [vmem:[#allocation11 + $0x250] sm:$0xf0]  ;;  %v7926_v24 = vld [vmem:[#allocation11 + $0x24] sm:$0xf]  ;;  %v2043_v31 = vpop.f32.mrf.mxu0 }
 0x198   :  { %v2067_v14 = vpop.f32.mrf.mxu2  ;;  %v6489_v56 = vor.u32 %v7994_v16, %v6486_v52  ;;  %v6217_v41 = vor.u32 %v7926_v24, %v6214_v28  ;;  %v6678_v19 = vld [vmem:[#allocation11 + $0x3d0] sm:$0xf0]  ;;  %v8102_v16 = vld [vmem:[#allocation11 + $0x5a4] sm:$0xf] }
 0x199   :  { %3868 = vmatpush.bf16.msra.mxu1 %v6425_v25  ;;  %v2068_v18 = vadd.f32 %v2067_v14, %v2055_v38  ;;  %v7108_v25 = vld [vmem:[#allocation11 + $0x720] sm:$0xf]  ;;  %v8074_v38 = vld [vmem:[#allocation11 + $0x4c4] sm:$0xf]  ;;  %v6681_v12 = vor.u32 %v8042_v11, %v6678_v19  ;;  %v6918_v52 = vld [vmem:[#allocation11 + $0x5b0] sm:$0xf0] }
 0x19a   :  { %v2080_v20 = vpop.f32.mrf.mxu3  ;;  %v7109_v33 = vor.u32 %v8152_v26, %v7108_v25  ;;  %v8070_v14 = vld [vmem:[#allocation11 + $0x4a4] sm:$0xf]  ;;  %v6921_v24 = vor.u32 %v8102_v16, %v6918_v52  ;;  %v6774_v28 = vld [vmem:[#allocation11 + $0x490] sm:$0xf0] }
 0x19b   :  { %3881 = vmatpush.bf16.msra.mxu2 %v6553_v34  ;;  %3856 = vmatpush.bf16.msra.mxu0 %v6281_v58  ;;  %v2081_v27 = vadd.f32 %v2080_v20, %v2068_v18  ;;  %v2056_v34 = vpop.f32.mrf.mxu1  ;;  %v7922_v58 = vld [vmem:[#allocation11 + $0x4] sm:$0xf]  ;;  %v6662_v18 = vld [vmem:[#allocation11 + $0x3b0] sm:$0xf0] }
 0x19c   :  { %3847 = vmatpush.bf16.msrb.mxu3 %v7109_v33  ;;  %v6790_v20 = vld [vmem:[#allocation11 + $0x4b0] sm:$0xf0]  ;;  %v8066_v25 = vld [vmem:[#allocation11 + $0x484] sm:$0xf]  ;;  %v468_v33 = vperm.slane %v8837_v5, 6 }
 0x19d   :  { %3869 = vmatpush.bf16.msra.mxu1 %v6409_v36  ;;  %v2193_v35 = vmax.f32 %v2081_v27, 0.0  ;;  %v6198_v36 = vld [vmem:[#allocation11 + $0x10] sm:$0xf0]  ;;  %v8034_v26 = vld [vmem:[#allocation11 + $0x384] sm:$0xf]  ;;  %v6777_v34 = vor.u32 %v8066_v25, %v6774_v28 }
 0x19e   :  { %v6201_v1 = vor.u32 %v7922_v58, %v6198_v36  ;;  %v6646_v27 = vld [vmem:[#allocation11 + $0x390] sm:$0xf0]  ;;  %v8030_v58 = vld [vmem:[#allocation11 + $0x364] sm:$0xf]  ;;  %v6444_v28 = vld [vmem:[#allocation11 + $0x1e8] sm:$0xf] }
 0x19f   :  { %3882 = vmatpush.bf16.msra.mxu2 %v6537_v50  ;;  %3857 = vmatpush.bf16.msra.mxu0 %v6265_v8  ;;  %v8844_v50 = vpack.c.bf16 %v2193_v35, %v2193_v35  ;;  %v8148_v8 = vld [vmem:[#allocation11 + $0x70c] sm:$0xf0]  ;;  %v6649_v31 = vor.u32 %v8034_v26, %v6646_v27  ;;  %v8062_v35 = vld [vmem:[#allocation11 + $0x464] sm:$0xf]  ;;  %v6630_v36 = vld [vmem:[#allocation11 + $0x370] sm:$0xf0] }
 0x1a0   :  { %v2069_v32 = vpop.f32.mrf.mxu2  ;;  %v7093_v57 = vor.u32 %v8148_v8, %v7092_v45  ;;  %v8026_v8 = vld [vmem:[#allocation11 + $0x344] sm:$0xf]  ;;  %v7953_v27 = vld [vmem:[#allocation11 + $0xf4] sm:$0xf0] }
 0x1a1   :  { %3870 = vmatpush.bf16.msra.mxu1 %v6393_v51  ;;  %v6950_v51 = vld [vmem:[#allocation11 + $0x5f0] sm:$0xf0]  ;;  %v8142_v19 = vld [vmem:[#allocation11 + $0x6e4] sm:$0xf] }
 0x1a2   :  { %3823 = vmatmul.bf16.vlgmr.msrb.gmra.mxu1 %v8844_v50  ;;  %v2082_v61 = vpop.f32.mrf.mxu3  ;;  %v6953_v4 = vor.u32 %v8110_v47, %v6950_v51  ;;  %3848 = vmatpush.bf16.msrb.mxu3 %v7093_v57  ;;  %v8058_v47 = vld [vmem:[#allocation11 + $0x444] sm:$0xf]  ;;  %v6614_v51 = vld [vmem:[#allocation11 + $0x350] sm:$0xf0] }
 0x1a3   :  { %3883 = vmatpush.bf16.msra.mxu2 %v6521_v2  ;;  %3858 = vmatpush.bf16.msra.mxu0 %v6249_v6  ;;  %v6329_v2 = vor.u32 %v7954_v37, %v6326_v43  ;;  %v6806_v6 = vld [vmem:[#allocation11 + $0x4d0] sm:$0xf0]  ;;  %v8090_v57 = vld [vmem:[#allocation11 + $0x544] sm:$0xf]  ;;  %v6617_v60 = vor.u32 %v8026_v8, %v6614_v51  ;;  %v6284_v8 = vld [vmem:[#allocation11 + $0xa8] sm:$0xf] }
 0x1a4   :  { %v6809_v22 = vor.u32 %v8074_v38, %v6806_v6  ;;  %v6758_v37 = vld [vmem:[#allocation11 + $0x470] sm:$0xf0]  ;;  %v8086_v6 = vld [vmem:[#allocation11 + $0x524] sm:$0xf] }
 0x1a5   :  { %3871 = vmatpush.bf16.msra.mxu1 %v6377_v7  ;;  %v8106_v7 = vld [vmem:[#allocation11 + $0x5c4] sm:$0xf]  ;;  %v6761_v45 = vor.u32 %v8062_v35, %v6758_v37  ;;  %v6726_v38 = vld [vmem:[#allocation11 + $0x430] sm:$0xf0] }
 0x1a6   :  { %3893 = vmatpush.bf16.msra.mxu3 %v6697_v0  ;;  %v6937_v13 = vor.u32 %v8106_v7, %v6934_v9  ;;  %v6854_v7 = vld [vmem:[#allocation11 + $0x530] sm:$0xf0]  ;;  %v8082_v16 = vld [vmem:[#allocation11 + $0x504] sm:$0xf] }
 0x1a7   :  { %3884 = vmatpush.bf16.msra.mxu2 %v6505_v15  ;;  %3859 = vmatpush.bf16.msra.mxu0 %v6233_v21  ;;  %v8038_v15 = vld [vmem:[#allocation11 + $0x3a4] sm:$0xf] }
 0x1a8   :  { %v6665_v21 = vor.u32 %v8038_v15, %v6662_v18  ;;  %v8018_v52 = vld [vmem:[#allocation11 + $0x304] sm:$0xf] }
 0x1a9   :  { %3872 = vmatpush.bf16.msra.mxu1 %v6361_v23  ;;  %v6793_v23 = vor.u32 %v8070_v14, %v6790_v20  ;;  %v6710_v14 = vld [vmem:[#allocation11 + $0x410] sm:$0xf0]  ;;  %v6857_v20 = vor.u32 %v8086_v6, %v6854_v7 }
 0x1aa   :  { %3894 = vmatpush.bf16.msra.mxu3 %v6681_v12  ;;  %v7078_v12 = vld [vmem:[#allocation11 + $0x6f0] sm:$0xf0] }
 0x1ab   :  { %3885 = vmatpush.bf16.msra.mxu2 %v6489_v56  ;;  %3860 = vmatpush.bf16.msra.mxu0 %v6217_v41  ;;  %v6905_v56 = vor.u32 %v8098_v29, %v6902_v30  ;;  %v6633_v41 = vor.u32 %v8030_v58, %v6630_v36  ;;  %v7081_v26 = vor.u32 %v8142_v19, %v7078_v12  ;;  %v7985_v29 = vld [vmem:[#allocation11 + $0x1f4] sm:$0xf0]  ;;  %v7014_v6 = vld [vmem:[#allocation11 + $0x670] sm:$0xf0]  ;;  %v6380_v19 = vld [vmem:[#allocation11 + $0x168] sm:$0xf] }
 0x1ac   :  { %v6445_v37 = vor.u32 %v7985_v29, %v6444_v28  ;;  %v7969_v12 = vld [vmem:[#allocation11 + $0x174] sm:$0xf0]  ;;  %v8118_v28 = vld [vmem:[#allocation11 + $0x624] sm:$0xf]  ;;  %v6982_v29 = vld [vmem:[#allocation11 + $0x630] sm:$0xf0] }
 0x1ad   :  { %3873 = vmatpush.bf16.msra.mxu1 %v6345_v42 }
 0x1ae   :  { %3895 = vmatpush.bf16.msra.mxu3 %v6665_v21  ;;  %v2093_v42 = vpop.f32.mrf.mxu0  ;;  %v6838_v21 = vld [vmem:[#allocation11 + $0x510] sm:$0xf0] }
 0x1af   :  { %3886 = vmatpush.bf16.msra.mxu2 %v6473_v55  ;;  %3861 = vmatpush.bf16.msra.mxu0 %v6201_v1  ;;  %v2094_v43 = vadd.f32 %v2093_v42, %v468_v33  ;;  %v6742_v55 = vld [vmem:[#allocation11 + $0x450] sm:$0xf0]  ;;  %v6873_v1 = vor.u32 %v8090_v57, %v6870_v59  ;;  %v8138_v33 = vld [vmem:[#allocation11 + $0x6c4] sm:$0xf]  ;;  %v6841_v35 = vor.u32 %v8082_v16, %v6838_v21  ;;  %v6428_v42 = vld [vmem:[#allocation11 + $0x1c8] sm:$0xf] }
 0x1b0   :  { %v2106_v44 = vpop.f32.mrf.mxu1  ;;  %v6745_v0 = vor.u32 %v8058_v47, %v6742_v55  ;;  %v6412_v55 = vld [vmem:[#allocation11 + $0x1a8] sm:$0xf]  ;;  %v7977_v57 = vld [vmem:[#allocation11 + $0x1b4] sm:$0xf0]  ;;  %v8130_v59 = vld [vmem:[#allocation11 + $0x684] sm:$0xf]  ;;  %v6381_v16 = vor.u32 %v7969_v12, %v6380_v19 }
 0x1b1   :  { %3874 = vmatpush.bf16.msra.mxu1 %v6329_v2  ;;  %v2107_v32 = vadd.f32 %v2106_v44, %v2094_v43  ;;  %v8054_v2 = vld [vmem:[#allocation11 + $0x424] sm:$0xf]  ;;  %v7981_v43 = vld [vmem:[#allocation11 + $0x1d4] sm:$0xf0] }
 0x1b2   :  { %3862 = vmatmul.bf16.vlgmr.msra.gmra.mxu0 %v8825_v48  ;;  %3896 = vmatpush.bf16.msra.mxu3 %v6649_v31  ;;  %v6729_v18 = vor.u32 %v8054_v2, %v6726_v38  ;;  %v8134_v44 = vld [vmem:[#allocation11 + $0x6a4] sm:$0xf]  ;;  %v6429_v47 = vor.u32 %v7981_v43, %v6428_v42  ;;  %v6396_v2 = vld [vmem:[#allocation11 + $0x188] sm:$0xf]  ;;  %v7933_v21 = vld [vmem:[#allocation11 + $0x54] sm:$0xf0] }
 0x1b3   :  { %3906 = vmatpush.bf16.msrb.mxu0 %v6825_v3  ;;  %3887 = vmatpush.bf16.msra.mxu2 %v6457_v10  ;;  %v8022_v3 = vld [vmem:[#allocation11 + $0x324] sm:$0xf]  ;;  %v6966_v43 = vld [vmem:[#allocation11 + $0x610] sm:$0xf0]  ;;  %v8013_v19 = vld [vmem:[#allocation11 + $0x2d4] sm:$0xf0] }
 0x1b4   :  { %3875 = vmatmul.bf16.vlgmr.msra.gmra.mxu1 %v8827_v49  ;;  %v8126_v38 = vld [vmem:[#allocation11 + $0x664] sm:$0xf] }
 0x1b5   :  { %3919 = vmatpush.bf16.msrb.mxu1 %v6953_v4  ;;  %v6598_v4 = vld [vmem:[#allocation11 + $0x330] sm:$0xf0]  ;;  %v8114_v42 = vld [vmem:[#allocation11 + $0x604] sm:$0xf] }
 0x1b6   :  { %3897 = vmatpush.bf16.msra.mxu3 %v6633_v41  ;;  %v6601_v9 = vor.u32 %v8022_v3, %v6598_v4  ;;  %v2095_v11 = vpop.f32.mrf.mxu0  ;;  %v7949_v41 = vld [vmem:[#allocation11 + $0xd4] sm:$0xf0]  ;;  %v469_v4 = vperm.slane %v8837_v5, 7 }
 0x1b7   :  { %3907 = vmatpush.bf16.msrb.mxu0 %v6809_v22  ;;  %v7973_v3 = vld [vmem:[#allocation11 + $0x194] sm:$0xf0] }
 0x1b8   :  { %v2119_v61 = vpop.f32.mrf.mxu2  ;;  %v2108_v22 = vpop.f32.mrf.mxu1  ;;  %v7937_v11 = vld [vmem:[#allocation11 + $0x74] sm:$0xf0] }
 0x1b9   :  { %3920 = vmatpush.bf16.msrb.mxu1 %v6937_v13  ;;  %v2120_v62 = vadd.f32 %v2119_v61, %v2107_v32  ;;  %v8050_v13 = vld [vmem:[#allocation11 + $0x404] sm:$0xf]  ;;  %v7945_v32 = vld [vmem:[#allocation11 + $0xb4] sm:$0xf0] }
 0x1ba   :  { %v2132_v63 = vpop.f32.mrf.mxu3  ;;  %3898 = vmatpush.bf16.msra.mxu3 %v6617_v60  ;;  %v7030_v60 = vld [vmem:[#allocation11 + $0x690] sm:$0xf0]  ;;  %v6285_v61 = vor.u32 %v7945_v32, %v6284_v8  ;;  %v8017_v32 = vld [vmem:[#allocation11 + $0x2f4] sm:$0xf0] }
 0x1bb   :  { %3908 = vmatpush.bf16.msrb.mxu0 %v6793_v23  ;;  %v2133_v10 = vadd.f32 %v2132_v63, %v2120_v62  ;;  %v6316_v23 = vld [vmem:[#allocation11 + $0xe8] sm:$0xf]  ;;  %v6413_v62 = vor.u32 %v7977_v57, %v6412_v55  ;;  %v7925_v57 = vld [vmem:[#allocation11 + $0x14] sm:$0xf0] }
 0x1bc   :  { %v6317_v36 = vor.u32 %v7953_v27, %v6316_v23  ;;  %v6268_v63 = vld [vmem:[#allocation11 + $0x88] sm:$0xf] }
 0x1bd   :  { %3921 = vmatpush.bf16.msrb.mxu1 %v6921_v24  ;;  %v2194_v15 = vmax.f32 %v2133_v10, 0.0  ;;  %v6582_v24 = vld [vmem:[#allocation11 + $0x310] sm:$0xf0]  ;;  %v6252_v10 = vld [vmem:[#allocation11 + $0x68] sm:$0xf] }
 0x1be   :  { %3899 = vmatpush.bf16.msra.mxu3 %v6601_v9  ;;  %v6585_v30 = vor.u32 %v8018_v52, %v6582_v24  ;;  %v6397_v9 = vor.u32 %v7973_v3, %v6396_v2  ;;  %v6253_v5 = vor.u32 %v7937_v11, %v6252_v10  ;;  %v6236_v52 = vld [vmem:[#allocation11 + $0x48] sm:$0xf]  ;;  %v7965_v24 = vld [vmem:[#allocation11 + $0x154] sm:$0xf0]  ;;  %v7190_v10 = vld [vmem:[#allocation11 + $0x7d0] sm:$0xf0] }
 0x1bf   :  { %3909 = vmatpush.bf16.msrb.mxu0 %v6777_v34  ;;  %v8850_v25 = vpack.c.bf16 %v2194_v15, %v2194_v15  ;;  %v7062_v34 = vld [vmem:[#allocation11 + $0x6d0] sm:$0xf0]  ;;  %v6364_v23 = vld [vmem:[#allocation11 + $0x148] sm:$0xf] }
 0x1c0   :  { %v2121_v31 = vpop.f32.mrf.mxu2  ;;  %v7065_v40 = vor.u32 %v8138_v33, %v7062_v34  ;;  %v6220_v33 = vld [vmem:[#allocation11 + $0x28] sm:$0xf] }
 0x1c1   :  { %3922 = vmatpush.bf16.msrb.mxu1 %v6905_v56  ;;  %v6713_v56 = vor.u32 %v8050_v13, %v6710_v14  ;;  %3836 = vmatmul.bf16.vlgmr.msrb.gmra.mxu2 %v8850_v25  ;;  %v7017_v14 = vor.u32 %v8126_v38, %v7014_v6  ;;  %v6365_v31 = vor.u32 %v7965_v24, %v6364_v23  ;;  %v6204_v55 = vld [vmem:[#allocation11 + $0x8] sm:$0xf]  ;;  %v8170_v38 = vld [vmem:[#allocation11 + $0x7c4] sm:$0xf]  ;;  %v7174_v23 = vld [vmem:[#allocation11 + $0x7b0] sm:$0xf0] }
 0x1c2   :  { %v2134_v58 = vpop.f32.mrf.mxu3  ;;  %3900 = vmatpush.bf16.msra.mxu3 %v6585_v30  ;;  %3932 = vmatpush.bf16.msrb.mxu2 %v7081_v26  ;;  %v6237_v30 = vor.u32 %v7933_v21, %v6236_v52  ;;  %v6956_v3 = vld [vmem:[#allocation11 + $0x5e8] sm:$0xf]  ;;  %v8109_v52 = vld [vmem:[#allocation11 + $0x5d4] sm:$0xf0]  ;;  %v8166_v21 = vld [vmem:[#allocation11 + $0x7a4] sm:$0xf] }
 0x1c3   :  { %3910 = vmatpush.bf16.msrb.mxu0 %v6761_v45  ;;  %v7046_v45 = vld [vmem:[#allocation11 + $0x6b0] sm:$0xf0]  ;;  %v6348_v58 = vld [vmem:[#allocation11 + $0x128] sm:$0xf] }
 0x1c4   :  { %v7049_v51 = vor.u32 %v8134_v44, %v7046_v45  ;;  %v8174_v44 = vld [vmem:[#allocation11 + $0x7e4] sm:$0xf]  ;;  %v7206_v45 = vld [vmem:[#allocation11 + $0x7f0] sm:$0xf0]  ;;  %v6556_v11 = vld [vmem:[#allocation11 + $0x2c8] sm:$0xf] }
 0x1c5   :  { %3923 = vmatpush.bf16.msrb.mxu1 %v6889_v46  ;;  %v6301_v46 = vor.u32 %v7949_v41, %v6300_v39  ;;  %v6985_v41 = vor.u32 %v8118_v28, %v6982_v29  ;;  %v6540_v24 = vld [vmem:[#allocation11 + $0x2a8] sm:$0xf] }
 0x1c6   :  { %3933 = vmatpush.bf16.msrb.mxu2 %v7065_v40  ;;  %v6796_v29 = vld [vmem:[#allocation11 + $0x4a8] sm:$0xf] }
 0x1c7   :  { %3911 = vmatpush.bf16.msrb.mxu0 %v6745_v0  ;;  %v7033_v0 = vor.u32 %v8130_v59, %v7030_v60  ;;  %v6332_v59 = vld [vmem:[#allocation11 + $0x108] sm:$0xf]  ;;  %v7957_v60 = vld [vmem:[#allocation11 + $0x114] sm:$0xf0] }
 0x1c9   :  { %3924 = vmatpush.bf16.msrb.mxu1 %v6873_v1  ;;  %v7941_v1 = vld [vmem:[#allocation11 + $0x94] sm:$0xf0] }
 0x1ca   :  { %3934 = vmatpush.bf16.msrb.mxu2 %v7049_v51  ;;  %v6269_v7 = vor.u32 %v7941_v1, %v6268_v63  ;;  %v6572_v51 = vld [vmem:[#allocation11 + $0x2e8] sm:$0xf]  ;;  %v7209_v1 = vor.u32 %v8174_v44, %v7206_v45  ;;  %v8069_v44 = vld [vmem:[#allocation11 + $0x494] sm:$0xf0] }
 0x1cb   :  { %3912 = vmatpush.bf16.msrb.mxu0 %v6729_v18  ;;  %v8122_v18 = vld [vmem:[#allocation11 + $0x644] sm:$0xf]  ;;  %v6828_v63 = vld [vmem:[#allocation11 + $0x4e8] sm:$0xf]  ;;  %v6573_v2 = vor.u32 %v8017_v32, %v6572_v51  ;;  %v7142_v32 = vld [vmem:[#allocation11 + $0x770] sm:$0xf0] }
 0x1cc   :  { %v8158_v51 = vld [vmem:[#allocation11 + $0x764] sm:$0xf] }
 0x1cd   :  { %3925 = vmatpush.bf16.msrb.mxu1 %v6857_v20  ;;  %v6998_v20 = vld [vmem:[#allocation11 + $0x650] sm:$0xf0] }
 0x1ce   :  { %3935 = vmatpush.bf16.msrb.mxu2 %v7033_v0  ;;  %v7001_v27 = vor.u32 %v8122_v18, %v6998_v20  ;;  %v8081_v0 = vld [vmem:[#allocation11 + $0x4f4] sm:$0xf0]  ;;  %v7193_v20 = vor.u32 %v8170_v38, %v7190_v10  ;;  %v6492_v10 = vld [vmem:[#allocation11 + $0x248] sm:$0xf] }
 0x1cf   :  { %3913 = vmatpush.bf16.msrb.mxu0 %v6713_v56  ;;  %v2145_v22 = vpop.f32.mrf.mxu0  ;;  %v8077_v18 = vld [vmem:[#allocation11 + $0x4d4] sm:$0xf0] }
 0x1d0   :  { %v2146_v15 = vadd.f32 %v2145_v22, %v469_v4  ;;  %v8113_v4 = vld [vmem:[#allocation11 + $0x5f4] sm:$0xf0] }
 0x1d1   :  { %3926 = vmatpush.bf16.msrb.mxu1 %v6841_v35  ;;  %v2158_v13 = vpop.f32.mrf.mxu1  ;;  %3888 = vmatmul.bf16.vlgmr.msra.gmra.mxu2 %v8829_v53  ;;  %v7929_v35 = vld [vmem:[#allocation11 + $0x34] sm:$0xf0] }
 0x1d2   :  { %3914 = vmatmul.bf16.vlgmr.msrb.gmra.mxu0 %v8840_v17  ;;  %v2159_v26 = vadd.f32 %v2158_v13, %v2146_v15  ;;  %3936 = vmatpush.bf16.msrb.mxu2 %v7017_v14  ;;  %v6829_v13 = vor.u32 %v8081_v0, %v6828_v63  ;;  %v6957_v14 = vor.u32 %v8113_v4, %v6956_v3  ;;  %v6812_v15 = vld [vmem:[#allocation11 + $0x4c8] sm:$0xf]  ;;  %v8097_v3 = vld [vmem:[#allocation11 + $0x574] sm:$0xf0]  ;;  %v8154_v4 = vld [vmem:[#allocation11 + $0x744] sm:$0xf] }
 0x1d3   :  { %3958 = vmatpush.bf16.msra.mxu0 %v6317_v36  ;;  %v7961_v36 = vld [vmem:[#allocation11 + $0x134] sm:$0xf0]  ;;  %v7145_v0 = vor.u32 %v8158_v51, %v7142_v32  ;;  %v6716_v32 = vld [vmem:[#allocation11 + $0x408] sm:$0xf] }
 0x1d4   :  { %3927 = vmatmul.bf16.vlgmr.msrb.gmra.mxu1 %v8844_v50  ;;  %v6349_v8 = vor.u32 %v7961_v36, %v6348_v58  ;;  %v8864_v58 = vld [vmem:[%s8980_s6] sm:$0xf]  ;;  %v7158_v36 = vld [vmem:[#allocation11 + $0x790] sm:$0xf0] }
 0x1d5   :  { %3971 = vmatpush.bf16.msra.mxu1 %v6445_v37 }
 0x1d6   :  { %3937 = vmatpush.bf16.msrb.mxu2 %v7001_v27  ;;  %v6813_v27 = vor.u32 %v8077_v18, %v6812_v15 }
 0x1d7   :  { %3959 = vmatpush.bf16.msra.mxu0 %v6301_v46  ;;  %v2147_v39 = vpop.f32.mrf.mxu0 }
 0x1d8   :  { %v8005_v39 = vld [vmem:[#allocation11 + $0x294] sm:$0xf0] }
 0x1d9   :  { %3972 = vmatpush.bf16.msra.mxu1 %v6429_v47  ;;  %v2171_v34 = vpop.f32.mrf.mxu2  ;;  %v2160_v40 = vpop.f32.mrf.mxu1  ;;  %v6221_v47 = vor.u32 %v7929_v35, %v6220_v33  ;;  %v7177_v33 = vor.u32 %v8166_v21, %v7174_v23  ;;  %v8162_v35 = vld [vmem:[#allocation11 + $0x784] sm:$0xf]  ;;  %v6476_v21 = vld [vmem:[#allocation11 + $0x228] sm:$0xf]  ;;  %v7993_v23 = vld [vmem:[#allocation11 + $0x234] sm:$0xf0] }
 0x1da   :  { %v2172_v37 = vadd.f32 %v2171_v34, %v2159_v26  ;;  %3938 = vmatpush.bf16.msrb.mxu2 %v6985_v41  ;;  %v8009_v26 = vld [vmem:[#allocation11 + $0x2b4] sm:$0xf0]  ;;  %v7161_v45 = vor.u32 %v8162_v35, %v7158_v36  ;;  %v8146_v35 = vld [vmem:[#allocation11 + $0x704] sm:$0xf]  ;;  %v7094_v36 = vld [vmem:[#allocation11 + $0x710] sm:$0xf0] }
 0x1db   :  { %3960 = vmatpush.bf16.msra.mxu0 %v6285_v61  ;;  %v2184_v56 = vpop.f32.mrf.mxu3  ;;  %v6541_v34 = vor.u32 %v8009_v26, %v6540_v24 }
 0x1dc   :  { %v2185_v46 = vadd.f32 %v2184_v56, %v2172_v37  ;;  %v8105_v56 = vld [vmem:[#allocation11 + $0x5b4] sm:$0xf0]  ;;  %v6524_v37 = vld [vmem:[#allocation11 + $0x288] sm:$0xf] }
 0x1dd   :  { %3973 = vmatpush.bf16.msra.mxu1 %v6413_v62  ;;  %v6969_v62 = vor.u32 %v8114_v42, %v6966_v43  ;;  %v2462_v42 = vperm.slane %v8864_v58, 0  ;;  %v6780_v43 = vld [vmem:[#allocation11 + $0x488] sm:$0xf] }
 0x1de   :  { %v2195_v61 = vmax.f32 %v2185_v46, 0.0  ;;  %v6525_v46 = vor.u32 %v8005_v39, %v6524_v37 }
 0x1df   :  { %3961 = vmatpush.bf16.msra.mxu0 %v6269_v7  ;;  %v6205_v7 = vor.u32 %v7925_v57, %v6204_v55  ;;  %3939 = vmatpush.bf16.msrb.mxu2 %v6969_v62  ;;  %v6508_v55 = vld [vmem:[#allocation11 + $0x268] sm:$0xf]  ;;  %v8001_v57 = vld [vmem:[#allocation11 + $0x274] sm:$0xf0] }
 0x1e0   :  { %v8857_v6 = vpack.c.bf16 %v2195_v61, %v2195_v61  ;;  %v6764_v61 = vld [vmem:[#allocation11 + $0x468] sm:$0xf]  ;;  %v8065_v62 = vld [vmem:[#allocation11 + $0x474] sm:$0xf0] }
 0x1e1   :  { %3974 = vmatpush.bf16.msra.mxu1 %v6397_v9  ;;  %v6333_v9 = vor.u32 %v7957_v60, %v6332_v59  ;;  %v2173_v12 = vpop.f32.mrf.mxu2  ;;  %v6781_v59 = vor.u32 %v8069_v44, %v6780_v43 }
 0x1e2   :  { %3849 = vmatmul.bf16.vlgmr.msrb.gmra.mxu3 %v8857_v6  ;;  %3940 = vmatmul.bf16.vlgmr.msrb.gmra.mxu2 %v8850_v25 }
 0x1e3   :  { %3962 = vmatpush.bf16.msra.mxu0 %v6253_v5  ;;  %v2186_v22 = vpop.f32.mrf.mxu3  ;;  %3945 = vmatpush.bf16.msrb.mxu3 %v7209_v1  ;;  %v6557_v5 = vor.u32 %v8013_v19, %v6556_v11  ;;  %v6509_v1 = vor.u32 %v8001_v57, %v6508_v55  ;;  %v7997_v11 = vld [vmem:[#allocation11 + $0x254] sm:$0xf0]  ;;  %v6765_v19 = vor.u32 %v8065_v62, %v6764_v61 }
 0x1e4   :  { %3984 = vmatpush.bf16.msra.mxu2 %v6573_v2  ;;  %v6892_v2 = vld [vmem:[#allocation11 + $0x568] sm:$0xf]  ;;  %v6493_v18 = vor.u32 %v7997_v11, %v6492_v10  ;;  %v8053_v55 = vld [vmem:[#allocation11 + $0x414] sm:$0xf0]  ;;  %v7097_v57 = vor.u32 %v8146_v35, %v7094_v36 }
 0x1e5   :  { %3975 = vmatpush.bf16.msra.mxu1 %v6381_v16  ;;  %v6940_v16 = vld [vmem:[#allocation11 + $0x5c8] sm:$0xf]  ;;  %v6893_v22 = vor.u32 %v8097_v3, %v6892_v2  ;;  %v8085_v61 = vld [vmem:[#allocation11 + $0x514] sm:$0xf0]  ;;  %v7983_v2 = vld [vmem:[#allocation11 + $0x1ec] sm:$0xf]  ;;  %v6717_v3 = vor.u32 %v8053_v55, %v6716_v32 }
 0x1e6   :  { %v6941_v28 = vor.u32 %v8109_v52, %v6940_v16  ;;  %v8150_v16 = vld [vmem:[#allocation11 + $0x724] sm:$0xf]  ;;  %v7110_v52 = vld [vmem:[#allocation11 + $0x730] sm:$0xf0]  ;;  %v7068_v10 = vld [vmem:[#allocation11 + $0x6c8] sm:$0xf] }
 0x1e7   :  { %3963 = vmatpush.bf16.msra.mxu0 %v6237_v30  ;;  %v8073_v30 = vld [vmem:[#allocation11 + $0x4b4] sm:$0xf0]  ;;  %3946 = vmatpush.bf16.msrb.mxu3 %v7193_v20  ;;  %v6876_v20 = vld [vmem:[#allocation11 + $0x548] sm:$0xf] }
 0x1e8   :  { %3985 = vmatpush.bf16.msra.mxu2 %v6557_v5  ;;  %v6797_v40 = vor.u32 %v8073_v30, %v6796_v29  ;;  %v8093_v5 = vld [vmem:[#allocation11 + $0x554] sm:$0xf0]  ;;  %v6860_v29 = vld [vmem:[#allocation11 + $0x528] sm:$0xf] }
 0x1e9   :  { %3976 = vmatpush.bf16.msra.mxu1 %v6365_v31  ;;  %v6924_v31 = vld [vmem:[#allocation11 + $0x5a8] sm:$0xf]  ;;  %v6877_v26 = vor.u32 %v8093_v5, %v6876_v20  ;;  %v8141_v11 = vld [vmem:[#allocation11 + $0x6d4] sm:$0xf0]  ;;  %v6430_v5 = vld [vmem:[#allocation11 + $0x1d8] sm:$0xf0] }
 0x1ea   :  { %v6925_v41 = vor.u32 %v8105_v56, %v6924_v31  ;;  %v8089_v56 = vld [vmem:[#allocation11 + $0x534] sm:$0xf0]  ;;  %v7069_v20 = vor.u32 %v8141_v11, %v7068_v10  ;;  %v7036_v36 = vld [vmem:[#allocation11 + $0x688] sm:$0xf] }
 0x1eb   :  { %3964 = vmatpush.bf16.msra.mxu0 %v6221_v47  ;;  %3947 = vmatpush.bf16.msrb.mxu3 %v7177_v33  ;;  %v6908_v47 = vld [vmem:[#allocation11 + $0x588] sm:$0xf]  ;;  %v7113_v33 = vor.u32 %v8150_v16, %v7110_v52  ;;  %v6861_v51 = vor.u32 %v8089_v56, %v6860_v29  ;;  %v8041_v52 = vld [vmem:[#allocation11 + $0x3b4] sm:$0xf0]  ;;  %v7943_v29 = vld [vmem:[#allocation11 + $0xac] sm:$0xf] }
 0x1ec   :  { %3986 = vmatpush.bf16.msra.mxu2 %v6541_v34  ;;  %v6477_v34 = vor.u32 %v7993_v23, %v6476_v21  ;;  %v6668_v16 = vld [vmem:[#allocation11 + $0x3a8] sm:$0xf]  ;;  %v8037_v35 = vld [vmem:[#allocation11 + $0x394] sm:$0xf0] }
 0x1ed   :  { %3977 = vmatpush.bf16.msra.mxu1 %v6349_v8  ;;  %v8101_v8 = vld [vmem:[#allocation11 + $0x594] sm:$0xf0]  ;;  %v7052_v23 = vld [vmem:[#allocation11 + $0x6a8] sm:$0xf] }
 0x1ee   :  { %v6909_v60 = vor.u32 %v8101_v8, %v6908_v47  ;;  %v8145_v47 = vld [vmem:[#allocation11 + $0x6f4] sm:$0xf0]  ;;  %v6652_v56 = vld [vmem:[#allocation11 + $0x388] sm:$0xf] }
 0x1ef   :  { %3965 = vmatpush.bf16.msra.mxu0 %v6205_v7  ;;  %3948 = vmatpush.bf16.msrb.mxu3 %v7161_v45  ;;  %v3759_v63 = vpop.f32.mrf.mxu0  ;;  %v8049_v45 = vld [vmem:[#allocation11 + $0x3f4] sm:$0xf0]  ;;  %v7020_v32 = vld [vmem:[#allocation11 + $0x668] sm:$0xf] }
 0x1f0   :  { %3987 = vmatpush.bf16.msra.mxu2 %v6525_v46  ;;  %v3760_v38 = vadd.f32 %v3759_v63, %v2462_v42  ;;  %v6700_v42 = vld [vmem:[#allocation11 + $0x3e8] sm:$0xf]  ;;  %v8129_v55 = vld [vmem:[#allocation11 + $0x674] sm:$0xf0] }
 0x1f1   :  { %3978 = vmatpush.bf16.msra.mxu1 %v6333_v9  ;;  %v3772_v7 = vpop.f32.mrf.mxu1  ;;  %v7126_v9 = vld [vmem:[#allocation11 + $0x750] sm:$0xf0]  ;;  %v7084_v46 = vld [vmem:[#allocation11 + $0x6e8] sm:$0xf]  ;;  %v6701_v62 = vor.u32 %v8049_v45, %v6700_v42  ;;  %v7939_v42 = vld [vmem:[#allocation11 + $0x8c] sm:$0xf] }
 0x1f2   :  { %3966 = vmatmul.bf16.vlgmr.msra.gmra.mxu0 %v8825_v48  ;;  %v3773_v12 = vadd.f32 %v3772_v7, %v3760_v38  ;;  %3901 = vmatmul.bf16.vlgmr.msra.gmra.mxu3 %v8831_v54  ;;  %v7129_v15 = vor.u32 %v8154_v4, %v7126_v9  ;;  %v7085_v63 = vor.u32 %v8145_v47, %v7084_v46  ;;  %v6446_v4 = vld [vmem:[#allocation11 + $0x1f8] sm:$0xf0]  ;;  %v6684_v38 = vld [vmem:[#allocation11 + $0x3c8] sm:$0xf]  ;;  %v8045_v7 = vld [vmem:[#allocation11 + $0x3d4] sm:$0xf0] }
 0x1f3   :  { %4010 = vmatpush.bf16.msrb.mxu0 %v6829_v13  ;;  %v6748_v13 = vld [vmem:[#allocation11 + $0x448] sm:$0xf]  ;;  %3949 = vmatpush.bf16.msrb.mxu3 %v7145_v0  ;;  %v7951_v0 = vld [vmem:[#allocation11 + $0xec] sm:$0xf]  ;;  %v6398_v46 = vld [vmem:[#allocation11 + $0x198] sm:$0xf0] }
 0x1f4   :  { %3979 = vmatmul.bf16.vlgmr.msra.gmra.mxu1 %v8827_v49  ;;  %3988 = vmatpush.bf16.msra.mxu2 %v6509_v1  ;;  %v6318_v1 = vld [vmem:[#allocation11 + $0xf8] sm:$0xf0]  ;;  %v6636_v47 = vld [vmem:[#allocation11 + $0x368] sm:$0xf] }
 0x1f5   :  { %4023 = vmatpush.bf16.msrb.mxu1 %v6957_v14  ;;  %v8061_v14 = vld [vmem:[#allocation11 + $0x454] sm:$0xf0] }
 0x1f6   :  { %v6749_v24 = vor.u32 %v8061_v14, %v6748_v13  ;;  %v6685_v13 = vor.u32 %v8045_v7, %v6684_v38  ;;  %v7947_v14 = vld [vmem:[#allocation11 + $0xcc] sm:$0xf]  ;;  %v7004_v7 = vld [vmem:[#allocation11 + $0x648] sm:$0xf] }
 0x1f7   :  { %4011 = vmatpush.bf16.msrb.mxu0 %v6813_v27  ;;  %v6732_v27 = vld [vmem:[#allocation11 + $0x428] sm:$0xf]  ;;  %3950 = vmatpush.bf16.msrb.mxu3 %v7129_v15  ;;  %v3761_v31 = vpop.f32.mrf.mxu0  ;;  %v6302_v15 = vld [vmem:[#allocation11 + $0xd8] sm:$0xf0] }
 0x1f8   :  { %3989 = vmatpush.bf16.msra.mxu2 %v6493_v18  ;;  %v7979_v18 = vld [vmem:[#allocation11 + $0x1cc] sm:$0xf] }
 0x1f9   :  { %4024 = vmatpush.bf16.msrb.mxu1 %v6941_v28  ;;  %v8057_v28 = vld [vmem:[#allocation11 + $0x434] sm:$0xf0]  ;;  %v3785_v30 = vpop.f32.mrf.mxu2  ;;  %v3774_v39 = vpop.f32.mrf.mxu1  ;;  %v7975_v31 = vld [vmem:[#allocation11 + $0x1ac] sm:$0xf] }
 0x1fa   :  { %v3786_v37 = vadd.f32 %v3785_v30, %v3773_v12  ;;  %v6733_v44 = vor.u32 %v8057_v28, %v6732_v27  ;;  %v6321_v12 = vor.u32 %v7951_v0, %v6318_v1  ;;  %v6433_v27 = vor.u32 %v7979_v18, %v6430_v5  ;;  %v6286_v30 = vld [vmem:[#allocation11 + $0xb8] sm:$0xf0]  ;;  %v6604_v18 = vld [vmem:[#allocation11 + $0x328] sm:$0xf] }
 0x1fb   :  { %4012 = vmatpush.bf16.msrb.mxu0 %v6797_v40  ;;  %v6460_v40 = vld [vmem:[#allocation11 + $0x208] sm:$0xf]  ;;  %v3798_v43 = vpop.f32.mrf.mxu3  ;;  %3951 = vmatpush.bf16.msrb.mxu3 %v7113_v33  ;;  %v6669_v28 = vor.u32 %v8041_v52, %v6668_v16  ;;  %v6289_v39 = vor.u32 %v7943_v29, %v6286_v30  ;;  %v7021_v1 = vor.u32 %v8129_v55, %v7020_v32  ;;  %v8121_v16 = vld [vmem:[#allocation11 + $0x634] sm:$0xf0]  ;;  %v7927_v52 = vld [vmem:[#allocation11 + $0x2c] sm:$0xf] }
 0x1fc   :  { %v8870_v8 = vadd.f32 %v3798_v43, %v3786_v37  ;;  %3990 = vmatpush.bf16.msra.mxu2 %v6477_v34  ;;  %v6414_v34 = vld [vmem:[#allocation11 + $0x1b8] sm:$0xf0]  ;;  %v8133_v37 = vld [vmem:[#allocation11 + $0x694] sm:$0xf0]  ;;  %v6988_v5 = vld [vmem:[#allocation11 + $0x628] sm:$0xf] }
 0x1fd   :  { %4025 = vmatpush.bf16.msrb.mxu1 %v6925_v41  ;;  %v7989_v41 = vld [vmem:[#allocation11 + $0x214] sm:$0xf0]  ;;  %v6270_v43 = vld [vmem:[#allocation11 + $0x98] sm:$0xf0]  ;;  %v7037_v45 = vor.u32 %v8133_v37, %v7036_v36  ;;  %v6588_v29 = vld [vmem:[#allocation11 + $0x308] sm:$0xf] }
 0x1fe   :  { %v8021_v30 = vld [vmem:[#allocation11 + $0x314] sm:$0xf0]  ;;  %v8015_v37 = vld [vmem:[#allocation11 + $0x2ec] sm:$0xf]  ;;  %v6830_v32 = vld [vmem:[#allocation11 + $0x4f8] sm:$0xf0] }
 0x1ff   :  { %4013 = vmatpush.bf16.msrb.mxu0 %v6781_v59  ;;  %v6461_v59 = vor.u32 %v7989_v41, %v6460_v40  ;;  %3952 = vmatpush.bf16.msrb.mxu3 %v7097_v57  ;;  %v6417_v40 = vor.u32 %v7975_v31, %v6414_v34  ;;  %v6653_v41 = vor.u32 %v8037_v35, %v6652_v56  ;;  %v6972_v31 = vld [vmem:[#allocation11 + $0x608] sm:$0xf]  ;;  %v8117_v34 = vld [vmem:[#allocation11 + $0x614] sm:$0xf0] }
 0x200   :  { %v6273_v57 = vor.u32 %v7939_v42, %v6270_v43  ;;  %v7212_v56 = vld [vmem:[#allocation11 + $0x7e8] sm:$0xf]  ;;  %v8177_v35 = vld [vmem:[#allocation11 + $0x7f4] sm:$0xf0]  ;;  %v7923_v42 = vld [vmem:[#allocation11 + $0xc] sm:$0xf] }
 0x201   :  { %4026 = vmatpush.bf16.msrb.mxu1 %v6909_v60  ;;  %v6844_v60 = vld [vmem:[#allocation11 + $0x508] sm:$0xf]  ;;  %3991 = vmatpush.bf16.msra.mxu2 %v6461_v59  ;;  %v6206_v43 = vld [vmem:[#allocation11 + $0x18] sm:$0xf0] }
 0x202   :  { %v6845_v9 = vor.u32 %v8085_v61, %v6844_v60  ;;  %3953 = vmatmul.bf16.vlgmr.msrb.gmra.mxu3 %v8857_v6  ;;  %v7935_v61 = vld [vmem:[#allocation11 + $0x6c] sm:$0xf] }
 0x203   :  { %4014 = vmatpush.bf16.msrb.mxu0 %v6765_v19  ;;  %v3787_v19 = vpop.f32.mrf.mxu2  ;;  %3997 = vmatpush.bf16.msra.mxu3 %v6701_v62  ;;  %v3800_v21 = vpop.f32.mrf.mxu3  ;;  %v6254_v62 = vld [vmem:[#allocation11 + $0x78] sm:$0xf0] }
 0x204   :  { %3992 = vmatmul.bf16.vlgmr.msra.gmra.mxu2 %v8829_v53  ;;  %v6257_v10 = vor.u32 %v7935_v61, %v6254_v62  ;;  %v6209_v61 = vor.u32 %v7923_v42, %v6206_v43  ;;  %v8173_v62 = vld [vmem:[#allocation11 + $0x7d4] sm:$0xf0]  ;;  %v8063_v42 = vld [vmem:[#allocation11 + $0x46c] sm:$0xf]  ;;  %v6766_v43 = vld [vmem:[#allocation11 + $0x478] sm:$0xf0] }
 0x205   :  { %4027 = vmatpush.bf16.msrb.mxu1 %v6893_v22  ;;  %4036 = vmatpush.bf16.msrb.mxu2 %v7085_v63  ;;  %v6449_v22 = vor.u32 %v7983_v2, %v6446_v4  ;;  %v7967_v63 = vld [vmem:[#allocation11 + $0x16c] sm:$0xf]  ;;  %v6382_v2 = vld [vmem:[#allocation11 + $0x178] sm:$0xf0]  ;;  %v8029_v4 = vld [vmem:[#allocation11 + $0x354] sm:$0xf0] }
 0x206   :  { %v6385_v11 = vor.u32 %v7967_v63, %v6382_v2  ;;  %v8011_v63 = vld [vmem:[#allocation11 + $0x2cc] sm:$0xf] }
 0x207   :  { %4015 = vmatpush.bf16.msrb.mxu0 %v6749_v24  ;;  %v8137_v24 = vld [vmem:[#allocation11 + $0x6b4] sm:$0xf0]  ;;  %3998 = vmatpush.bf16.msra.mxu3 %v6685_v13  ;;  %v7963_v13 = vld [vmem:[#allocation11 + $0x14c] sm:$0xf] }
 0x208   :  { %v7053_v33 = vor.u32 %v8137_v24, %v7052_v23  ;;  %v6222_v24 = vld [vmem:[#allocation11 + $0x38] sm:$0xf0] }
 0x209   :  { %4028 = vmatpush.bf16.msrb.mxu1 %v6877_v26  ;;  %v6305_v26 = vor.u32 %v7947_v14, %v6302_v15  ;;  %4037 = vmatpush.bf16.msrb.mxu2 %v7069_v20  ;;  %v6366_v15 = vld [vmem:[#allocation11 + $0x158] sm:$0xf0]  ;;  %v8025_v20 = vld [vmem:[#allocation11 + $0x334] sm:$0xf0]  ;;  %v6225_v36 = vor.u32 %v7927_v52, %v6222_v24  ;;  %v7164_v24 = vld [vmem:[#allocation11 + $0x788] sm:$0xf] }
 0x20a   :  { %v6369_v21 = vor.u32 %v7963_v13, %v6366_v15  ;;  %v6605_v23 = vor.u32 %v8025_v20, %v6604_v18  ;;  %v8007_v13 = vld [vmem:[#allocation11 + $0x2ac] sm:$0xf] }
 0x20b   :  { %4016 = vmatpush.bf16.msrb.mxu0 %v6733_v44  ;;  %3999 = vmatpush.bf16.msra.mxu3 %v6669_v28  ;;  %v7971_v44 = vld [vmem:[#allocation11 + $0x18c] sm:$0xf]  ;;  %v6989_v28 = vor.u32 %v8121_v16, %v6988_v5  ;;  %v6798_v5 = vld [vmem:[#allocation11 + $0x4b8] sm:$0xf0] }
 0x20c   :  { %v6401_v59 = vor.u32 %v7971_v44, %v6398_v46  ;;  %v7955_v44 = vld [vmem:[#allocation11 + $0x10c] sm:$0xf]  ;;  %v7213_v46 = vor.u32 %v8177_v35, %v7212_v56 }
 0x20d   :  { %4029 = vmatpush.bf16.msrb.mxu1 %v6861_v51  ;;  %4038 = vmatpush.bf16.msrb.mxu2 %v7053_v33  ;;  %v8033_v51 = vld [vmem:[#allocation11 + $0x374] sm:$0xf0]  ;;  %v8071_v20 = vld [vmem:[#allocation11 + $0x4ac] sm:$0xf] }
 0x20e   :  { %v6637_v60 = vor.u32 %v8033_v51, %v6636_v47  ;;  %v6334_v47 = vld [vmem:[#allocation11 + $0x118] sm:$0xf0]  ;;  %v8079_v51 = vld [vmem:[#allocation11 + $0x4ec] sm:$0xf] }
 0x20f   :  { %4017 = vmatpush.bf16.msrb.mxu0 %v6717_v3  ;;  %4000 = vmatpush.bf16.msra.mxu3 %v6653_v41  ;;  %v3811_v0 = vpop.f32.mrf.mxu0  ;;  %v6620_v3 = vld [vmem:[#allocation11 + $0x348] sm:$0xf]  ;;  %v6589_v41 = vor.u32 %v8021_v30, %v6588_v29  ;;  %v6833_v2 = vor.u32 %v8079_v51, %v6830_v32  ;;  %v6526_v29 = vld [vmem:[#allocation11 + $0x298] sm:$0xf0]  ;;  %v6801_v30 = vor.u32 %v8071_v20, %v6798_v5  ;;  %v8095_v51 = vld [vmem:[#allocation11 + $0x56c] sm:$0xf] }
 0x210   :  { %v8877_v38 = vadd.f32 %v3811_v0, %v8870_v8  ;;  %v6621_v19 = vor.u32 %v8029_v4, %v6620_v3  ;;  %v6558_v0 = vld [vmem:[#allocation11 + $0x2d8] sm:$0xf0]  ;;  %v8075_v4 = vld [vmem:[#allocation11 + $0x4cc] sm:$0xf] }
 0x211   :  { %4030 = vmatpush.bf16.msrb.mxu1 %v6845_v9  ;;  %4039 = vmatpush.bf16.msrb.mxu2 %v7037_v45  ;;  %v8125_v9 = vld [vmem:[#allocation11 + $0x654] sm:$0xf0]  ;;  %v6973_v45 = vor.u32 %v8117_v34, %v6972_v31  ;;  %v6782_v34 = vld [vmem:[#allocation11 + $0x498] sm:$0xf0] }
 0x212   :  { %4018 = vmatmul.bf16.vlgmr.msrb.gmra.mxu0 %v8840_v17  ;;  %v7005_v14 = vor.u32 %v8125_v9, %v7004_v7  ;;  %v6814_v7 = vld [vmem:[#allocation11 + $0x4d8] sm:$0xf0] }
 0x213   :  { %4062 = vmatpush.bf16.msra.mxu0 %v6321_v12  ;;  %4001 = vmatpush.bf16.msra.mxu3 %v6637_v60  ;;  %v7931_v12 = vld [vmem:[#allocation11 + $0x4c] sm:$0xf]  ;;  %v7196_v60 = vld [vmem:[#allocation11 + $0x7c8] sm:$0xf]  ;;  %v6817_v15 = vor.u32 %v8075_v4, %v6814_v7  ;;  %v6894_v32 = vld [vmem:[#allocation11 + $0x578] sm:$0xf0] }
 0x214   :  { %4031 = vmatmul.bf16.vlgmr.msrb.gmra.mxu1 %v8844_v50  ;;  %v7197_v9 = vor.u32 %v8173_v62, %v7196_v60  ;;  %v6494_v60 = vld [vmem:[#allocation11 + $0x258] sm:$0xf0]  ;;  %v6769_v62 = vor.u32 %v8063_v42, %v6766_v43  ;;  %v8091_v4 = vld [vmem:[#allocation11 + $0x54c] sm:$0xf] }
 0x215   :  { %4075 = vmatpush.bf16.msra.mxu1 %v6449_v22  ;;  %v6238_v22 = vld [vmem:[#allocation11 + $0x58] sm:$0xf0]  ;;  %4040 = vmatpush.bf16.msrb.mxu2 %v7021_v1  ;;  %v6337_v1 = vor.u32 %v7955_v44, %v6334_v47  ;;  %v8139_v42 = vld [vmem:[#allocation11 + $0x6cc] sm:$0xf] }
 0x216   :  { %v6241_v8 = vor.u32 %v7931_v12, %v6238_v22  ;;  %v7180_v12 = vld [vmem:[#allocation11 + $0x7a8] sm:$0xf]  ;;  %v8169_v22 = vld [vmem:[#allocation11 + $0x7b4] sm:$0xf0]  ;;  %v6878_v7 = vld [vmem:[#allocation11 + $0x558] sm:$0xf0] }
 0x217   :  { %4063 = vmatpush.bf16.msra.mxu0 %v6305_v26  ;;  %4002 = vmatpush.bf16.msra.mxu3 %v6621_v19  ;;  %v7959_v26 = vld [vmem:[#allocation11 + $0x12c] sm:$0xf]  ;;  %v3813_v33 = vpop.f32.mrf.mxu0  ;;  %v6942_v19 = vld [vmem:[#allocation11 + $0x5d8] sm:$0xf0]  ;;  %v7181_v16 = vor.u32 %v8169_v22, %v7180_v12  ;;  %v6881_v22 = vor.u32 %v8091_v4, %v6878_v7 }
 0x218   :  { %v8067_v33 = vld [vmem:[#allocation11 + $0x48c] sm:$0xf]  ;;  %v7070_v43 = vld [vmem:[#allocation11 + $0x6d8] sm:$0xf0] }
 0x219   :  { %4076 = vmatpush.bf16.msra.mxu1 %v6433_v27  ;;  %v6350_v27 = vld [vmem:[#allocation11 + $0x138] sm:$0xf0]  ;;  %4041 = vmatpush.bf16.msrb.mxu2 %v7005_v14  ;;  %v8131_v7 = vld [vmem:[#allocation11 + $0x68c] sm:$0xf] }
 0x21a   :  { %v6542_v14 = vld [vmem:[#allocation11 + $0x2b8] sm:$0xf0] }
 0x21b   :  { %4064 = vmatpush.bf16.msra.mxu0 %v6289_v39  ;;  %v6574_v39 = vld [vmem:[#allocation11 + $0x2f8] sm:$0xf0]  ;;  %4003 = vmatpush.bf16.msra.mxu3 %v6605_v23 }
 0x21c   :  { %v6577_v55 = vor.u32 %v8015_v37, %v6574_v39  ;;  %v6926_v23 = vld [vmem:[#allocation11 + $0x5b8] sm:$0xf0]  ;;  %v7148_v37 = vld [vmem:[#allocation11 + $0x768] sm:$0xf]  ;;  %v7999_v39 = vld [vmem:[#allocation11 + $0x26c] sm:$0xf] }
 0x21d   :  { %4077 = vmatpush.bf16.msra.mxu1 %v6417_v40  ;;  %v6353_v40 = vor.u32 %v7959_v26, %v6350_v27  ;;  %4042 = vmatpush.bf16.msrb.mxu2 %v6989_v28  ;;  %v8165_v27 = vld [vmem:[#allocation11 + $0x794] sm:$0xf0]  ;;  %v8003_v28 = vld [vmem:[#allocation11 + $0x28c] sm:$0xf]  ;;  %v6654_v4 = vld [vmem:[#allocation11 + $0x398] sm:$0xf0] }
 0x21e   :  { %v7165_v56 = vor.u32 %v8165_v27, %v7164_v24  ;;  %v6529_v35 = vor.u32 %v8003_v28, %v6526_v29  ;;  %v7987_v24 = vld [vmem:[#allocation11 + $0x20c] sm:$0xf]  ;;  %v6462_v27 = vld [vmem:[#allocation11 + $0x218] sm:$0xf0] }
 0x21f   :  { %4065 = vmatpush.bf16.msra.mxu0 %v6273_v57  ;;  %v8111_v57 = vld [vmem:[#allocation11 + $0x5ec] sm:$0xf]  ;;  %4004 = vmatpush.bf16.msra.mxu3 %v6589_v41  ;;  %v3824_v52 = vpop.f32.mrf.mxu1  ;;  %v6702_v29 = vld [vmem:[#allocation11 + $0x3f8] sm:$0xf0] }
 0x220   :  { %v8884_v26 = vadd.f32 %v3824_v52, %v8877_v38  ;;  %v6510_v38 = vld [vmem:[#allocation11 + $0x278] sm:$0xf0]  ;;  %v7100_v52 = vld [vmem:[#allocation11 + $0x708] sm:$0xf]  ;;  %v8047_v28 = vld [vmem:[#allocation11 + $0x3ec] sm:$0xf] }
 0x221   :  { %4078 = vmatpush.bf16.msra.mxu1 %v6401_v59  ;;  %v6958_v59 = vld [vmem:[#allocation11 + $0x5f8] sm:$0xf0]  ;;  %4043 = vmatpush.bf16.msrb.mxu2 %v6973_v45 }
 0x222   :  { %v6961_v3 = vor.u32 %v8111_v57, %v6958_v59  ;;  %4005 = vmatmul.bf16.vlgmr.msra.gmra.mxu3 %v8831_v54  ;;  %v8157_v57 = vld [vmem:[#allocation11 + $0x754] sm:$0xf0]  ;;  %v7995_v59 = vld [vmem:[#allocation11 + $0x24c] sm:$0xf] }
 0x223   :  { %4066 = vmatpush.bf16.msra.mxu0 %v6257_v10  ;;  %4049 = vmatpush.bf16.msrb.mxu3 %v7213_v46  ;;  %v6561_v10 = vor.u32 %v8011_v63, %v6558_v0  ;;  %v6513_v46 = vor.u32 %v7999_v39, %v6510_v38  ;;  %v6897_v63 = vor.u32 %v8095_v51, %v6894_v32  ;;  %v8059_v0 = vld [vmem:[#allocation11 + $0x44c] sm:$0xf]  ;;  %v6846_v38 = vld [vmem:[#allocation11 + $0x518] sm:$0xf0] }
 0x224   :  { %4044 = vmatmul.bf16.vlgmr.msrb.gmra.mxu2 %v8850_v25  ;;  %v8083_v39 = vld [vmem:[#allocation11 + $0x50c] sm:$0xf] }
 0x225   :  { %4079 = vmatpush.bf16.msra.mxu1 %v6385_v11  ;;  %4088 = vmatpush.bf16.msra.mxu2 %v6577_v55  ;;  %v8107_v11 = vld [vmem:[#allocation11 + $0x5cc] sm:$0xf]  ;;  %v7132_v55 = vld [vmem:[#allocation11 + $0x748] sm:$0xf] }
 0x226   :  { %v6945_v18 = vor.u32 %v8107_v11, %v6942_v19  ;;  %v7991_v11 = vld [vmem:[#allocation11 + $0x22c] sm:$0xf]  ;;  %v6478_v19 = vld [vmem:[#allocation11 + $0x238] sm:$0xf0] }
 0x227   :  { %4067 = vmatpush.bf16.msra.mxu0 %v6241_v8  ;;  %4050 = vmatpush.bf16.msrb.mxu3 %v7197_v9  ;;  %v6545_v8 = vor.u32 %v8007_v13, %v6542_v14  ;;  %v3826_v47 = vpop.f32.mrf.mxu1  ;;  %v7116_v9 = vld [vmem:[#allocation11 + $0x728] sm:$0xf]  ;;  %v8055_v13 = vld [vmem:[#allocation11 + $0x42c] sm:$0xf]  ;;  %v6734_v14 = vld [vmem:[#allocation11 + $0x438] sm:$0xf0]  ;;  %v6481_v5 = vor.u32 %v7991_v11, %v6478_v19 }
 0x228   :  { %v6849_v47 = vor.u32 %v8083_v39, %v6846_v38  ;;  %v7340_v11 = vld [vmem:[#allocation13 + $0xf0] sm:$0xf]  ;;  %v8209_v19 = vld [vmem:[#allocation13 + $0xf4] sm:$0xf0] }
 0x229   :  { %4080 = vmatpush.bf16.msra.mxu1 %v6369_v21  ;;  %4089 = vmatpush.bf16.msra.mxu2 %v6561_v10  ;;  %v8103_v21 = vld [vmem:[#allocation11 + $0x5ac] sm:$0xf]  ;;  %v8153_v10 = vld [vmem:[#allocation11 + $0x734] sm:$0xf0] }
 0x22a   :  { %v6929_v31 = vor.u32 %v8103_v21, %v6926_v23  ;;  %v7117_v20 = vor.u32 %v8153_v10, %v7116_v9  ;;  %v8149_v21 = vld [vmem:[#allocation11 + $0x714] sm:$0xf0]  ;;  %v7038_v10 = vld [vmem:[#allocation11 + $0x698] sm:$0xf0] }
 0x22b   :  { %4068 = vmatpush.bf16.msra.mxu0 %v6225_v36  ;;  %4051 = vmatpush.bf16.msrb.mxu3 %v7181_v16  ;;  %v8099_v36 = vld [vmem:[#allocation11 + $0x58c] sm:$0xf] }
 0x22d   :  { %4081 = vmatpush.bf16.msra.mxu1 %v6353_v40  ;;  %4090 = vmatpush.bf16.msra.mxu2 %v6545_v8  ;;  %v6785_v40 = vor.u32 %v8067_v33, %v6782_v34  ;;  %v6862_v8 = vld [vmem:[#allocation11 + $0x538] sm:$0xf0]  ;;  %v6737_v33 = vor.u32 %v8055_v13, %v6734_v14  ;;  %v7041_v13 = vor.u32 %v8131_v7, %v7038_v10  ;;  %v8031_v14 = vld [vmem:[#allocation11 + $0x36c] sm:$0xf]  ;;  %v8201_v7 = vld [vmem:[#allocation13 + $0xb4] sm:$0xf0] }
 0x22e   :  { %v7228_v10 = vld [vmem:[#allocation13 + $0x10] sm:$0xf] }
 0x22f   :  { %4069 = vmatpush.bf16.msra.mxu0 %v6209_v61  ;;  %4052 = vmatpush.bf16.msrb.mxu3 %v7165_v56  ;;  %v3863_v44 = vpop.f32.mrf.mxu0  ;;  %v2463_v61 = vperm.slane %v8864_v58, 1  ;;  %v7101_v56 = vor.u32 %v8149_v21, %v7100_v52  ;;  %v7252_v52 = vld [vmem:[#allocation13 + $0x40] sm:$0xf] }
 0x231   :  { %4082 = vmatpush.bf16.msra.mxu1 %v6337_v1  ;;  %4091 = vmatpush.bf16.msra.mxu2 %v6529_v35  ;;  %v6750_v1 = vld [vmem:[#allocation11 + $0x458] sm:$0xf0]  ;;  %v3864_v12 = vadd.f32 %v3863_v44, %v2463_v61  ;;  %v3876_v16 = vpop.f32.mrf.mxu1  ;;  %v6465_v35 = vor.u32 %v7987_v24, %v6462_v27  ;;  %v7276_v44 = vld [vmem:[#allocation13 + $0x70] sm:$0xf]  ;;  %v8135_v61 = vld [vmem:[#allocation11 + $0x6ac] sm:$0xf] }
 0x232   :  { %4070 = vmatmul.bf16.vlgmr.msra.gmra.mxu0 %v8825_v48  ;;  %v6910_v48 = vld [vmem:[#allocation11 + $0x598] sm:$0xf0]  ;;  %v6753_v58 = vor.u32 %v8059_v0, %v6750_v1  ;;  %v8191_v0 = vld [vmem:[#allocation13 + $0x64] sm:$0xf0] }
 0x233   :  { %4114 = vmatpush.bf16.msrb.mxu0 %v6833_v2  ;;  %v6913_v41 = vor.u32 %v8099_v36, %v6910_v48  ;;  %v7133_v2 = vor.u32 %v8157_v57, %v7132_v55  ;;  %v8887_v23 = vadd.f32 %v3876_v16, %v3864_v12  ;;  %v8051_v36 = vld [vmem:[#allocation11 + $0x40c] sm:$0xf]  ;;  %v6718_v48 = vld [vmem:[#allocation11 + $0x418] sm:$0xf0]  ;;  %v7073_v55 = vor.u32 %v8139_v42, %v7070_v43  ;;  %v8189_v12 = vld [vmem:[#allocation13 + $0x54] sm:$0xf0] }
 0x234   :  { %4083 = vmatmul.bf16.vlgmr.msra.gmra.mxu1 %v8827_v49  ;;  %v8161_v49 = vld [vmem:[#allocation11 + $0x774] sm:$0xf0]  ;;  %v8039_v57 = vld [vmem:[#allocation11 + $0x3ac] sm:$0xf]  ;;  %v7332_v16 = vld [vmem:[#allocation13 + $0xe0] sm:$0xf] }
 0x235   :  { %4127 = vmatpush.bf16.msrb.mxu1 %v6961_v3  ;;  %v7149_v45 = vor.u32 %v8161_v49, %v7148_v37  ;;  %4092 = vmatpush.bf16.msra.mxu2 %v6513_v46  ;;  %v6497_v3 = vor.u32 %v7995_v59, %v6494_v60  ;;  %v6705_v37 = vor.u32 %v8047_v28, %v6702_v29  ;;  %v6670_v60 = vld [vmem:[#allocation11 + $0x3b8] sm:$0xf0]  ;;  %v8027_v29 = vld [vmem:[#allocation11 + $0x34c] sm:$0xf] }
 0x236   :  { %v6721_v46 = vor.u32 %v8051_v36, %v6718_v48  ;;  %v6673_v1 = vor.u32 %v8039_v57, %v6670_v60  ;;  %v8205_v36 = vld [vmem:[#allocation13 + $0xd4] sm:$0xf0]  ;;  %v7244_v48 = vld [vmem:[#allocation13 + $0x30] sm:$0xf]  ;;  %v8119_v42 = vld [vmem:[#allocation11 + $0x62c] sm:$0xf] }
 0x237   :  { %4115 = vmatpush.bf16.msrb.mxu0 %v6817_v15  ;;  %4053 = vmatpush.bf16.msrb.mxu3 %v7149_v45  ;;  %v8087_v15 = vld [vmem:[#allocation11 + $0x52c] sm:$0xf]  ;;  %v8193_v45 = vld [vmem:[#allocation13 + $0x74] sm:$0xf0] }
 0x238   :  { %v6865_v34 = vor.u32 %v8087_v15, %v6862_v8  ;;  %v7277_v59 = vor.u32 %v8193_v45, %v7276_v44  ;;  %v6638_v15 = vld [vmem:[#allocation11 + $0x378] sm:$0xf0]  ;;  %v8207_v8 = vld [vmem:[#allocation13 + $0xe4] sm:$0xf0]  ;;  %v7316_v45 = vld [vmem:[#allocation13 + $0xc0] sm:$0xf] }
 0x239   :  { %4128 = vmatpush.bf16.msrb.mxu1 %v6945_v18  ;;  %4093 = vmatpush.bf16.msra.mxu2 %v6497_v3  ;;  %v3865_v18 = vpop.f32.mrf.mxu0  ;;  %v3878_v51 = vpop.f32.mrf.mxu1  ;;  %v8035_v3 = vld [vmem:[#allocation11 + $0x38c] sm:$0xf]  ;;  %v7333_v21 = vor.u32 %v8207_v8, %v7332_v16  ;;  %v6641_v27 = vor.u32 %v8031_v14, %v6638_v15  ;;  %v6990_v44 = vld [vmem:[#allocation11 + $0x638] sm:$0xf0]  ;;  %v7300_v14 = vld [vmem:[#allocation13 + $0xa0] sm:$0xf] }
 0x23a   :  { %v8127_v18 = vld [vmem:[#allocation11 + $0x66c] sm:$0xf]  ;;  %v8183_v51 = vld [vmem:[#allocation13 + $0x24] sm:$0xf0]  ;;  %v8192_v8 = vld [vmem:[#allocation13 + $0x74] sm:$0xf] }
 0x23b   :  { %4116 = vmatpush.bf16.msrb.mxu0 %v6801_v30  ;;  %4054 = vmatpush.bf16.msrb.mxu3 %v7133_v2  ;;  %v8143_v30 = vld [vmem:[#allocation11 + $0x6ec] sm:$0xf]  ;;  %v8199_v15 = vld [vmem:[#allocation13 + $0xa4] sm:$0xf0] }
 0x23c   :  { %v7301_v16 = vor.u32 %v8199_v15, %v7300_v14 }
 0x23d   :  { %4129 = vmatpush.bf16.msrb.mxu1 %v6929_v31  ;;  %v7086_v31 = vld [vmem:[#allocation11 + $0x6f8] sm:$0xf0]  ;;  %4094 = vmatpush.bf16.msra.mxu2 %v6481_v5 }
 0x23e   :  { %v7089_v49 = vor.u32 %v8143_v30, %v7086_v31  ;;  %v7022_v5 = vld [vmem:[#allocation11 + $0x678] sm:$0xf0]  ;;  %v8123_v31 = vld [vmem:[#allocation11 + $0x64c] sm:$0xf] }
 0x23f   :  { %4117 = vmatpush.bf16.msrb.mxu0 %v6785_v40  ;;  %4055 = vmatpush.bf16.msrb.mxu3 %v7117_v20  ;;  %v8043_v40 = vld [vmem:[#allocation11 + $0x3cc] sm:$0xf]  ;;  %v7025_v28 = vor.u32 %v8127_v18, %v7022_v5  ;;  %v6622_v30 = vld [vmem:[#allocation11 + $0x358] sm:$0xf0]  ;;  %v8179_v5 = vld [vmem:[#allocation13 + $0x4] sm:$0xf0] }
 0x240   :  { %v6625_v39 = vor.u32 %v8027_v29, %v6622_v30  ;;  %v7198_v18 = vld [vmem:[#allocation11 + $0x7d8] sm:$0xf0]  ;;  %v8197_v29 = vld [vmem:[#allocation13 + $0x94] sm:$0xf0] }
 0x241   :  { %4130 = vmatpush.bf16.msrb.mxu1 %v6913_v41  ;;  %v6686_v41 = vld [vmem:[#allocation11 + $0x3d8] sm:$0xf0]  ;;  %4095 = vmatpush.bf16.msra.mxu2 %v6465_v35  ;;  %v7324_v35 = vld [vmem:[#allocation13 + $0xd0] sm:$0xf] }
 0x242   :  { %v6689_v32 = vor.u32 %v8043_v40, %v6686_v41  ;;  %v8023_v40 = vld [vmem:[#allocation11 + $0x32c] sm:$0xf]  ;;  %v6606_v41 = vld [vmem:[#allocation11 + $0x338] sm:$0xf0] }
 0x243   :  { %4118 = vmatpush.bf16.msrb.mxu0 %v6769_v62  ;;  %4056 = vmatpush.bf16.msrb.mxu3 %v7101_v56  ;;  %v7054_v62 = vld [vmem:[#allocation11 + $0x6b8] sm:$0xf0]  ;;  %v6609_v60 = vor.u32 %v8023_v40, %v6606_v41 }
 0x244   :  { %4096 = vmatmul.bf16.vlgmr.msra.gmra.mxu2 %v8829_v53  ;;  %v7057_v2 = vor.u32 %v8135_v61, %v7054_v62  ;;  %v7260_v53 = vld [vmem:[#allocation13 + $0x50] sm:$0xf]  ;;  %v7006_v56 = vld [vmem:[#allocation11 + $0x658] sm:$0xf0]  ;;  %v6993_v61 = vor.u32 %v8119_v42, %v6990_v44  ;;  %v8208_v42 = vld [vmem:[#allocation13 + $0xf4] sm:$0xf] }
 0x245   :  { %4131 = vmatpush.bf16.msrb.mxu1 %v6897_v63  ;;  %4140 = vmatpush.bf16.msrb.mxu2 %v7089_v49  ;;  %v7268_v63 = vld [vmem:[#allocation13 + $0x60] sm:$0xf]  ;;  %v7261_v20 = vor.u32 %v8189_v12, %v7260_v53  ;;  %v7325_v49 = vor.u32 %v8205_v36, %v7324_v35  ;;  %v7009_v38 = vor.u32 %v8123_v31, %v7006_v56  ;;  %v6590_v62 = vld [vmem:[#allocation11 + $0x318] sm:$0xf0]  ;;  %v8167_v31 = vld [vmem:[#allocation11 + $0x7ac] sm:$0xf] }
 0x246   :  { %4057 = vmatmul.bf16.vlgmr.msrb.gmra.mxu3 %v8857_v6  ;;  %v7269_v9 = vor.u32 %v8191_v0, %v7268_v63  ;;  %v8115_v63 = vld [vmem:[#allocation11 + $0x60c] sm:$0xf]  ;;  %v6974_v0 = vld [vmem:[#allocation11 + $0x618] sm:$0xf0]  ;;  %v8190_v56 = vld [vmem:[#allocation13 + $0x64] sm:$0xf] }
 0x247   :  { %4119 = vmatpush.bf16.msrb.mxu0 %v6753_v58  ;;  %4101 = vmatpush.bf16.msra.mxu3 %v6705_v37  ;;  %v7341_v58 = vor.u32 %v8209_v19, %v7340_v11  ;;  %v8185_v37 = vld [vmem:[#allocation13 + $0x34] sm:$0xf0]  ;;  %v6977_v12 = vor.u32 %v8115_v63, %v6974_v0  ;;  %v7270_v36 = vld [vmem:[#allocation13 + $0x68] sm:$0xf0]  ;;  %v7166_v40 = vld [vmem:[#allocation11 + $0x798] sm:$0xf0] }
 0x248   :  { %v7245_v43 = vor.u32 %v8185_v37, %v7244_v48  ;;  %v8181_v11 = vld [vmem:[#allocation13 + $0x14] sm:$0xf0]  ;;  %v7284_v48 = vld [vmem:[#allocation13 + $0x80] sm:$0xf]  ;;  %v8195_v37 = vld [vmem:[#allocation13 + $0x84] sm:$0xf0] }
 0x249   :  { %4132 = vmatpush.bf16.msrb.mxu1 %v6881_v22  ;;  %4141 = vmatpush.bf16.msrb.mxu2 %v7073_v55  ;;  %v6657_v22 = vor.u32 %v8035_v3, %v6654_v4  ;;  %v8019_v55 = vld [vmem:[#allocation11 + $0x30c] sm:$0xf]  ;;  %v7308_v4 = vld [vmem:[#allocation13 + $0xb0] sm:$0xf]  ;;  %v7285_v41 = vor.u32 %v8195_v37, %v7284_v48  ;;  %v8188_v44 = vld [vmem:[#allocation13 + $0x54] sm:$0xf] }
 0x24a   :  { %v8175_v3 = vld [vmem:[#allocation11 + $0x7ec] sm:$0xf]  ;;  %v7309_v19 = vor.u32 %v8201_v7, %v7308_v4  ;;  %v6593_v53 = vor.u32 %v8019_v55, %v6590_v62  ;;  %v8206_v55 = vld [vmem:[#allocation13 + $0xe4] sm:$0xf] }
 0x24b   :  { %4120 = vmatpush.bf16.msrb.mxu0 %v6737_v33  ;;  %4102 = vmatpush.bf16.msra.mxu3 %v6689_v32  ;;  %v8897_v33 = vpop.f32.mrf.mxu2  ;;  %v7254_v62 = vld [vmem:[#allocation13 + $0x48] sm:$0xf0] }
 0x24d   :  { %4133 = vmatpush.bf16.msrb.mxu1 %v6865_v34  ;;  %4142 = vmatpush.bf16.msrb.mxu2 %v7057_v2 }
 0x24f   :  { %4121 = vmatpush.bf16.msrb.mxu0 %v6721_v46  ;;  %4103 = vmatpush.bf16.msra.mxu3 %v6673_v1  ;;  %v8203_v46 = vld [vmem:[#allocation13 + $0xc4] sm:$0xf0] }
 0x250   :  { %v7317_v32 = vor.u32 %v8203_v46, %v7316_v45  ;;  %v7262_v45 = vld [vmem:[#allocation13 + $0x58] sm:$0xf0] }
 0x251   :  { %4134 = vmatpush.bf16.msrb.mxu1 %v6849_v47  ;;  %4143 = vmatpush.bf16.msrb.mxu2 %v7041_v13  ;;  %v8895_v24 = vpop.f32.mrf.mxu1  ;;  %v7236_v47 = vld [vmem:[#allocation13 + $0x20] sm:$0xf]  ;;  %v8171_v13 = vld [vmem:[#allocation11 + $0x7cc] sm:$0xf] }
 0x252   :  { %4122 = vmatmul.bf16.vlgmr.msrb.gmra.mxu0 %v8840_v17  ;;  %v8187_v17 = vld [vmem:[#allocation13 + $0x44] sm:$0xf0]  ;;  %v7237_v2 = vor.u32 %v8183_v51, %v7236_v47  ;;  %v8159_v47 = vld [vmem:[#allocation11 + $0x76c] sm:$0xf]  ;;  %v7265_v51 = vor.u32 %v8188_v44, %v7262_v45 }
 0x253   :  { %4564 = vmatpush.bf16.msra.mxu0 %v7277_v59  ;;  %4104 = vmatpush.bf16.msra.mxu3 %v6657_v22  ;;  %v7253_v34 = vor.u32 %v8187_v17, %v7252_v52  ;;  %v3839_v1 = vpop.f32.mrf.mxu2  ;;  %v7229_v22 = vor.u32 %v8181_v11, %v7228_v10  ;;  %v7278_v52 = vld [vmem:[#allocation13 + $0x78] sm:$0xf0]  ;;  %v8204_v10 = vld [vmem:[#allocation13 + $0xd4] sm:$0xf] }
 0x254   :  { %4135 = vmatmul.bf16.vlgmr.msrb.gmra.mxu1 %v8844_v50  ;;  %v8893_v50 = vpop.f32.mrf.mxu0  ;;  %v7281_v30 = vor.u32 %v8192_v8, %v7278_v52  ;;  %v8155_v1 = vld [vmem:[#allocation11 + $0x74c] sm:$0xf]  ;;  %v7326_v11 = vld [vmem:[#allocation13 + $0xd8] sm:$0xf0] }
 0x255   :  { %4577 = vmatpush.bf16.msra.mxu1 %v7341_v58  ;;  %4144 = vmatpush.bf16.msrb.mxu2 %v7025_v28  ;;  %v7292_v28 = vld [vmem:[#allocation13 + $0x90] sm:$0xf] }
 0x256   :  { %v7293_v35 = vor.u32 %v8197_v29, %v7292_v28  ;;  %v7238_v28 = vld [vmem:[#allocation13 + $0x28] sm:$0xf0] }
 0x257   :  { %4565 = vmatpush.bf16.msra.mxu0 %v7269_v9  ;;  %4105 = vmatpush.bf16.msra.mxu3 %v6641_v27  ;;  %v7214_v9 = vld [vmem:[#allocation11 + $0x7f8] sm:$0xf0] }
 0x258   :  { %v7217_v58 = vor.u32 %v8175_v3, %v7214_v9  ;;  %v7134_v9 = vld [vmem:[#allocation11 + $0x758] sm:$0xf0] }
 0x259   :  { %4578 = vmatpush.bf16.msra.mxu1 %v7333_v21  ;;  %4145 = vmatpush.bf16.msrb.mxu2 %v7009_v38  ;;  %v3930_v59 = vpop.f32.mrf.mxu1  ;;  %v7201_v21 = vor.u32 %v8171_v13, %v7198_v18  ;;  %v7273_v38 = vor.u32 %v8190_v56, %v7270_v36  ;;  %v7246_v13 = vld [vmem:[#allocation13 + $0x38] sm:$0xf0] }
 0x25a   :  { %v8906_v59 = vld [vmem:[%s8980_s6] sm:$0xf]  ;;  %v7118_v18 = vld [vmem:[#allocation11 + $0x738] sm:$0xf0] }
 0x25b   :  { %4566 = vmatpush.bf16.msra.mxu0 %v7261_v20  ;;  %4106 = vmatpush.bf16.msra.mxu3 %v6625_v39  ;;  %v7220_v20 = vld [vmem:[#allocation13] sm:$0xf]  ;;  %v8899_v17 = vpop.f32.mrf.mxu2  ;;  %v8163_v39 = vld [vmem:[#allocation11 + $0x78c] sm:$0xf]  ;;  %v7102_v56 = vld [vmem:[#allocation11 + $0x718] sm:$0xf0] }
 0x25c   :  { %v3917_v57 = vpop.f32.mrf.mxu0  ;;  %v7221_v27 = vor.u32 %v8179_v5, %v7220_v20  ;;  %v8202_v5 = vld [vmem:[#allocation13 + $0xc4] sm:$0xf]  ;;  %v7310_v36 = vld [vmem:[#allocation13 + $0xb8] sm:$0xf0] }
 0x25d   :  { %4579 = vmatpush.bf16.msra.mxu1 %v7325_v49  ;;  %4146 = vmatpush.bf16.msrb.mxu2 %v6993_v61  ;;  %v7334_v57 = vld [vmem:[#allocation13 + $0xe8] sm:$0xf0]  ;;  %v8186_v61 = vld [vmem:[#allocation13 + $0x44] sm:$0xf] }
 0x25e   :  { %v7337_v63 = vor.u32 %v8206_v55, %v7334_v57  ;;  %v7257_v7 = vor.u32 %v8186_v61, %v7254_v62  ;;  %v7294_v55 = vld [vmem:[#allocation13 + $0x98] sm:$0xf0]  ;;  %v3890_v62 = vadd.f32 %v8899_v17, %v8887_v23  ;;  %v7388_v23 = vld [vmem:[#allocation13 + $0x150] sm:$0xf]  ;;  %v8221_v17 = vld [vmem:[#allocation13 + $0x154] sm:$0xf0] }
 0x25f   :  { %4567 = vmatpush.bf16.msra.mxu0 %v7253_v34  ;;  %4107 = vmatpush.bf16.msra.mxu3 %v6609_v60  ;;  %v7182_v34 = vld [vmem:[#allocation11 + $0x7b8] sm:$0xf0]  ;;  %v2464_v60 = vperm.slane %v8906_v59, 2 }
 0x260   :  { %v7185_v49 = vor.u32 %v8167_v31, %v7182_v34 }
 0x261   :  { %4580 = vmatpush.bf16.msra.mxu1 %v7317_v32  ;;  %4147 = vmatpush.bf16.msrb.mxu2 %v6977_v12  ;;  %v7150_v32 = vld [vmem:[#allocation11 + $0x778] sm:$0xf0]  ;;  %v7329_v12 = vor.u32 %v8204_v10, %v7326_v11 }
 0x262   :  { %v7153_v0 = vor.u32 %v8159_v47, %v7150_v32  ;;  %v8196_v32 = vld [vmem:[#allocation13 + $0x94] sm:$0xf] }
 0x263   :  { %4568 = vmatpush.bf16.msra.mxu0 %v7245_v43  ;;  %4108 = vmatpush.bf16.msra.mxu3 %v6593_v53  ;;  %v7342_v43 = vld [vmem:[#allocation13 + $0xf8] sm:$0xf0]  ;;  %v7297_v61 = vor.u32 %v8196_v32, %v7294_v55 }
 0x264   :  { %4148 = vmatmul.bf16.vlgmr.msrb.gmra.mxu2 %v8850_v25  ;;  %v7345_v46 = vor.u32 %v8208_v42, %v7342_v43  ;;  %v7169_v25 = vor.u32 %v8163_v39, %v7166_v40  ;;  %v7230_v39 = vld [vmem:[#allocation13 + $0x18] sm:$0xf0]  ;;  %v8198_v40 = vld [vmem:[#allocation13 + $0xa4] sm:$0xf]  ;;  %v7404_v42 = vld [vmem:[#allocation13 + $0x170] sm:$0xf] }
 0x265   :  { %4581 = vmatpush.bf16.msra.mxu1 %v7309_v19  ;;  %v3850_v53 = vpop.f32.mrf.mxu3  ;;  %v8225_v43 = vld [vmem:[#allocation13 + $0x174] sm:$0xf0] }
 0x266   :  { %4109 = vmatmul.bf16.vlgmr.msra.gmra.mxu3 %v8831_v54  ;;  %v3891_v54 = vpop.f32.mrf.mxu2 }
 0x267   :  { %4569 = vmatpush.bf16.msra.mxu0 %v7237_v2  ;;  %4153 = vmatpush.bf16.msrb.mxu3 %v7217_v58  ;;  %v3838_v2 = vadd.f32 %v8897_v33, %v8884_v26  ;;  %v7137_v26 = vor.u32 %v8155_v1, %v7134_v9  ;;  %v8151_v33 = vld [vmem:[#allocation11 + $0x72c] sm:$0xf] }
 0x268   :  { %v7121_v29 = vor.u32 %v8151_v33, %v7118_v18 }
 0x269   :  { %4582 = vmatpush.bf16.msra.mxu1 %v7301_v16  ;;  %v3851_v58 = vadd.f32 %v3850_v53, %v3838_v2  ;;  %v7318_v16 = vld [vmem:[#allocation13 + $0xc8] sm:$0xf0] }
 0x26a   :  { %v7321_v52 = vor.u32 %v8202_v5, %v7318_v16 }
 0x26b   :  { %4570 = vmatpush.bf16.msra.mxu0 %v7229_v22  ;;  %4154 = vmatpush.bf16.msrb.mxu3 %v7201_v21  ;;  %v8184_v22 = vld [vmem:[#allocation13 + $0x34] sm:$0xf]  ;;  %v4166_v20 = vmax.f32 %v3851_v58, 0.0  ;;  %v7380_v58 = vld [vmem:[#allocation13 + $0x140] sm:$0xf] }
 0x26c   :  { %v7249_v8 = vor.u32 %v8184_v22, %v7246_v13  ;;  %v8219_v22 = vld [vmem:[#allocation13 + $0x144] sm:$0xf0] }
 0x26d   :  { %4583 = vmatpush.bf16.msra.mxu1 %v7293_v35  ;;  %v4170_v21 = vpack.c.bf16 %v4166_v20, %v4166_v20  ;;  %v8200_v35 = vld [vmem:[#allocation13 + $0xb4] sm:$0xf]  ;;  %v3852_v48 = vpop.f32.mrf.mxu3  ;;  %v8217_v20 = vld [vmem:[#allocation13 + $0x134] sm:$0xf0] }
 0x26e   :  { %v8913_v15 = vpop.f32.mrf.mxu2  ;;  %v7406_v48 = vld [vmem:[#allocation13 + $0x178] sm:$0xf0] }
 0x26f   :  { %4571 = vmatpush.bf16.msra.mxu0 %v7221_v27  ;;  %4155 = vmatpush.bf16.msrb.mxu3 %v7185_v49  ;;  %v3967_v3 = vpop.f32.mrf.mxu0  ;;  %v8182_v27 = vld [vmem:[#allocation13 + $0x24] sm:$0xf]  ;;  %v8180_v49 = vld [vmem:[#allocation13 + $0x14] sm:$0xf] }
 0x270   :  { %v3968_v19 = vadd.f32 %v3967_v3, %v2464_v60  ;;  %v7241_v37 = vor.u32 %v8182_v27, %v7238_v28  ;;  %v7233_v54 = vor.u32 %v8180_v49, %v7230_v39  ;;  %v8215_v27 = vld [vmem:[#allocation13 + $0x124] sm:$0xf0]  ;;  %v8222_v39 = vld [vmem:[#allocation13 + $0x164] sm:$0xf] }
 0x271   :  { %4584 = vmatpush.bf16.msra.mxu1 %v7285_v41  ;;  %v3980_v4 = vpop.f32.mrf.mxu1  ;;  %v7302_v41 = vld [vmem:[#allocation13 + $0xa8] sm:$0xf0] }
 0x272   :  { %v8911_v14 = vadd.f32 %v3980_v4, %v3968_v19  ;;  %4572 = vmatmul.bf16.vlgmr.msra.gmra.mxu0 %v4170_v21  ;;  %v7305_v47 = vor.u32 %v8198_v40, %v7302_v41  ;;  %v7396_v4 = vld [vmem:[#allocation13 + $0x160] sm:$0xf]  ;;  %v7389_v19 = vor.u32 %v8221_v17, %v7388_v23  ;;  %v2465_v41 = vperm.slane %v8906_v59, 3  ;;  %v7452_v17 = vld [vmem:[#allocation13 + $0x1d0] sm:$0xf] }
 0x273   :  { %4616 = vmatpush.bf16.msrb.mxu0 %v7281_v30  ;;  %4156 = vmatpush.bf16.msrb.mxu3 %v7169_v25  ;;  %v8147_v30 = vld [vmem:[#allocation11 + $0x70c] sm:$0xf]  ;;  %v8178_v25 = vld [vmem:[#allocation13 + $0x4] sm:$0xf] }
 0x274   :  { %v7105_v45 = vor.u32 %v8147_v30, %v7102_v56  ;;  %v8213_v30 = vld [vmem:[#allocation13 + $0x114] sm:$0xf0]  ;;  %v7348_v56 = vld [vmem:[#allocation13 + $0x100] sm:$0xf] }
 0x275   :  { %4629 = vmatpush.bf16.msrb.mxu1 %v7345_v46  ;;  %v7405_v46 = vor.u32 %v8225_v43, %v7404_v42  ;;  %v3902_v57 = vpop.f32.mrf.mxu3  ;;  %v8220_v42 = vld [vmem:[#allocation13 + $0x154] sm:$0xf]  ;;  %v7390_v43 = vld [vmem:[#allocation13 + $0x158] sm:$0xf0] }
 0x276   :  { %v3943_v44 = vpop.f32.mrf.mxu2  ;;  %v3903_v1 = vadd.f32 %v3902_v57, %v3890_v62  ;;  %v8216_v62 = vld [vmem:[#allocation13 + $0x134] sm:$0xf] }
 0x277   :  { %4617 = vmatpush.bf16.msrb.mxu0 %v7273_v38  ;;  %4157 = vmatpush.bf16.msrb.mxu3 %v7153_v0  ;;  %v3969_v31 = vpop.f32.mrf.mxu0  ;;  %v7313_v38 = vor.u32 %v8200_v35, %v7310_v36  ;;  %v7286_v0 = vld [vmem:[#allocation13 + $0x88] sm:$0xf0]  ;;  %v8211_v35 = vld [vmem:[#allocation13 + $0x104] sm:$0xf0]  ;;  %v8224_v36 = vld [vmem:[#allocation13 + $0x174] sm:$0xf]  ;;  %v7393_v44 = vor.u32 %v8220_v42, %v7390_v43 }
 0x278   :  { %4590 = vmatpush.bf16.msra.mxu2 %v7405_v46  ;;  %v3916_v3 = vadd.f32 %v8893_v50, %v3903_v1  ;;  %v7409_v49 = vor.u32 %v8224_v36, %v7406_v48  ;;  %v8240_v42 = vld [vmem:[#allocation13 + $0x1f4] sm:$0xf] }
 0x279   :  { %4630 = vmatpush.bf16.msrb.mxu1 %v7337_v63  ;;  %v3982_v34 = vpop.f32.mrf.mxu1  ;;  %v8194_v63 = vld [vmem:[#allocation13 + $0x84] sm:$0xf] }
 0x27a   :  { %v7289_v2 = vor.u32 %v8194_v63, %v7286_v0  ;;  %v3929_v11 = vadd.f32 %v8895_v24, %v3916_v3  ;;  %v7372_v24 = vld [vmem:[#allocation13 + $0x130] sm:$0xf]  ;;  %v7374_v63 = vld [vmem:[#allocation13 + $0x138] sm:$0xf0]  ;;  %v7460_v3 = vld [vmem:[#allocation13 + $0x1e0] sm:$0xf] }
 0x27b   :  { %4618 = vmatpush.bf16.msrb.mxu0 %v7265_v51  ;;  %4158 = vmatpush.bf16.msrb.mxu3 %v7137_v26  ;;  %v7222_v51 = vld [vmem:[#allocation13 + $0x8] sm:$0xf0]  ;;  %v7381_v26 = vor.u32 %v8219_v22, %v7380_v58  ;;  %v7373_v16 = vor.u32 %v8217_v20, %v7372_v24  ;;  %v8212_v58 = vld [vmem:[#allocation13 + $0x114] sm:$0xf]  ;;  %v7358_v22 = vld [vmem:[#allocation13 + $0x118] sm:$0xf0] }
 0x27c   :  { %v7225_v60 = vor.u32 %v8178_v25, %v7222_v51  ;;  %v3942_v50 = vadd.f32 %v8913_v15, %v3929_v11  ;;  %v7356_v15 = vld [vmem:[#allocation13 + $0x110] sm:$0xf]  ;;  %v7382_v51 = vld [vmem:[#allocation13 + $0x148] sm:$0xf0]  ;;  %v8210_v24 = vld [vmem:[#allocation13 + $0x104] sm:$0xf] }
 0x27d   :  { %4631 = vmatpush.bf16.msrb.mxu1 %v7329_v12  ;;  %v3904_v9 = vpop.f32.mrf.mxu3  ;;  %v7357_v34 = vor.u32 %v8213_v30, %v7356_v15  ;;  %v7350_v20 = vld [vmem:[#allocation13 + $0x108] sm:$0xf0]  ;;  %v7428_v15 = vld [vmem:[#allocation13 + $0x1a0] sm:$0xf]  ;;  %v8231_v30 = vld [vmem:[#allocation13 + $0x1a4] sm:$0xf0] }
 0x27f   :  { %4619 = vmatpush.bf16.msrb.mxu0 %v7257_v7  ;;  %4159 = vmatpush.bf16.msrb.mxu3 %v7121_v29  ;;  %v8223_v7 = vld [vmem:[#allocation13 + $0x164] sm:$0xf0] }
 0x280   :  { %v7397_v10 = vor.u32 %v8223_v7, %v7396_v4  ;;  %v8239_v4 = vld [vmem:[#allocation13 + $0x1e4] sm:$0xf0]  ;;  %v8214_v7 = vld [vmem:[#allocation13 + $0x124] sm:$0xf] }
 0x281   :  { %4632 = vmatpush.bf16.msrb.mxu1 %v7321_v52  ;;  %v7461_v9 = vor.u32 %v8239_v4, %v7460_v3  ;;  %v8230_v4 = vld [vmem:[#allocation13 + $0x1a4] sm:$0xf] }
 0x282   :  { %4591 = vmatpush.bf16.msra.mxu2 %v7397_v10  ;;  %v7366_v10 = vld [vmem:[#allocation13 + $0x128] sm:$0xf0] }
 0x283   :  { %4620 = vmatpush.bf16.msrb.mxu0 %v7249_v8  ;;  %4160 = vmatpush.bf16.msrb.mxu3 %v7105_v45  ;;  %v7369_v23 = vor.u32 %v8214_v7, %v7366_v10  ;;  %v7430_v7 = vld [vmem:[#allocation13 + $0x1a8] sm:$0xf0]  ;;  %v8264_v10 = vld [vmem:[#allocation16 + $0x30] sm:$0xff] }
 0x285   :  { %4633 = vmatpush.bf16.msrb.mxu1 %v7313_v38  ;;  %v3954_v13 = vpop.f32.mrf.mxu3  ;;  %v7398_v38 = vld [vmem:[#allocation13 + $0x168] sm:$0xf0] }
 0x286   :  { %4161 = vmatmul.bf16.vlgmr.msrb.gmra.mxu3 %v8857_v6  ;;  %4592 = vmatpush.bf16.msra.mxu2 %v7389_v19  ;;  %v3955_v33 = vadd.f32 %v3954_v13, %v3942_v50  ;;  %v7401_v40 = vor.u32 %v8222_v39, %v7398_v38  ;;  %v8237_v19 = vld [vmem:[#allocation13 + $0x1d4] sm:$0xf0]  ;;  %v7412_v39 = vld [vmem:[#allocation13 + $0x180] sm:$0xf]  ;;  %v8227_v38 = vld [vmem:[#allocation13 + $0x184] sm:$0xf0] }
 0x287   :  { %4621 = vmatpush.bf16.msrb.mxu0 %v7241_v37  ;;  %v8924_v12 = vpop.f32.mrf.mxu2  ;;  %v7349_v37 = vor.u32 %v8211_v35, %v7348_v56  ;;  %v7453_v13 = vor.u32 %v8237_v19, %v7452_v17  ;;  %v7420_v56 = vld [vmem:[#allocation13 + $0x190] sm:$0xf]  ;;  %v8229_v35 = vld [vmem:[#allocation13 + $0x194] sm:$0xf0] }
 0x288   :  { %v4167_v18 = vmax.f32 %v3955_v33, 0.0  ;;  %v7444_v33 = vld [vmem:[#allocation13 + $0x1c0] sm:$0xf]  ;;  %v7421_v48 = vor.u32 %v8229_v35, %v7420_v56  ;;  %v8255_v56 = vld [vmem:[#allocation14 + $0x68] sm:$0xff] }
 0x289   :  { %4634 = vmatpush.bf16.msrb.mxu1 %v7305_v47  ;;  %v8218_v47 = vld [vmem:[#allocation13 + $0x144] sm:$0xf] }
 0x28a   :  { %4593 = vmatpush.bf16.msra.mxu2 %v7381_v26  ;;  %v4171_v8 = vpack.c.bf16 %v4167_v18, %v4167_v18  ;;  %v7385_v57 = vor.u32 %v8218_v47, %v7382_v51  ;;  %v7361_v26 = vor.u32 %v8212_v58, %v7358_v22  ;;  %v8235_v18 = vld [vmem:[#allocation13 + $0x1c4] sm:$0xf0]  ;;  %v8226_v22 = vld [vmem:[#allocation13 + $0x184] sm:$0xf] }
 0x28b   :  { %4622 = vmatpush.bf16.msrb.mxu0 %v7233_v54  ;;  %v8263_v58 = vld [vmem:[#allocation16 + $0x28] sm:$0xff]  ;;  %v8258_v35 = vld [vmem:[#allocation16] sm:$0xff] }
 0x28c   :  { %4585 = vmatmul.bf16.vlgmr.msra.gmra.mxu1 %v4171_v8 }
 0x28d   :  { %4635 = vmatpush.bf16.msrb.mxu1 %v7297_v61  ;;  %v3956_v31 = vpop.f32.mrf.mxu3  ;;  %v8241_v61 = vld [vmem:[#allocation13 + $0x1f4] sm:$0xf0] }
 0x28e   :  { %4594 = vmatpush.bf16.msra.mxu2 %v7373_v16  ;;  %v7445_v16 = vor.u32 %v8235_v18, %v7444_v33  ;;  %v7429_v31 = vor.u32 %v8231_v30, %v7428_v15  ;;  %v8262_v33 = vld [vmem:[#allocation16 + $0x20] sm:$0xff]  ;;  %v8259_v15 = vld [vmem:[#allocation16 + $0x8] sm:$0xff] }
 0x28f   :  { %4623 = vmatpush.bf16.msrb.mxu0 %v7225_v60  ;;  %v8920_v6 = vpop.f32.mrf.mxu0  ;;  %v3995_v29 = vpop.f32.mrf.mxu2  ;;  %v7468_v60 = vld [vmem:[#allocation13 + $0x1f0] sm:$0xf]  ;;  %v8247_v30 = vld [vmem:[#allocation14 + $0x28] sm:$0xff] }
 0x290   :  { %v7469_v59 = vor.u32 %v8241_v61, %v7468_v60  ;;  %v7454_v60 = vld [vmem:[#allocation13 + $0x1d8] sm:$0xf0]  ;;  %v8234_v61 = vld [vmem:[#allocation13 + $0x1c4] sm:$0xf] }
 0x291   :  { %4636 = vmatpush.bf16.msrb.mxu1 %v7289_v2  ;;  %v8922_v53 = vpop.f32.mrf.mxu1  ;;  %v7377_v2 = vor.u32 %v8216_v62, %v7374_v63 }
 0x292   :  { %4624 = vmatmul.bf16.vlgmr.msrb.gmra.mxu0 %v4170_v21  ;;  %v7364_v21 = vld [vmem:[#allocation13 + $0x120] sm:$0xf]  ;;  %4603 = vmatpush.bf16.msra.mxu3 %v7469_v59  ;;  %v7446_v59 = vld [vmem:[#allocation13 + $0x1c8] sm:$0xf0] }
 0x293   :  { %v7365_v28 = vor.u32 %v8215_v27, %v7364_v21  ;;  %v7436_v21 = vld [vmem:[#allocation13 + $0x1b0] sm:$0xf]  ;;  %v8233_v27 = vld [vmem:[#allocation13 + $0x1b4] sm:$0xf0]  ;;  %v7449_v63 = vor.u32 %v8234_v61, %v7446_v59  ;;  %v8271_v59 = vld [vmem:[#allocation16 + $0x68] sm:$0xff] }
 0x294   :  { %v7437_v29 = vor.u32 %v8233_v27, %v7436_v21  ;;  %v8260_v21 = vld [vmem:[#allocation16 + $0x10] sm:$0xff] }
 0x295   :  { %4595 = vmatpush.bf16.msra.mxu2 %v7365_v28  ;;  %v8248_v27 = vld [vmem:[#allocation14 + $0x30] sm:$0xff] }
 0x296   :  { %4604 = vmatpush.bf16.msra.mxu3 %v7461_v9  ;;  %v7433_v9 = vor.u32 %v8230_v4, %v7430_v7  ;;  %v8269_v4 = vld [vmem:[#allocation16 + $0x58] sm:$0xff] }
 0x297   :  { %v4021_v5 = vpop.f32.mrf.mxu0 }
 0x298   :  { %v3994_v5 = vadd.f32 %v8924_v12, %v8911_v14 }
 0x299   :  { %v4034_v52 = vpop.f32.mrf.mxu1  ;;  %4596 = vmatpush.bf16.msra.mxu2 %v7357_v34 }
 0x29a   :  { %4605 = vmatpush.bf16.msra.mxu3 %v7453_v13  ;;  %v7414_v13 = vld [vmem:[#allocation13 + $0x188] sm:$0xf0] }
 0x29c   :  { %4637 = vmatmul.bf16.vlgmr.msrb.gmra.mxu1 %v4171_v8  ;;  %v7353_v8 = vor.u32 %v8210_v24, %v7350_v20  ;;  %v8261_v20 = vld [vmem:[#allocation16 + $0x18] sm:$0xff] }
 0x29d   :  { %4597 = vmatpush.bf16.msra.mxu2 %v7349_v37 }
 0x29e   :  { %4606 = vmatpush.bf16.msra.mxu3 %v7445_v16 }
 0x2a1   :  { %4642 = vmatpush.bf16.msrb.mxu2 %v7409_v49 }
 0x2a2   :  { %4607 = vmatpush.bf16.msra.mxu3 %v7437_v29  ;;  %v8256_v29 = vld [vmem:[#allocation14 + $0x70] sm:$0xff] }
 0x2a5   :  { %4643 = vmatpush.bf16.msrb.mxu2 %v7401_v40  ;;  %v4006_v25 = vpop.f32.mrf.mxu3 }
 0x2a6   :  { %v4007_v52 = vadd.f32 %v4006_v25, %v3994_v5  ;;  %4608 = vmatpush.bf16.msra.mxu3 %v7429_v31  ;;  %v8249_v5 = vld [vmem:[#allocation14 + $0x38] sm:$0xff] }
 0x2a7   :  { %v4045_v55 = vpop.f32.mrf.mxu2  ;;  %4812 = vmatpush.bf16.msra.mxu0 %v8249_v5 }
 0x2a8   :  { %v4020_v28 = vadd.f32 %v8920_v6, %v4007_v52 }
 0x2a9   :  { %4644 = vmatpush.bf16.msrb.mxu2 %v7393_v44 }
 0x2aa   :  { %v4033_v34 = vadd.f32 %v8922_v53, %v4020_v28  ;;  %4609 = vmatpush.bf16.msra.mxu3 %v7421_v48  ;;  %v7470_v53 = vld [vmem:[#allocation13 + $0x1f8] sm:$0xf0]  ;;  %v4672_v48 = vld [vmem:[#allocation5] sm:$0xff] }
 0x2ab   :  { %v7473_v43 = vor.u32 %v8240_v42, %v7470_v53  ;;  %4813 = vmatpush.bf16.msra.mxu0 %v8248_v27  ;;  %v8244_v53 = vld [vmem:[#allocation14 + $0x10] sm:$0xff] }
 0x2ac   :  { %v4046_v36 = vadd.f32 %v4045_v55, %v4033_v34 }
 0x2ad   :  { %4645 = vmatpush.bf16.msrb.mxu2 %v7385_v57  ;;  %v4008_v11 = vpop.f32.mrf.mxu3  ;;  %v8236_v57 = vld [vmem:[#allocation13 + $0x1d4] sm:$0xf] }
 0x2ae   :  { %v7457_v62 = vor.u32 %v8236_v57, %v7454_v60  ;;  %v8228_v11 = vld [vmem:[#allocation13 + $0x194] sm:$0xf]  ;;  %v8242_v57 = vld [vmem:[#allocation14] sm:$0xff] }
 0x2af   :  { %v4071_v45 = vpop.f32.mrf.mxu0  ;;  %v4047_v50 = vpop.f32.mrf.mxu2  ;;  %4814 = vmatpush.bf16.msra.mxu0 %v8247_v30  ;;  %v8250_v60 = vld [vmem:[#allocation14 + $0x40] sm:$0xff] }
 0x2b0   :  { %v4072_v54 = vadd.f32 %v4071_v45, %v2465_v41  ;;  %v7413_v41 = vor.u32 %v8227_v38, %v7412_v39  ;;  %v8238_v45 = vld [vmem:[#allocation13 + $0x1e4] sm:$0xf]  ;;  %v8245_v39 = vld [vmem:[#allocation14 + $0x18] sm:$0xff] }
 0x2b1   :  { %v4084_v46 = vpop.f32.mrf.mxu1  ;;  %4646 = vmatpush.bf16.msrb.mxu2 %v7377_v2  ;;  %v8265_v2 = vld [vmem:[#allocation16 + $0x38] sm:$0xff] }
 0x2b2   :  { %v8928_v32 = vadd.f32 %v4084_v46, %v4072_v54  ;;  %4610 = vmatpush.bf16.msra.mxu3 %v7413_v41  ;;  %v7462_v46 = vld [vmem:[#allocation13 + $0x1e8] sm:$0xf0]  ;;  %v8253_v41 = vld [vmem:[#allocation14 + $0x58] sm:$0xff] }
 0x2b3   :  { %v7465_v47 = vor.u32 %v8238_v45, %v7462_v46  ;;  %v8252_v45 = vld [vmem:[#allocation14 + $0x50] sm:$0xff] }
 0x2b5   :  { %4647 = vmatpush.bf16.msrb.mxu2 %v7369_v23  ;;  %v7422_v23 = vld [vmem:[#allocation13 + $0x198] sm:$0xf0] }
 0x2b6   :  { %4655 = vmatpush.bf16.msrb.mxu3 %v7473_v43  ;;  %v7425_v17 = vor.u32 %v8228_v11, %v7422_v23  ;;  %v8267_v11 = vld [vmem:[#allocation16 + $0x48] sm:$0xff] }
 0x2b7   :  { %v4073_v0 = vpop.f32.mrf.mxu0 }
 0x2b8   :  { %v8232_v0 = vld [vmem:[#allocation13 + $0x1b4] sm:$0xf] }
 0x2b9   :  { %v4086_v1 = vpop.f32.mrf.mxu1  ;;  %4648 = vmatpush.bf16.msrb.mxu2 %v7361_v26  ;;  %v7417_v26 = vor.u32 %v8226_v22, %v7414_v13 }
 0x2ba   :  { %4656 = vmatpush.bf16.msrb.mxu3 %v7465_v47  ;;  %v7438_v1 = vld [vmem:[#allocation13 + $0x1b8] sm:$0xf0] }
 0x2bb   :  { %v7441_v3 = vor.u32 %v8232_v0, %v7438_v1 }
 0x2bd   :  { %4649 = vmatpush.bf16.msrb.mxu2 %v7353_v8  ;;  %v8257_v8 = vld [vmem:[#allocation14 + $0x78] sm:$0xff] }
 0x2be   :  { %4657 = vmatpush.bf16.msrb.mxu3 %v7457_v62  ;;  %4825 = vmatpush.bf16.msra.mxu1 %v8257_v8  ;;  %v4711_v62 = vunpack.c.h.b16 %v4672_v48 }
 0x2c0   :  { %v4713_v0 = vpack.c.b16 %v4711_v62, %v4711_v62 }
 0x2c2   :  { %4658 = vmatpush.bf16.msrb.mxu3 %v7449_v63  ;;  %4826 = vmatpush.bf16.msra.mxu1 %v8256_v29  ;;  %v7654_v29 = vld [vmem:[#allocation17 + $0x68] sm:$0xf0] }
 0x2c6   :  { %4659 = vmatpush.bf16.msrb.mxu3 %v7441_v3  ;;  %4827 = vmatpush.bf16.msra.mxu1 %v8255_v56  ;;  %v8284_v56 = vld [vmem:[#allocation17 + $0x54] sm:$0xf] }
 0x2c7   :  { %v8938_v49 = vpop.f32.mrf.mxu2 }
 0x2c8   :  { %v4098_v52 = vadd.f32 %v8938_v49, %v8928_v32  ;;  %v4710_v32 = vunpack.c.l.b16 %v4672_v48  ;;  %v8254_v49 = vld [vmem:[#allocation14 + $0x60] sm:$0xff] }
 0x2c9   :  { %v4058_v37 = vpop.f32.mrf.mxu3  ;;  %v7636_v48 = vld [vmem:[#allocation17 + $0x40] sm:$0xf] }
 0x2ca   :  { %v4059_v6 = vadd.f32 %v4058_v37, %v4046_v36  ;;  %4660 = vmatpush.bf16.msrb.mxu3 %v7433_v9  ;;  %v8246_v36 = vld [vmem:[#allocation14 + $0x20] sm:$0xff]  ;;  %4828 = vmatpush.bf16.msra.mxu1 %v8254_v49  ;;  %v8268_v9 = vld [vmem:[#allocation16 + $0x50] sm:$0xff] }
 0x2cb   :  { %4815 = vmatpush.bf16.msra.mxu0 %v8246_v36  ;;  %v7646_v36 = vld [vmem:[#allocation17 + $0x58] sm:$0xf0]  ;;  %v8282_v49 = vld [vmem:[#allocation17 + $0x44] sm:$0xf] }
 0x2cc   :  { %v4168_v40 = vmax.f32 %v4059_v6, 0.0  ;;  %v4712_v6 = vpack.c.b16 %v4710_v32, %v4710_v32  ;;  %v8283_v32 = vld [vmem:[#allocation17 + $0x44] sm:$0xf0] }
 0x2ce   :  { %v4172_v44 = vpack.c.bf16 %v4168_v40, %v4168_v40  ;;  %4661 = vmatpush.bf16.msrb.mxu3 %v7425_v17  ;;  %4829 = vmatpush.bf16.msra.mxu1 %v8253_v41 }
 0x2cf   :  { %v8934_v14 = vpop.f32.mrf.mxu0  ;;  %v4099_v55 = vpop.f32.mrf.mxu2  ;;  %4816 = vmatpush.bf16.msra.mxu0 %v8245_v39  ;;  %v7637_v39 = vor.u32 %v8283_v32, %v7636_v48 }
 0x2d0   :  { %4598 = vmatmul.bf16.vlgmr.msra.gmra.mxu2 %v4172_v44  ;;  %v8251_v55 = vld [vmem:[#allocation14 + $0x48] sm:$0xff] }
 0x2d1   :  { %v8936_v12 = vpop.f32.mrf.mxu1  ;;  %v4060_v51 = vpop.f32.mrf.mxu3  ;;  %4970 = vmatpush.bf16.msra.mxu2 %v8265_v2  ;;  %v8270_v2 = vld [vmem:[#allocation16 + $0x60] sm:$0xff] }
 0x2d2   :  { %4662 = vmatpush.bf16.msrb.mxu3 %v7417_v26  ;;  %4830 = vmatpush.bf16.msra.mxu1 %v8252_v45  ;;  %v8272_v51 = vld [vmem:[#allocation16 + $0x70] sm:$0xff] }
 0x2d3   :  { %4817 = vmatpush.bf16.msra.mxu0 %v8244_v53  ;;  %v7628_v53 = vld [vmem:[#allocation17 + $0x30] sm:$0xf] }
 0x2d5   :  { %4971 = vmatpush.bf16.msra.mxu2 %v8264_v10 }
 0x2d6   :  { %4831 = vmatpush.bf16.msra.mxu1 %v8251_v55  ;;  %v8279_v55 = vld [vmem:[#allocation17 + $0x24] sm:$0xf0] }
 0x2d7   :  { %v4125_v54 = vpop.f32.mrf.mxu0 }
 0x2d8   :  { %v4238_v54 = vld [vmem:[%s8982_s8] sm:$0x3] }
 0x2d9   :  { %v4138_v25 = vpop.f32.mrf.mxu1  ;;  %4972 = vmatpush.bf16.msra.mxu2 %v8263_v58  ;;  %v4240_v61 = vperm.slane %v4238_v54, 0  ;;  %v4241_v10 = vperm.slane %v4238_v54, 1 }
 0x2da   :  { %4832 = vmatpush.bf16.msra.mxu1 %v8250_v60  ;;  %v7622_v60 = vld [vmem:[#allocation17 + $0x28] sm:$0xf0] }
 0x2dd   :  { %4973 = vmatpush.bf16.msra.mxu2 %v8262_v33  ;;  %4833 = vmatmul.bf16.vlgmr.msra.gmra.mxu1 %v4713_v0 }
 0x2e0   :  { %4650 = vmatmul.bf16.vlgmr.msrb.gmra.mxu2 %v4172_v44  ;;  %v8273_v44 = vld [vmem:[#allocation16 + $0x78] sm:$0xff] }
 0x2e1   :  { %4974 = vmatpush.bf16.msra.mxu2 %v8261_v20  ;;  %v8288_v20 = vld [vmem:[#allocation17 + $0x74] sm:$0xf] }
 0x2e5   :  { %4975 = vmatpush.bf16.msra.mxu2 %v8260_v21  ;;  %v8287_v21 = vld [vmem:[#allocation17 + $0x64] sm:$0xf0] }
 0x2e7   :  { %v4149_v50 = vpop.f32.mrf.mxu2 }
 0x2e9   :  { %v4110_v19 = vpop.f32.mrf.mxu3  ;;  %4976 = vmatpush.bf16.msra.mxu2 %v8259_v15 }
 0x2ea   :  { %v4111_v28 = vadd.f32 %v4110_v19, %v4098_v52  ;;  %v8266_v19 = vld [vmem:[#allocation16 + $0x40] sm:$0xff] }
 0x2eb   :  { %v7652_v52 = vld [vmem:[#allocation17 + $0x60] sm:$0xf] }
 0x2ec   :  { %v4124_v31 = vadd.f32 %v8934_v14, %v4111_v28  ;;  %v7653_v27 = vor.u32 %v8287_v21, %v7652_v52  ;;  %v8286_v28 = vld [vmem:[#allocation17 + $0x64] sm:$0xf] }
 0x2ed   :  { %4977 = vmatpush.bf16.msra.mxu2 %v8258_v35  ;;  %v7657_v30 = vor.u32 %v8286_v28, %v7654_v29 }
 0x2ee   :  { %v4137_v37 = vadd.f32 %v8936_v12, %v4124_v31  ;;  %v8243_v12 = vld [vmem:[#allocation14 + $0x8] sm:$0xff]  ;;  %v7644_v31 = vld [vmem:[#allocation17 + $0x50] sm:$0xf] }
 0x2ef   :  { %v4151_v24 = vpop.f32.mrf.mxu2  ;;  %v8940_v16 = vpop.f32.mrf.mxu0  ;;  %4818 = vmatpush.bf16.msra.mxu0 %v8243_v12 }
 0x2f0   :  { %4978 = vmatmul.bf16.vlgmr.msra.gmra.mxu2 %v4712_v6  ;;  %v4150_v38 = vadd.f32 %v4149_v50, %v4137_v37  ;;  %v4574_v63 = vadd.f32 %v8940_v16, %v4240_v61  ;;  %v8289_v24 = vld [vmem:[#allocation17 + $0x74] sm:$0xf0]  ;;  %v7662_v16 = vld [vmem:[#allocation17 + $0x78] sm:$0xf0]  ;;  %v7649_v37 = vor.u32 %v8284_v56, %v7646_v36 }
 0x2f1   :  { %v4112_v18 = vpop.f32.mrf.mxu3  ;;  %v7665_v8 = vor.u32 %v8288_v20, %v7662_v16  ;;  %v8310_v20 = vld [vmem:[%s8986_s12] ss:$0 sm:$0xff]  ;;  %s8638_s12 = smov [#allocation19]  }
 0x2f2   :  { %v7660_v18 = vld [vmem:[#allocation17 + $0x70] sm:$0xf]  ;;  %s5137_s5 = sshll.u32 %s8638_s12, 4  ;;  %s5138_s5 = int_to_ptr.vmem [resolvable:$true] %s5137_s5 }
 0x2f3   :  { %4819 = vmatpush.bf16.msra.mxu0 %v8242_v57  ;;  %v7661_v5 = vor.u32 %v8289_v24, %v7660_v18  ;;  %5117 = vmatpush.bf16.msrb.mxu1 %v7665_v8  ;;  %v8278_v57 = vld [vmem:[#allocation17 + $0x24] sm:$0xf] }
 0x2f4   :  { %v7625_v62 = vor.u32 %v8278_v57, %v7622_v60 }
 0x2f6   :  { %4820 = vmatmul.bf16.vlgmr.msra.gmra.mxu0 %v4712_v6  ;;  %v7638_v6 = vld [vmem:[#allocation17 + $0x48] sm:$0xf0] }
 0x2f7   :  { %v4575_v34 = vpop.f32.mrf.mxu0  ;;  %5104 = vmatpush.bf16.msrb.mxu0 %v7661_v5  ;;  %5118 = vmatpush.bf16.msrb.mxu1 %v7657_v30 }
 0x2f8   :  { %v8285_v34 = vld [vmem:[#allocation17 + $0x54] sm:$0xf0] }
 0x2f9   :  { %v7645_v35 = vor.u32 %v8285_v34, %v7644_v31 }
 0x2fb   :  { %5105 = vmatpush.bf16.msrb.mxu0 %v7653_v27  ;;  %5119 = vmatpush.bf16.msrb.mxu1 %v7649_v37  ;;  %v4998_v27 = vld [vmem:[#allocation7] sm:$0xff] }
 0x2ff   :  { %5106 = vmatpush.bf16.msrb.mxu0 %v7645_v35 }
 0x303   :  { %5107 = vmatpush.bf16.msrb.mxu0 %v7637_v39 }
 0x309   :  { %v4162_v14 = vpop.f32.mrf.mxu3  ;;  %v4586_v1 = vpop.f32.mrf.mxu1 }
 0x30a   :  { %v4163_v42 = vadd.f32 %v4162_v14, %v4150_v38  ;;  %v4587_v3 = vadd.f32 %v4586_v1, %v4574_v63  ;;  %v7641_v38 = vor.u32 %v8282_v49, %v7638_v6  ;;  %v7612_v63 = vld [vmem:[#allocation17 + $0x10] sm:$0xf]  ;;  %v8276_v1 = vld [vmem:[#allocation17 + $0x14] sm:$0xf] }
 0x30c   :  { %v4169_v43 = vmax.f32 %v4163_v42, 0.0  ;;  %5120 = vmatpush.bf16.msrb.mxu1 %v7641_v38 }
 0x30e   :  { %v4173_v46 = vpack.c.bf16 %v4169_v43, %v4169_v43  ;;  %v8281_v43 = vld [vmem:[#allocation17 + $0x34] sm:$0xf0] }
 0x30f   :  { %v4625_v40 = vpop.f32.mrf.mxu0  ;;  %v7629_v12 = vor.u32 %v8281_v43, %v7628_v53 }
 0x310   :  { %4611 = vmatmul.bf16.vlgmr.msra.gmra.mxu3 %v4173_v46  ;;  %v4626_v23 = vadd.f32 %v4625_v40, %v4241_v10  ;;  %v7604_v10 = vld [vmem:[#allocation17] sm:$0xf] }
 0x311   :  { %v4164_v25 = vpop.f32.mrf.mxu3  ;;  %4983 = vmatpush.bf16.msra.mxu3 %v8273_v44  ;;  %v4588_v7 = vpop.f32.mrf.mxu1  ;;  %v8280_v44 = vld [vmem:[#allocation17 + $0x34] sm:$0xf]  ;;  %5108 = vmatpush.bf16.msrb.mxu0 %v7629_v12 }
 0x315   :  { %4984 = vmatpush.bf16.msra.mxu3 %v8272_v51  ;;  %v7620_v51 = vld [vmem:[#allocation17 + $0x20] sm:$0xf] }
 0x316   :  { %v7621_v61 = vor.u32 %v8279_v55, %v7620_v51 }
 0x317   :  { %v4627_v47 = vpop.f32.mrf.mxu0 }
 0x318   :  { %5109 = vmatpush.bf16.msrb.mxu0 %v7621_v61 }
 0x319   :  { %4985 = vmatpush.bf16.msra.mxu3 %v8271_v59  ;;  %v4638_v17 = vpop.f32.mrf.mxu1 }
 0x31a   :  { %v8950_v50 = vadd.f32 %v4638_v17, %v4626_v23  ;;  %v8274_v23 = vld [vmem:[#allocation17 + $0x4] sm:$0xf] }
 0x31d   :  { %4986 = vmatpush.bf16.msra.mxu3 %v8270_v2 }
 0x320   :  { %4663 = vmatmul.bf16.vlgmr.msrb.gmra.mxu3 %v4173_v46  ;;  %v7630_v46 = vld [vmem:[#allocation17 + $0x38] sm:$0xf0] }
 0x321   :  { %4987 = vmatpush.bf16.msra.mxu3 %v8269_v4  ;;  %v4640_v58 = vpop.f32.mrf.mxu1  ;;  %v7633_v25 = vor.u32 %v8280_v44, %v7630_v46  ;;  %v7614_v4 = vld [vmem:[#allocation17 + $0x18] sm:$0xf0] }
 0x322   :  { %v7617_v7 = vor.u32 %v8276_v1, %v7614_v4 }
 0x323   :  { %5121 = vmatpush.bf16.msrb.mxu1 %v7633_v25 }
 0x325   :  { %4988 = vmatpush.bf16.msra.mxu3 %v8268_v9 }
 0x327   :  { %5122 = vmatpush.bf16.msrb.mxu1 %v7625_v62 }
 0x329   :  { %4989 = vmatpush.bf16.msra.mxu3 %v8267_v11  ;;  %v8275_v11 = vld [vmem:[#allocation17 + $0x4] sm:$0xf0] }
 0x32a   :  { %v7605_v17 = vor.u32 %v8275_v11, %v7604_v10 }
 0x32b   :  { %5123 = vmatpush.bf16.msrb.mxu1 %v7617_v7 }
 0x32d   :  { %4990 = vmatpush.bf16.msra.mxu3 %v8266_v19  ;;  %v7606_v19 = vld [vmem:[#allocation17 + $0x8] sm:$0xf0] }
 0x330   :  { %4991 = vmatmul.bf16.vlgmr.msra.gmra.mxu3 %v4713_v0  ;;  %v8277_v0 = vld [vmem:[#allocation17 + $0x14] sm:$0xf0] }
 0x353   :  { %v4599_v22 = vpop.f32.mrf.mxu2 }
 0x354   :  { %v4600_v14 = vadd.f32 %v4599_v22, %v4587_v3  ;;  %v7613_v3 = vor.u32 %v8277_v0, %v7612_v63  ;;  %v7609_v22 = vor.u32 %v8274_v23, %v7606_v19 }
 0x356   :  { %5110 = vmatpush.bf16.msrb.mxu0 %v7613_v3  ;;  %5124 = vmatpush.bf16.msrb.mxu1 %v7609_v22 }
 0x35a   :  { %v4834_v47 = vpop.f32.mrf.mxu1  ;;  %5111 = vmatpush.bf16.msrb.mxu0 %v7605_v17 }
 0x35b   :  { %v4601_v13 = vpop.f32.mrf.mxu2 }
 0x362   :  { %v4836_v9 = vpop.f32.mrf.mxu1 }
 0x363   :  { %v8952_v26 = vpop.f32.mrf.mxu2 }
 0x364   :  { %v4652_v58 = vadd.f32 %v8952_v26, %v8950_v50  ;;  %v8311_v50 = vld [vmem:[%s8984_s10] ss:$0 sm:$0xff] }
 0x36b   :  { %v4653_v33 = vpop.f32.mrf.mxu2 }
 0x373   :  { %v8954_v15 = vpop.f32.mrf.mxu2  ;;  %v4821_v45 = vpop.f32.mrf.mxu0 }
 0x374   :  { %v4980_v5 = vadd.f32 %v8310_v20, %v8954_v15  ;;  %v4822_v52 = vadd.f32 %v8311_v50, %v4821_v45  ;;  %v5018_v15 = vld [vmem:[%s8988_s14] sm:$0x3] }
 0x375   :  { %v5020_v56 = vperm.slane %v5018_v15, 0  ;;  %v5021_v35 = vperm.slane %v5018_v15, 1 }
 0x376   :  { %v4835_v28 = vadd.f32 %v4834_v47, %v4822_v52 }
 0x37b   :  { %v4981_v40 = vpop.f32.mrf.mxu2  ;;  %v4823_v2 = vpop.f32.mrf.mxu0 }
 0x393   :  { %v4612_v41 = vpop.f32.mrf.mxu3 }
 0x394   :  { %v4613_v42 = vadd.f32 %v4612_v41, %v4600_v14 }
 0x396   :  { %v4668_v54 = vmax.f32 %v4613_v42, 0.0 }
 0x398   :  { %4670 = vst [vmem:[#allocation19] sm:$0xff] %v4668_v54 }
 0x39b   :  { %v4614_v59 = vpop.f32.mrf.mxu3 }
 0x3a3   :  { %v4664_v13 = vpop.f32.mrf.mxu3 }
 0x3a4   :  { %v4665_v33 = vadd.f32 %v4664_v13, %v4652_v58 }
 0x3a6   :  { %v4669_v18 = vmax.f32 %v4665_v33, 0.0 }
 0x3a8   :  { %4671 = vst [vmem:[#allocation19 + $0x8] sm:$0xff] %v4669_v18 }
 0x3a9   :  { %5142 = dma.vmem_to_hbm [thread:$0]  %s5138_s5, 256, %s5140_s0, [#allocation4]  }
 0x3ab   :  { %v4666_v24 = vpop.f32.mrf.mxu3 }
 0x3b3   :  { %v4992_v16 = vpop.f32.mrf.mxu3 }
 0x3b4   :  { %v4993_v8 = vadd.f32 %v4992_v16, %v4980_v5 }
 0x3b6   :  { %v4996_v26 = vmul.f32 1.442695, %v4993_v8 }
 0x3b8   :  { %8312 = vpow2.f32 %v4996_v26 }
 0x3bb   :  { %v4994_v21 = vpop.f32.mrf.mxu3 }
 0x3be   :  { %v8313_v29 = vpop.eup %8312 }
 0x3bf   :  { %v4999_v30 = vmul.f32 %v8313_v29, %v4998_v27 }
 0x3c1   :  { %v5000_v31 = vadd.f32 %v4999_v30, %v4835_v28 }
 0x3c3   :  { %v5001_v34 = vpack.c.bf16 %v5000_v31, %v5000_v31 }
 0x3c5   :  { %5112 = vmatmul.bf16.vlgmr.msrb.gmra.mxu0 %v5001_v34  ;;  %5125 = vmatmul.bf16.vlgmr.msrb.gmra.mxu1 %v5001_v34 }
 0x442   :  { %v5113_v36 = vpop.f32.mrf.mxu0  ;;  %v5126_v48 = vpop.f32.mrf.mxu1 }
 0x443   :  { %v5114_v32 = vadd.f32 %v5113_v36, %v5020_v56  ;;  %v5127_v37 = vadd.f32 %v5126_v48, %v5021_v35 }
 0x445   :  { %5130 = vst [vmem:[#allocation20] sm:$0xff] %v5114_v32 }
 0x446   :  { %5131 = vst [vmem:[#allocation20 + $0x8] sm:$0xff] %v5127_v37 }
 0x447   :  { %5153 = dma.vmem_to_hbm [thread:$0]  %s5149_s9, 256, %s5151_s1, [#allocation21]  }
 0x44a   :  { %v5115_v49 = vpop.f32.mrf.mxu0  ;;  %v5128_v6 = vpop.f32.mrf.mxu1 }
 0x44b   :  { %8616 = dma.done.wait [#allocation4], 256  }
 0x44c   :  { %8617 = vsyncadd [#allocation4], 4294967040 }
 0x44d   :  { %8618 = dma.done.wait [#allocation21], 256  }
 0x44e   :  { %8619 = vsyncadd [#allocation21], 4294967040 }
 0x44f   :  { %5162 = vsyncpa [#allocation3], 1 }
 0x450   :  { %5163 = vsyncpa [#allocation6], 1 }
 0x451   :  { %5164 = vsyncpa [#allocation9], 1 }
 0x452   :  { %5165 = vsyncpa [#allocation12], 1 }
 0x453   :  { %5166 = vsyncpa [#allocation15], 1 }
 0x454   :  { %5167 = vsyncpa [#allocation18], 1 }
 0x455   :  { %5168 = vsyncpa [#allocation4], 1 }
 0x456   :  { %5169 = vsyncpa [#allocation21], 1 }

</bundles_post_ra>
